<compile_context>
chip_gen: v7x
topology: tpu7x:2x2x1
jax: 0.10.0
libtpu: 0.0.40
codegen_flags: <defaults>
</compile_context>

<pallas_src>
import functools

import jax
import jax.numpy as jnp
import numpy as np
from jax.experimental import pallas as pl
from jax.experimental.pallas import tpu as pltpu

_LANE = 128
_VMEM_BUDGET_BYTES = 32 * 1024 * 1024   # tile-sizing budget (fits v7x 64 MiB)
_VMEM_LIMIT_BYTES = 48 * 1024 * 1024    # scoped limit with headroom on v7x


def _round_up(x, m):
    return (x + m - 1) // m * m


def _choose_tile_v(n_hint, fin, fout, max_tile_v):
    """Pick a dst-row tile (multiple of 128) that fits the VMEM budget.

    Per grid step (BlockSpec double-buffers streamed operands):
      adj tile  : 2 * tile_v * n_hint * 2 B   (bf16)
      out tile  : 2 * tile_v * fout   * 4 B   (f32)
      resident  : x (n_hint*fin*2) + w (fin*fout*2) + bias (fout*4)
    """
    resident = n_hint * fin * 2 + fin * fout * 2 + fout * 4
    per_row = 2 * (n_hint * 2 + fout * 4)
    fit = (_VMEM_BUDGET_BYTES - resident) // max(per_row, 1)
    tile_v = max(_LANE, (fit // _LANE) * _LANE)
    tile_v = min(tile_v, max_tile_v, _round_up(n_hint, _LANE))
    return int(tile_v)


# ----------------------------------------------------------------------------
# Pallas kernels
# ----------------------------------------------------------------------------
def _gcn_layer_kernel(adj_ref, x_ref, w_ref, b_ref, out_ref, *, apply_elu):
    # adj_ref: [TILE_V, N_pad] bf16  normalized adjacency rows of this dst tile
    # x_ref:   [N_pad, Fin]    bf16  all source-node features (resident block)
    # w_ref:   [Fin, Fout]     bf16
    # b_ref:   [1, Fout]       f32
    # out_ref: [TILE_V, Fout]  f32
    # aggregate-then-transform:  (A_hat_tile @ X) @ W  — both on the MXU,
    # bf16 inputs, f32 accumulation.
    agg = jnp.dot(adj_ref[...], x_ref[...], preferred_element_type=jnp.float32)
    z = jnp.dot(agg.astype(jnp.bfloat16), w_ref[...],
                preferred_element_type=jnp.float32)
    z = z + b_ref[...]
    if apply_elu:
        # ELU (alpha=1), f32 element-wise epilogue.
        z = jnp.where(z > 0.0, z, jnp.exp(jnp.minimum(z, 0.0)) - 1.0)
    # Single lane-dense, full-tile store.
    out_ref[...] = z.astype(out_ref.dtype)


def _linear_kernel(x_ref, w_ref, b_ref, out_ref):
    out_ref[...] = (jnp.dot(x_ref[...], w_ref[...],
                            preferred_element_type=jnp.float32)
                    + b_ref[...]).astype(out_ref.dtype)


# ----------------------------------------------------------------------------
# pallas_call wrappers
# ----------------------------------------------------------------------------
def gcn_layer(a_hat, x, w, b, *, apply_elu, tile_v):
    n_pad = a_hat.shape[0]
    fin = x.shape[1]
    fout = w.shape[1]
    kernel = functools.partial(_gcn_layer_kernel, apply_elu=apply_elu)
    return pl.pallas_call(
        kernel,
        out_shape=jax.ShapeDtypeStruct((n_pad, fout), jnp.float32),
        grid_spec=pltpu.PrefetchScalarGridSpec(
            num_scalar_prefetch=0,
            grid=(n_pad // tile_v,),
            in_specs=[
                pl.BlockSpec((tile_v, n_pad), lambda i: (i, 0)),  # adj rows
                pl.BlockSpec((n_pad, fin), lambda i: (0, 0)),     # all feats
                pl.BlockSpec((fin, fout), lambda i: (0, 0)),      # weight
                pl.BlockSpec((1, fout), lambda i: (0, 0)),        # bias
            ],
            out_specs=pl.BlockSpec((tile_v, fout), lambda i: (i, 0)),
        ),
        compiler_params=pltpu.CompilerParams(
            dimension_semantics=("parallel",),
            vmem_limit_bytes=_VMEM_LIMIT_BYTES),
    )(a_hat,
      x.astype(jnp.bfloat16),
      w.astype(jnp.bfloat16),
      b.reshape(1, -1).astype(jnp.float32))


def linear_layer(x, w, b, *, tile_v):
    n_pad, d_in = x.shape
    d_out = w.shape[1]
    return pl.pallas_call(
        _linear_kernel,
        out_shape=jax.ShapeDtypeStruct((n_pad, d_out), jnp.float32),
        grid_spec=pltpu.PrefetchScalarGridSpec(
            num_scalar_prefetch=0,
            grid=(n_pad // tile_v,),
            in_specs=[
                pl.BlockSpec((tile_v, d_in), lambda i: (i, 0)),
                pl.BlockSpec((d_in, d_out), lambda i: (0, 0)),
                pl.BlockSpec((1, d_out), lambda i: (0, 0)),
            ],
            out_specs=pl.BlockSpec((tile_v, d_out), lambda i: (i, 0)),
        ),
        compiler_params=pltpu.CompilerParams(
            dimension_semantics=("parallel",),
            vmem_limit_bytes=_VMEM_LIMIT_BYTES),
    )(x.astype(jnp.bfloat16),
      w.astype(jnp.bfloat16),
      b.reshape(1, -1).astype(jnp.float32))


# ----------------------------------------------------------------------------
# Model forward (GCNNet.forward(g)):  GCN (GraphConv stack) + gnn_out Linear
# ----------------------------------------------------------------------------
def gcn_net_forward(x, adj, params, *, max_tile_v=256):
    gcn_layers, (w_out, b_out) = params
    n, fin0 = x.shape

    # DGL GraphConv norm='both': A_hat = D_in^{-1/2} A D_out^{-1/2}
    # (degrees clamped to >= 1). Computed once per forward; stored bf16 so the
    # largest re-streamed HBM operand is half-size and shared by all layers.
    deg_in = jnp.maximum(jnp.sum(adj, axis=1), 1.0)
    deg_out = jnp.maximum(jnp.sum(adj, axis=0), 1.0)
    a_hat = adj * jax.lax.rsqrt(deg_in)[:, None] * jax.lax.rsqrt(deg_out)[None, :]

    # Tile the destination-node axis; pad N so the grid divides evenly.
    fmax = max([fin0] + [w.shape[1] for w, _ in gcn_layers] + [w_out.shape[1]])
    tile_v = _choose_tile_v(_round_up(n, _LANE), fmax, fmax, max_tile_v)
    n_pad = _round_up(n, tile_v)

    a_hat = jnp.pad(a_hat, ((0, n_pad - n), (0, n_pad - n))).astype(jnp.bfloat16)
    h = jnp.pad(x, ((0, n_pad - n), (0, 0)))

    for w, b in gcn_layers[:-1]:
        h = gcn_layer(a_hat, h, w, b, apply_elu=True, tile_v=tile_v)
    w, b = gcn_layers[-1]
    n_embed = gcn_layer(a_hat, h, w, b, apply_elu=False, tile_v=tile_v)
    n_out = linear_layer(n_embed, w_out, b_out, tile_v=tile_v)
    return n_out[:n], n_embed[:n]


def init_gcnnet_graph_params(key, num_gcn_layers, fv_dim, num_hiddens,
                             node_embed_dim, out_ch):
    dims = [fv_dim] + list(num_hiddens[:num_gcn_layers]) + [node_embed_dim]
    gcn_layers = []
    for l in range(num_gcn_layers + 1):
        key, kw, kb = jax.random.split(key, 3)
        w = jax.random.normal(kw, (dims[l], dims[l + 1]), jnp.float32) * 0.1
        b = jax.random.normal(kb, (dims[l + 1],), jnp.float32) * 0.1
        gcn_layers.append((w, b))
    key, kw, kb = jax.random.split(key, 3)
    w_out = jax.random.normal(kw, (node_embed_dim, out_ch), jnp.float32) * 0.1
    b_out = jax.random.normal(kb, (out_ch,), jnp.float32) * 0.1
    return gcn_layers, (w_out, b_out)


# ----------------------------------------------------------------------------
# Pure-JAX f32 reference (correctness check only)
# ----------------------------------------------------------------------------
def gcn_net_forward_ref(x, adj, params):
    gcn_layers, (w_out, b_out) = params
    deg_in = jnp.maximum(jnp.sum(adj, axis=1), 1.0)
    deg_out = jnp.maximum(jnp.sum(adj, axis=0), 1.0)
    a_hat = adj * jax.lax.rsqrt(deg_in)[:, None] * jax.lax.rsqrt(deg_out)[None, :]
    h = x
    for w, b in gcn_layers[:-1]:
        z = (a_hat @ h) @ w + b
        h = jnp.where(z > 0.0, z, jnp.exp(jnp.minimum(z, 0.0)) - 1.0)  # ELU
    w, b = gcn_layers[-1]
    n_embed = (a_hat @ h) @ w + b
    n_out = n_embed @ w_out + b_out
    return n_out, n_embed


if __name__ == "__main__":
    key = jax.random.PRNGKey(0)
    kx, ka, kp = jax.random.split(key, 3)

    # Small synthetic graph consistent with GCNNet(fv_dim, num_hiddens,
    # node_embed_dim, out_ch); N=512 so the dst-tile grid (tile=256) is real.
    N, fv_dim = 512, 32
    num_gcn_layers = 2
    num_hiddens = [64, 64]
    node_embed_dim = 32
    out_ch = 8

    x = jax.random.normal(kx, (N, fv_dim), jnp.float32)
    adj = (jax.random.uniform(ka, (N, N)) < 0.02).astype(jnp.float32)
    adj = jnp.maximum(adj, adj.T)                                # undirected
    adj = jnp.maximum(adj, jnp.eye(N, dtype=jnp.float32))        # self loops

    params = init_gcnnet_graph_params(kp, num_gcn_layers, fv_dim, num_hiddens,
                                      node_embed_dim, out_ch)

    fwd = jax.jit(functools.partial(gcn_net_forward, max_tile_v=256))
    n_out, n_embed = fwd(x, adj, params)
    n_out, n_embed = jax.block_until_ready((n_out, n_embed))

    ref_out, ref_embed = gcn_net_forward_ref(x, adj, params)
    np.testing.assert_allclose(np.asarray(n_embed), np.asarray(ref_embed),
                               rtol=3e-2, atol=3e-2)
    np.testing.assert_allclose(np.asarray(n_out), np.asarray(ref_out),
                               rtol=3e-2, atol=3e-2)
    assert n_out.shape == (N, out_ch)
    assert n_embed.shape == (N, node_embed_dim)
    print("KERNEL_OK")
</pallas_src>

<mosaic_0001>
module attributes {stable_mosaic.version = 11 : i64} {
  func.func @_gcn_layer_kernel(%arg0: i32, %arg1: memref<256x512xbf16, #tpu.memory_space<vmem>>, %arg2: memref<512x32xbf16, #tpu.memory_space<vmem>>, %arg3: memref<32x64xbf16, #tpu.memory_space<vmem>>, %arg4: memref<1x64xf32, #tpu.memory_space<vmem>>, %arg5: memref<256x64xf32, #tpu.memory_space<vmem>>) attributes {dimension_semantics = [#tpu.dimension_semantics<parallel>], iteration_bounds = array<i64: 2>, scalar_prefetch = 0 : i64, scratch_operands = 0 : i64, tpu.core_type = #tpu.core_type<tc>, window_params = [{transform_indices = @transform_0, window_bounds = array<i64: 256, 512>}, {pipeline_mode = #tpu.pipeline_mode<synchronous>, transform_indices = @transform_1, window_bounds = array<i64: 512, 32>}, {pipeline_mode = #tpu.pipeline_mode<synchronous>, transform_indices = @transform_2, window_bounds = array<i64: 32, 64>}, {pipeline_mode = #tpu.pipeline_mode<synchronous>, transform_indices = @transform_3, window_bounds = array<i64: 1, 64>}, {transform_indices = @transform_4, window_bounds = array<i64: 256, 64>}]} {
    %c0 = arith.constant 0 : index
    %c0_0 = arith.constant 0 : index
    %0 = vector.load %arg1[%c0, %c0_0] : memref<256x512xbf16, #tpu.memory_space<vmem>>, vector<256x512xbf16>
    %c0_1 = arith.constant 0 : index
    %c0_2 = arith.constant 0 : index
    %1 = vector.load %arg2[%c0_1, %c0_2] : memref<512x32xbf16, #tpu.memory_space<vmem>>, vector<512x32xbf16>
    %cst = arith.constant dense<0.000000e+00> : vector<256x32xf32>
    %2 = tpu.matmul %0, %1, %cst {dimension_numbers = #tpu.dot_dimension_numbers<[1], [0], [0], [1], [0, 0, 1, 1], [], []>} : vector<256x512xbf16>, vector<512x32xbf16>, vector<256x32xf32> -> vector<256x32xf32>
    %3 = arith.truncf %2 : vector<256x32xf32> to vector<256x32xbf16>
    %c0_3 = arith.constant 0 : index
    %c0_4 = arith.constant 0 : index
    %4 = vector.load %arg3[%c0_3, %c0_4] : memref<32x64xbf16, #tpu.memory_space<vmem>>, vector<32x64xbf16>
    %cst_5 = arith.constant dense<0.000000e+00> : vector<256x64xf32>
    %5 = tpu.matmul %3, %4, %cst_5 {dimension_numbers = #tpu.dot_dimension_numbers<[1], [0], [0], [1], [0, 0, 1, 1], [], []>} : vector<256x32xbf16>, vector<32x64xbf16>, vector<256x64xf32> -> vector<256x64xf32>
    %c0_6 = arith.constant 0 : index
    %c0_7 = arith.constant 0 : index
    %6 = vector.load %arg4[%c0_6, %c0_7] : memref<1x64xf32, #tpu.memory_space<vmem>>, vector<1x64xf32>
    %7 = vector.broadcast %6 : vector<1x64xf32> to vector<256x64xf32>
    %8 = arith.addf %5, %7 : vector<256x64xf32>
    %cst_8 = arith.constant 0.000000e+00 : f32
    %9 = vector.broadcast %cst_8 : f32 to vector<256x64xf32>
    %10 = arith.cmpf ogt, %8, %9 : vector<256x64xf32>
    %cst_9 = arith.constant 0.000000e+00 : f32
    %11 = vector.broadcast %cst_9 : f32 to vector<256x64xf32>
    %12 = arith.minimumf %8, %11 : vector<256x64xf32>
    %13 = math.exp %12 : vector<256x64xf32>
    %cst_10 = arith.constant 1.000000e+00 : f32
    %14 = vector.broadcast %cst_10 : f32 to vector<256x64xf32>
    %15 = arith.subf %13, %14 : vector<256x64xf32>
    %16 = arith.select %10, %8, %15 : vector<256x64xi1>, vector<256x64xf32>
    %c0_11 = arith.constant 0 : index
    %c0_12 = arith.constant 0 : index
    %17 = vector.load %arg5[%c0_11, %c0_12] : memref<256x64xf32, #tpu.memory_space<vmem>>, vector<256x64xf32>
    tpu.vector_store %arg5[%c0_11, %c0_12], %16 {strides = array<i32>} : memref<256x64xf32, #tpu.memory_space<vmem>>, vector<256x64xf32>,
    return
  }
  func.func @transform_0(%arg0: i32) -> (i32, i32) {
    %c0_i32 = arith.constant 0 : i32
    %c0_i32_0 = arith.constant 0 : i32
    return %arg0, %c0_i32 : i32, i32
  }
  func.func @transform_1(%arg0: i32) -> (i32, i32) {
    %c0_i32 = arith.constant 0 : i32
    %c0_i32_0 = arith.constant 0 : i32
    %c0_i32_1 = arith.constant 0 : i32
    return %c0_i32, %c0_i32_0 : i32, i32
  }
  func.func @transform_2(%arg0: i32) -> (i32, i32) {
    %c0_i32 = arith.constant 0 : i32
    %c0_i32_0 = arith.constant 0 : i32
    %c0_i32_1 = arith.constant 0 : i32
    return %c0_i32, %c0_i32_0 : i32, i32
  }
  func.func @transform_3(%arg0: i32) -> (i32, i32) {
    %c0_i32 = arith.constant 0 : i32
    %c0_i32_0 = arith.constant 0 : i32
    %c0_i32_1 = arith.constant 0 : i32
    return %c0_i32, %c0_i32_0 : i32, i32
  }
  func.func @transform_4(%arg0: i32) -> (i32, i32) {
    %c0_i32 = arith.constant 0 : i32
    %c0_i32_0 = arith.constant 0 : i32
    return %arg0, %c0_i32 : i32, i32
  }
}

module attributes {stable_mosaic.version = 11 : i64} {
  func.func @_gcn_layer_kernel(%arg0: i32, %arg1: memref<256x512xbf16, #tpu.memory_space<vmem>>, %arg2: memref<512x64xbf16, #tpu.memory_space<vmem>>, %arg3: memref<64x64xbf16, #tpu.memory_space<vmem>>, %arg4: memref<1x64xf32, #tpu.memory_space<vmem>>, %arg5: memref<256x64xf32, #tpu.memory_space<vmem>>) attributes {dimension_semantics = [#tpu.dimension_semantics<parallel>], iteration_bounds = array<i64: 2>, scalar_prefetch = 0 : i64, scratch_operands = 0 : i64, tpu.core_type = #tpu.core_type<tc>, window_params = [{transform_indices = @transform_0, window_bounds = array<i64: 256, 512>}, {pipeline_mode = #tpu.pipeline_mode<synchronous>, transform_indices = @transform_1, window_bounds = array<i64: 512, 64>}, {pipeline_mode = #tpu.pipeline_mode<synchronous>, transform_indices = @transform_2, window_bounds = array<i64: 64, 64>}, {pipeline_mode = #tpu.pipeline_mode<synchronous>, transform_indices = @transform_3, window_bounds = array<i64: 1, 64>}, {transform_indices = @transform_4, window_bounds = array<i64: 256, 64>}]} {
    %c0 = arith.constant 0 : index
    %c0_0 = arith.constant 0 : index
    %0 = vector.load %arg1[%c0, %c0_0] : memref<256x512xbf16, #tpu.memory_space<vmem>>, vector<256x512xbf16>
    %c0_1 = arith.constant 0 : index
    %c0_2 = arith.constant 0 : index
    %1 = vector.load %arg2[%c0_1, %c0_2] : memref<512x64xbf16, #tpu.memory_space<vmem>>, vector<512x64xbf16>
    %cst = arith.constant dense<0.000000e+00> : vector<256x64xf32>
    %2 = tpu.matmul %0, %1, %cst {dimension_numbers = #tpu.dot_dimension_numbers<[1], [0], [0], [1], [0, 0, 1, 1], [], []>} : vector<256x512xbf16>, vector<512x64xbf16>, vector<256x64xf32> -> vector<256x64xf32>
    %3 = arith.truncf %2 : vector<256x64xf32> to vector<256x64xbf16>
    %c0_3 = arith.constant 0 : index
    %c0_4 = arith.constant 0 : index
    %4 = vector.load %arg3[%c0_3, %c0_4] : memref<64x64xbf16, #tpu.memory_space<vmem>>, vector<64x64xbf16>
    %cst_5 = arith.constant dense<0.000000e+00> : vector<256x64xf32>
    %5 = tpu.matmul %3, %4, %cst_5 {dimension_numbers = #tpu.dot_dimension_numbers<[1], [0], [0], [1], [0, 0, 1, 1], [], []>} : vector<256x64xbf16>, vector<64x64xbf16>, vector<256x64xf32> -> vector<256x64xf32>
    %c0_6 = arith.constant 0 : index
    %c0_7 = arith.constant 0 : index
    %6 = vector.load %arg4[%c0_6, %c0_7] : memref<1x64xf32, #tpu.memory_space<vmem>>, vector<1x64xf32>
    %7 = vector.broadcast %6 : vector<1x64xf32> to vector<256x64xf32>
    %8 = arith.addf %5, %7 : vector<256x64xf32>
    %cst_8 = arith.constant 0.000000e+00 : f32
    %9 = vector.broadcast %cst_8 : f32 to vector<256x64xf32>
    %10 = arith.cmpf ogt, %8, %9 : vector<256x64xf32>
    %cst_9 = arith.constant 0.000000e+00 : f32
    %11 = vector.broadcast %cst_9 : f32 to vector<256x64xf32>
    %12 = arith.minimumf %8, %11 : vector<256x64xf32>
    %13 = math.exp %12 : vector<256x64xf32>
    %cst_10 = arith.constant 1.000000e+00 : f32
    %14 = vector.broadcast %cst_10 : f32 to vector<256x64xf32>
    %15 = arith.subf %13, %14 : vector<256x64xf32>
    %16 = arith.select %10, %8, %15 : vector<256x64xi1>, vector<256x64xf32>
    %c0_11 = arith.constant 0 : index
    %c0_12 = arith.constant 0 : index
    %17 = vector.load %arg5[%c0_11, %c0_12] : memref<256x64xf32, #tpu.memory_space<vmem>>, vector<256x64xf32>
    tpu.vector_store %arg5[%c0_11, %c0_12], %16 {strides = array<i32>} : memref<256x64xf32, #tpu.memory_space<vmem>>, vector<256x64xf32>,
    return
  }
  func.func @transform_0(%arg0: i32) -> (i32, i32) {
    %c0_i32 = arith.constant 0 : i32
    %c0_i32_0 = arith.constant 0 : i32
    return %arg0, %c0_i32 : i32, i32
  }
  func.func @transform_1(%arg0: i32) -> (i32, i32) {
    %c0_i32 = arith.constant 0 : i32
    %c0_i32_0 = arith.constant 0 : i32
    %c0_i32_1 = arith.constant 0 : i32
    return %c0_i32, %c0_i32_0 : i32, i32
  }
  func.func @transform_2(%arg0: i32) -> (i32, i32) {
    %c0_i32 = arith.constant 0 : i32
    %c0_i32_0 = arith.constant 0 : i32
    %c0_i32_1 = arith.constant 0 : i32
    return %c0_i32, %c0_i32_0 : i32, i32
  }
  func.func @transform_3(%arg0: i32) -> (i32, i32) {
    %c0_i32 = arith.constant 0 : i32
    %c0_i32_0 = arith.constant 0 : i32
    %c0_i32_1 = arith.constant 0 : i32
    return %c0_i32, %c0_i32_0 : i32, i32
  }
  func.func @transform_4(%arg0: i32) -> (i32, i32) {
    %c0_i32 = arith.constant 0 : i32
    %c0_i32_0 = arith.constant 0 : i32
    return %arg0, %c0_i32 : i32, i32
  }
}

module attributes {stable_mosaic.version = 11 : i64} {
  func.func @_gcn_layer_kernel(%arg0: i32, %arg1: memref<256x512xbf16, #tpu.memory_space<vmem>>, %arg2: memref<512x64xbf16, #tpu.memory_space<vmem>>, %arg3: memref<64x32xbf16, #tpu.memory_space<vmem>>, %arg4: memref<1x32xf32, #tpu.memory_space<vmem>>, %arg5: memref<256x32xf32, #tpu.memory_space<vmem>>) attributes {dimension_semantics = [#tpu.dimension_semantics<parallel>], iteration_bounds = array<i64: 2>, scalar_prefetch = 0 : i64, scratch_operands = 0 : i64, tpu.core_type = #tpu.core_type<tc>, window_params = [{transform_indices = @transform_0, window_bounds = array<i64: 256, 512>}, {pipeline_mode = #tpu.pipeline_mode<synchronous>, transform_indices = @transform_1, window_bounds = array<i64: 512, 64>}, {pipeline_mode = #tpu.pipeline_mode<synchronous>, transform_indices = @transform_2, window_bounds = array<i64: 64, 32>}, {pipeline_mode = #tpu.pipeline_mode<synchronous>, transform_indices = @transform_3, window_bounds = array<i64: 1, 32>}, {transform_indices = @transform_4, window_bounds = array<i64: 256, 32>}]} {
    %c0 = arith.constant 0 : index
    %c0_0 = arith.constant 0 : index
    %0 = vector.load %arg1[%c0, %c0_0] : memref<256x512xbf16, #tpu.memory_space<vmem>>, vector<256x512xbf16>
    %c0_1 = arith.constant 0 : index
    %c0_2 = arith.constant 0 : index
    %1 = vector.load %arg2[%c0_1, %c0_2] : memref<512x64xbf16, #tpu.memory_space<vmem>>, vector<512x64xbf16>
    %cst = arith.constant dense<0.000000e+00> : vector<256x64xf32>
    %2 = tpu.matmul %0, %1, %cst {dimension_numbers = #tpu.dot_dimension_numbers<[1], [0], [0], [1], [0, 0, 1, 1], [], []>} : vector<256x512xbf16>, vector<512x64xbf16>, vector<256x64xf32> -> vector<256x64xf32>
    %3 = arith.truncf %2 : vector<256x64xf32> to vector<256x64xbf16>
    %c0_3 = arith.constant 0 : index
    %c0_4 = arith.constant 0 : index
    %4 = vector.load %arg3[%c0_3, %c0_4] : memref<64x32xbf16, #tpu.memory_space<vmem>>, vector<64x32xbf16>
    %cst_5 = arith.constant dense<0.000000e+00> : vector<256x32xf32>
    %5 = tpu.matmul %3, %4, %cst_5 {dimension_numbers = #tpu.dot_dimension_numbers<[1], [0], [0], [1], [0, 0, 1, 1], [], []>} : vector<256x64xbf16>, vector<64x32xbf16>, vector<256x32xf32> -> vector<256x32xf32>
    %c0_6 = arith.constant 0 : index
    %c0_7 = arith.constant 0 : index
    %6 = vector.load %arg4[%c0_6, %c0_7] : memref<1x32xf32, #tpu.memory_space<vmem>>, vector<1x32xf32>
    %7 = vector.broadcast %6 : vector<1x32xf32> to vector<256x32xf32>
    %8 = arith.addf %5, %7 : vector<256x32xf32>
    %c0_8 = arith.constant 0 : index
    %c0_9 = arith.constant 0 : index
    %9 = vector.load %arg5[%c0_8, %c0_9] : memref<256x32xf32, #tpu.memory_space<vmem>>, vector<256x32xf32>
    tpu.vector_store %arg5[%c0_8, %c0_9], %8 {strides = array<i32>} : memref<256x32xf32, #tpu.memory_space<vmem>>, vector<256x32xf32>,
    return
  }
  func.func @transform_0(%arg0: i32) -> (i32, i32) {
    %c0_i32 = arith.constant 0 : i32
    %c0_i32_0 = arith.constant 0 : i32
    return %arg0, %c0_i32 : i32, i32
  }
  func.func @transform_1(%arg0: i32) -> (i32, i32) {
    %c0_i32 = arith.constant 0 : i32
    %c0_i32_0 = arith.constant 0 : i32
    %c0_i32_1 = arith.constant 0 : i32
    return %c0_i32, %c0_i32_0 : i32, i32
  }
  func.func @transform_2(%arg0: i32) -> (i32, i32) {
    %c0_i32 = arith.constant 0 : i32
    %c0_i32_0 = arith.constant 0 : i32
    %c0_i32_1 = arith.constant 0 : i32
    return %c0_i32, %c0_i32_0 : i32, i32
  }
  func.func @transform_3(%arg0: i32) -> (i32, i32) {
    %c0_i32 = arith.constant 0 : i32
    %c0_i32_0 = arith.constant 0 : i32
    %c0_i32_1 = arith.constant 0 : i32
    return %c0_i32, %c0_i32_0 : i32, i32
  }
  func.func @transform_4(%arg0: i32) -> (i32, i32) {
    %c0_i32 = arith.constant 0 : i32
    %c0_i32_0 = arith.constant 0 : i32
    return %arg0, %c0_i32 : i32, i32
  }
}

module attributes {stable_mosaic.version = 11 : i64} {
  func.func @_linear_kernel(%arg0: i32, %arg1: memref<256x32xbf16, #tpu.memory_space<vmem>>, %arg2: memref<32x8xbf16, #tpu.memory_space<vmem>>, %arg3: memref<1x8xf32, #tpu.memory_space<vmem>>, %arg4: memref<256x8xf32, #tpu.memory_space<vmem>>) attributes {dimension_semantics = [#tpu.dimension_semantics<parallel>], iteration_bounds = array<i64: 2>, scalar_prefetch = 0 : i64, scratch_operands = 0 : i64, tpu.core_type = #tpu.core_type<tc>, window_params = [{transform_indices = @transform_0, window_bounds = array<i64: 256, 32>}, {pipeline_mode = #tpu.pipeline_mode<synchronous>, transform_indices = @transform_1, window_bounds = array<i64: 32, 8>}, {pipeline_mode = #tpu.pipeline_mode<synchronous>, transform_indices = @transform_2, window_bounds = array<i64: 1, 8>}, {transform_indices = @transform_3, window_bounds = array<i64: 256, 8>}]} {
    %c0 = arith.constant 0 : index
    %c0_0 = arith.constant 0 : index
    %0 = vector.load %arg1[%c0, %c0_0] : memref<256x32xbf16, #tpu.memory_space<vmem>>, vector<256x32xbf16>
    %c0_1 = arith.constant 0 : index
    %c0_2 = arith.constant 0 : index
    %1 = vector.load %arg2[%c0_1, %c0_2] : memref<32x8xbf16, #tpu.memory_space<vmem>>, vector<32x8xbf16>
    %cst = arith.constant dense<0.000000e+00> : vector<256x8xf32>
    %2 = tpu.matmul %0, %1, %cst {dimension_numbers = #tpu.dot_dimension_numbers<[1], [0], [0], [1], [0, 0, 1, 1], [], []>} : vector<256x32xbf16>, vector<32x8xbf16>, vector<256x8xf32> -> vector<256x8xf32>
    %c0_3 = arith.constant 0 : index
    %c0_4 = arith.constant 0 : index
    %3 = vector.load %arg3[%c0_3, %c0_4] : memref<1x8xf32, #tpu.memory_space<vmem>>, vector<1x8xf32>
    %4 = vector.broadcast %3 : vector<1x8xf32> to vector<256x8xf32>
    %5 = arith.addf %2, %4 : vector<256x8xf32>
    %c0_5 = arith.constant 0 : index
    %c0_6 = arith.constant 0 : index
    %6 = vector.load %arg4[%c0_5, %c0_6] : memref<256x8xf32, #tpu.memory_space<vmem>>, vector<256x8xf32>
    tpu.vector_store %arg4[%c0_5, %c0_6], %5 {strides = array<i32>} : memref<256x8xf32, #tpu.memory_space<vmem>>, vector<256x8xf32>,
    return
  }
  func.func @transform_0(%arg0: i32) -> (i32, i32) {
    %c0_i32 = arith.constant 0 : i32
    %c0_i32_0 = arith.constant 0 : i32
    return %arg0, %c0_i32 : i32, i32
  }
  func.func @transform_1(%arg0: i32) -> (i32, i32) {
    %c0_i32 = arith.constant 0 : i32
    %c0_i32_0 = arith.constant 0 : i32
    %c0_i32_1 = arith.constant 0 : i32
    return %c0_i32, %c0_i32_0 : i32, i32
  }
  func.func @transform_2(%arg0: i32) -> (i32, i32) {
    %c0_i32 = arith.constant 0 : i32
    %c0_i32_0 = arith.constant 0 : i32
    %c0_i32_1 = arith.constant 0 : i32
    return %c0_i32, %c0_i32_0 : i32, i32
  }
  func.func @transform_3(%arg0: i32) -> (i32, i32) {
    %c0_i32 = arith.constant 0 : i32
    %c0_i32_0 = arith.constant 0 : i32
    return %arg0, %c0_i32 : i32, i32
  }
}

</mosaic_0001>

<bundles_post_ra>
// kernel: gcn_net_forward.4
= control target key start
LH: loop header
LB: loop body
LE: loop exit
PB: predicated region body
PF: predicated region fallthrough
CT: control target
= control target key end

     0   :  { %s2386_s15 = smov 0   ;;  %s2718_s0 = inlined_call_operand.vmem [shape: bf16[512,512], index: 0, kind: input, shape index: {}]   ;;  %s2719_s1 = inlined_call_operand.vmem [shape: bf16[512,32], index: 1, kind: input, shape index: {}]   ;;  %s2720_s2 = inlined_call_operand.vmem [shape: bf16[32,64], index: 2, kind: input, shape index: {}]   ;;  %s2721_s3 = inlined_call_operand.vmem [shape: f32[1,64], index: 3, kind: input, shape index: {}]   ;;  %s2722_s4 = inlined_call_operand.vmem [shape: f32[512,64], index: 4, kind: output, shape index: {}]  }
   0x1 LB: > { %s1697_s16 = sadd.s32 4294967295, %s2359_s15   ;;  %p1701_p0 = scmp.ge.s32.totalorder %s2359_s15, 1  ;;  %s2359_s15 = sphi %s2386_s15, %s14_s15  }
   0x2   : > { %p164_p1 = scmp.lt.s32.totalorder %s2359_s15, 3 }
   0x4   : > { %p165_p2 = pnand %p1701_p0, %p164_p1 }
   0x5   : > { %v2159_v0 = vld [vmem:[%s2719_s1 + $0x40] sm:$0xff] (!%p165_p2)   ;;  %s1702_s19 = sshll.u32 (!%p165_p2), %s1697_s16, 5  ;;  %v2161_v2 = vld [vmem:[%s2719_s1 + $0x48] sm:$0xff] (!%p165_p2)   ;;  %v2163_v4 = vld [vmem:[%s2719_s1 + $0x50] sm:$0xff] (!%p165_p2)   ;;  %vm1206_vm0 = vcmask (!%p165_p2), 261120   ;;  %vm1608_vm2 = vcmask (!%p165_p2), 523264  }
   0x6   : > { %168 = sbr.rel (%p165_p2) target bundleno = 647 (0x287), region = 36  ;;  %v2160_v1 = vld [vmem:[%s2719_s1] sm:$0xff] (!%p165_p2)   ;;  %2135 = vmatprep.subr.bf16.mxu1 (!%p165_p2), %v2159_v0  ;;  %1857 = vmatprep.subr.bf16.mxu0 (!%p165_p2), %v2159_v0  ;;  %v2162_v3 = vld [vmem:[%s2719_s1 + $0x8] sm:$0xff] (!%p165_p2)   ;;  %p192_p3 = scmp.lt.s32.totalorder (!%p165_p2), %s1702_s19, 63  ;;  %v2164_v5 = vld [vmem:[%s2719_s1 + $0x10] sm:$0xff] (!%p165_p2)  }
   0x7   : > { %2143 = vmatpush3.bf16.msra.mxu1 (!%p165_p2), %v2160_v1  ;;  %1858 = vmatpush3.bf16.msra.mxu0 (!%p165_p2), %v2160_v1  ;;  %v2165_v6 = vld [vmem:[%s2719_s1 + $0x58] sm:$0xff] (!%p165_p2)   ;;  %v2167_v8 = vld [vmem:[%s2719_s1 + $0x60] sm:$0xff] (!%p165_p2)   ;;  %v2169_v10 = vld [vmem:[%s2719_s1 + $0x68] sm:$0xff] (!%p165_p2)  }
   0x8   : > { %2136 = vmatprep.subr.bf16.mxu1 (!%p165_p2), %v2161_v2  ;;  %1859 = vmatprep.subr.bf16.mxu0 (!%p165_p2), %v2161_v2  ;;  %v2166_v7 = vld [vmem:[%s2719_s1 + $0x18] sm:$0xff] (!%p165_p2)   ;;  %v2168_v9 = vld [vmem:[%s2719_s1 + $0x20] sm:$0xff] (!%p165_p2)   ;;  %v2170_v12 = vld [vmem:[%s2719_s1 + $0x28] sm:$0xff] (!%p165_p2)  }
   0x9   : > { %v2171_v13 = vld [vmem:[%s2719_s1 + $0x70] sm:$0xff] (!%p165_p2)   ;;  %v2173_v15 = vld [vmem:[%s2719_s1 + $0x78] sm:$0xff] (!%p165_p2)   ;;  %v2178_v17 = vld [vmem:[%s2719_s1 + $0xc0] sm:$0xff] (!%p165_p2)  }
   0xa   : > { %v2172_v14 = vld [vmem:[%s2719_s1 + $0x30] sm:$0xff] (!%p165_p2)   ;;  %v2174_v16 = vld [vmem:[%s2719_s1 + $0x38] sm:$0xff] (!%p165_p2)   ;;  %v2179_v19 = vld [vmem:[%s2719_s1 + $0x80] sm:$0xff] (!%p165_p2)  }
   0xb   : > { %2144 = vmatpush3.bf16.msra.mxu1 (!%p165_p2), %v2162_v3  ;;  %1860 = vmatpush3.bf16.msra.mxu0 (!%p165_p2), %v2162_v3  ;;  %v2180_v21 = vld [vmem:[%s2719_s1 + $0xc8] sm:$0xff] (!%p165_p2)   ;;  %v2185_v24 = vld [vmem:[%s2719_s1 + $0xd0] sm:$0xff] (!%p165_p2)   ;;  %v2187_v28 = vld [vmem:[%s2719_s1 + $0xd8] sm:$0xff] (!%p165_p2)  }
   0xc   : > { %2137 = vmatprep.subr.bf16.mxu1 (!%p165_p2), %v2163_v4  ;;  %1861 = vmatprep.subr.bf16.mxu0 (!%p165_p2), %v2163_v4  ;;  %v2181_v22 = vld [vmem:[%s2719_s1 + $0x88] sm:$0xff] (!%p165_p2)   ;;  %v2186_v25 = vld [vmem:[%s2719_s1 + $0x90] sm:$0xff] (!%p165_p2)   ;;  %v2188_v31 = vld [vmem:[%s2719_s1 + $0x98] sm:$0xff] (!%p165_p2)  }
   0xd   : > { %s2724_s19 = smov (!%p192_p3, %s1702_s19), 63  ;;  %v2192_v33 = vld [vmem:[%s2719_s1 + $0xe0] sm:$0xff]   ;;  %v2194_v38 = vld [vmem:[%s2719_s1 + $0xe8] sm:$0xff]   ;;  %v2199_v41 = vld [vmem:[%s2719_s1 + $0xf0] sm:$0xff]  }
   0xe   : > { %s1856_s8 = sshll.u32 %s2724_s19, 4  ;;  %v2193_v36 = vld [vmem:[%s2719_s1 + $0xa0] sm:$0xff]   ;;  %v2195_v39 = vld [vmem:[%s2719_s1 + $0xa8] sm:$0xff]   ;;  %v2200_v44 = vld [vmem:[%s2719_s1 + $0xb0] sm:$0xff]   ;;  %s1706_s21 = sshll.u32 %s2724_s19, 3 }
   0xf   : > { %2145 = vmatpush3.bf16.msra.mxu1 %v2164_v5  ;;  %1862 = vmatpush3.bf16.msra.mxu0 %v2164_v5  ;;  %s2427_s13 = scalar_lea.vmem %s2718_s0, %s1856_s8  ;;  %v2201_v46 = vld [vmem:[%s2719_s1 + $0xf8] sm:$0xff]   ;;  %s2622_s24 = scalar_lea.vmem %s2722_s4, %s1706_s21 }
  0x10   : > { %2138 = vmatprep.subr.bf16.mxu1 %v2165_v6  ;;  %1863 = vmatprep.subr.bf16.mxu0 %v2165_v6  ;;  %v2177_v11 = vld [vmem:[%s2427_s13 + $0x184] ss:$16 sps:$4 sm:$0xff]   ;;  %v2175_v18 = vld [vmem:[%s2427_s13 + $0x180] ss:$16 sps:$4 sm:$0xff]   ;;  %v2208_v45 = vld [vmem:[%s2427_s13 + $0xc] ss:$16 sps:$4 sm:$0xff]  }
  0x11   : > { %973 = vmatprep.mubr.bf16.mxu1 %v2177_v11  ;;  %v2182_v20 = vld [vmem:[%s2427_s13 + $0x1a4] ss:$16 sps:$4 sm:$0xff]   ;;  %v2184_v23 = vld [vmem:[%s2427_s13 + $0x1a0] ss:$16 sps:$4 sm:$0xff]   ;;  %v2202_v47 = vld [vmem:[%s2719_s1 + $0xb8] sm:$0xff]  }
  0x12   : > { %v2203_v26 = vld [vmem:[%s2427_s13] ss:$16 sps:$4 sm:$0xff]   ;;  %v2205_v27 = vld [vmem:[%s2427_s13 + $0x4] ss:$16 sps:$4 sm:$0xff]   ;;  %v2206_v48 = vld [vmem:[%s2427_s13 + $0x8] ss:$16 sps:$4 sm:$0xff]  }
  0x13   : > { %2146 = vmatpush3.bf16.msra.mxu1 %v2166_v7  ;;  %1864 = vmatpush3.bf16.msra.mxu0 %v2166_v7  ;;  %v2189_v29 = vld [vmem:[%s2427_s13 + $0x1c4] ss:$16 sps:$4 sm:$0xff]   ;;  %v2191_v32 = vld [vmem:[%s2427_s13 + $0x1c0] ss:$16 sps:$4 sm:$0xff]   ;;  %v2211_v51 = vld [vmem:[%s2427_s13 + $0x2c] ss:$16 sps:$4 sm:$0xff]  }
  0x14   : > { %2139 = vmatprep.subr.bf16.mxu1 %v2167_v8  ;;  %1865 = vmatprep.subr.bf16.mxu0 %v2167_v8  ;;  %v2209_v30 = vld [vmem:[%s2427_s13 + $0x24] ss:$16 sps:$4 sm:$0xff]   ;;  %v2213_v34 = vld [vmem:[%s2427_s13 + $0x20] ss:$16 sps:$4 sm:$0xff]   ;;  %v2214_v53 = vld [vmem:[%s2427_s13 + $0x28] ss:$16 sps:$4 sm:$0xff]  }
  0x15   : > { %877 = vmatprep.mubr.bf16.mxu0 %v2205_v27  ;;  %v2215_v35 = vld [vmem:[%s2427_s13 + $0x44] ss:$16 sps:$4 sm:$0xff]   ;;  %v2198_v40 = vld [vmem:[%s2427_s13 + $0x1e0] ss:$16 sps:$4 sm:$0xff]   ;;  %v2217_v55 = vld [vmem:[%s2427_s13 + $0x4c] ss:$16 sps:$4 sm:$0xff]  }
  0x16   : > { %v2196_v37 = vld [vmem:[%s2427_s13 + $0x1e4] ss:$16 sps:$4 sm:$0xff]   ;;  %v2219_v42 = vld [vmem:[%s2427_s13 + $0x40] ss:$16 sps:$4 sm:$0xff]   ;;  %v2220_v57 = vld [vmem:[%s2427_s13 + $0x48] ss:$16 sps:$4 sm:$0xff]  }
  0x17   : > { %2147 = vmatpush3.bf16.msra.mxu1 %v2168_v9  ;;  %1866 = vmatpush3.bf16.msra.mxu0 %v2168_v9  ;;  %v2221_v43 = vld [vmem:[%s2427_s13 + $0x64] ss:$16 sps:$4 sm:$0xff]   ;;  %v2225_v49 = vld [vmem:[%s2427_s13 + $0x60] ss:$16 sps:$4 sm:$0xff]   ;;  %v2223_v59 = vld [vmem:[%s2427_s13 + $0x6c] ss:$16 sps:$4 sm:$0xff]  }
  0x18   : > { %2140 = vmatprep.subr.bf16.mxu1 %v2169_v10  ;;  %1867 = vmatprep.subr.bf16.mxu0 %v2169_v10  ;;  %v2227_v50 = vld [vmem:[%s2427_s13 + $0x84] ss:$16 sps:$4 sm:$0xff]   ;;  %v2231_v52 = vld [vmem:[%s2427_s13 + $0x80] ss:$16 sps:$4 sm:$0xff]   ;;  %v2226_v61 = vld [vmem:[%s2427_s13 + $0x68] ss:$16 sps:$4 sm:$0xff]  }
  0x19   : > { %v2233_v54 = vld [vmem:[%s2427_s13 + $0xa4] ss:$16 sps:$4 sm:$0xff]   ;;  %v2237_v56 = vld [vmem:[%s2427_s13 + $0xa0] ss:$16 sps:$4 sm:$0xff]   ;;  %v2229_v63 = vld [vmem:[%s2427_s13 + $0x8c] ss:$16 sps:$4 sm:$0xff]  }
  0x1a   : > { %v2239_v58 = vld [vmem:[%s2427_s13 + $0xc4] ss:$16 sps:$4 sm:$0xff]   ;;  %v2243_v60 = vld [vmem:[%s2427_s13 + $0xc0] ss:$16 sps:$4 sm:$0xff]   ;;  %v2232_v1 = vld [vmem:[%s2427_s13 + $0x88] ss:$16 sps:$4 sm:$0xff]  }
  0x1b   : > { %2148 = vmatpush3.bf16.msra.mxu1 %v2170_v12  ;;  %1868 = vmatpush3.bf16.msra.mxu0 %v2170_v12  ;;  %v2245_v62 = vld [vmem:[%s2427_s13 + $0xe4] ss:$16 sps:$4 sm:$0xff]   ;;  %v2249_v0 = vld [vmem:[%s2427_s13 + $0xe0] ss:$16 sps:$4 sm:$0xff]   ;;  %v2235_v3 = vld [vmem:[%s2427_s13 + $0xac] ss:$16 sps:$4 sm:$0xff]  }
  0x1c   : > { %2141 = vmatprep.subr.bf16.mxu1 %v2171_v13  ;;  %1869 = vmatprep.subr.bf16.mxu0 %v2171_v13  ;;  %v2251_v2 = vld [vmem:[%s2427_s13 + $0x104] ss:$16 sps:$4 sm:$0xff]   ;;  %v2255_v4 = vld [vmem:[%s2427_s13 + $0x100] ss:$16 sps:$4 sm:$0xff]   ;;  %v2238_v5 = vld [vmem:[%s2427_s13 + $0xa8] ss:$16 sps:$4 sm:$0xff]  }
  0x1d   : > { %v2257_v6 = vld [vmem:[%s2427_s13 + $0x124] ss:$16 sps:$4 sm:$0xff]   ;;  %v2241_v7 = vld [vmem:[%s2427_s13 + $0xcc] ss:$16 sps:$4 sm:$0xff]   ;;  %v2261_v8 = vld [vmem:[%s2427_s13 + $0x120] ss:$16 sps:$4 sm:$0xff]  }
  0x1e   : > { %v2244_v9 = vld [vmem:[%s2427_s13 + $0xc8] ss:$16 sps:$4 sm:$0xff]   ;;  %v2263_v10 = vld [vmem:[%s2427_s13 + $0x144] ss:$16 sps:$4 sm:$0xff]   ;;  %v2247_v11 = vld [vmem:[%s2427_s13 + $0xec] ss:$16 sps:$4 sm:$0xff]  }
  0x1f   : > { %2149 = vmatpush3.bf16.msra.mxu1 %v2172_v14  ;;  %1870 = vmatpush3.bf16.msra.mxu0 %v2172_v14  ;;  %v2267_v12 = vld [vmem:[%s2427_s13 + $0x140] ss:$16 sps:$4 sm:$0xff]   ;;  %v2250_v13 = vld [vmem:[%s2427_s13 + $0xe8] ss:$16 sps:$4 sm:$0xff]   ;;  %v2269_v14 = vld [vmem:[%s2427_s13 + $0x164] ss:$16 sps:$4 sm:$0xff]  }
  0x20   : > { %2142 = vmatprep.subr.bf16.mxu1 %v2173_v15  ;;  %1871 = vmatprep.subr.bf16.mxu0 %v2173_v15  ;;  %v2253_v15 = vld [vmem:[%s2427_s13 + $0x10c] ss:$16 sps:$4 sm:$0xff]  }
  0x21   : > { %v2278_v27 = vld [vmem:[%s2427_s13 + $0x1ac] ss:$16 sps:$4 sm:$0xff]  }
  0x23   : > { %2150 = vmatpush3.bf16.msra.mxu1 %v2174_v16  ;;  %1872 = vmatpush3.bf16.msra.mxu0 %v2174_v16  ;;  %v2273_v16 = vld [vmem:[%s2427_s13 + $0x160] ss:$16 sps:$4 sm:$0xff]  }
  0x24   : > { %1969 = vmatprep.subr.bf16.mxu1 %v2178_v17  ;;  %v2256_v17 = vld [vmem:[%s2427_s13 + $0x108] ss:$16 sps:$4 sm:$0xff]  }
  0x26   : > { %974 = vmatmul.mubr.bf16.vlgmr.msra.gmra.mrb[0].mxu1 %v2175_v18  ;;  %878 = vmatmul.mubr.bf16.vlgmr.msra.gmra.mrb[0].mxu0 %v2203_v26  ;;  %v2259_v18 = vld [vmem:[%s2427_s13 + $0x12c] ss:$16 sps:$4 sm:$0xff]   ;;  %v2277_v26 = vld [vmem:[%s2427_s13 + $0x188] ss:$16 sps:$4 sm:$0xff]  }
  0x27   : > { %1970 = vmatpush3.bf16.msra.mxu1 %v2179_v19  ;;  %981 = vmatprep.mubr.bf16.mxu1 %v2182_v20  ;;  %v2287_v19 = vld [vmem:[%s2720_s2] sm:$0xff]   ;;  %v2262_v20 = vld [vmem:[%s2427_s13 + $0x128] ss:$16 sps:$4 sm:$0xff]  }
  0x28   : > { %1971 = vmatprep.subr.bf16.mxu1 %v2180_v21  ;;  %885 = vmatprep.mubr.bf16.mxu0 %v2209_v30  ;;  %v2265_v21 = vld [vmem:[%s2427_s13 + $0x14c] ss:$16 sps:$4 sm:$0xff]  }
  0x29   : > { %2099 = vmatprep.subr.bf16.mxu0 %v2287_v19  ;;  %v2281_v30 = vld [vmem:[%s2427_s13 + $0x1cc] ss:$16 sps:$4 sm:$0xff]  }
  0x2a   : > { %2100 = vmatpush3.bf16.msra.mxu0 %v2287_v19 }
  0x2b   : > { %1972 = vmatpush3.bf16.msra.mxu1 %v2181_v22  ;;  %v2268_v22 = vld [vmem:[%s2427_s13 + $0x148] ss:$16 sps:$4 sm:$0xff]  }
  0x2c   : > { %1973 = vmatprep.subr.bf16.mxu1 %v2185_v24  ;;  %v2274_v24 = vld [vmem:[%s2427_s13 + $0x168] ss:$16 sps:$4 sm:$0xff]  }
  0x2e   : > { %982 = vmatmul.mubr.bf16.gmra.mrb[4].mxu1 %v2184_v23  ;;  %886 = vmatmul.mubr.bf16.gmra.mrb[4].mxu0 %v2213_v34  ;;  %v2271_v23 = vld [vmem:[%s2427_s13 + $0x16c] ss:$16 sps:$4 sm:$0xff]  }
  0x2f   : > { %1974 = vmatpush3.bf16.msra.mxu1 %v2186_v25  ;;  %989 = vmatprep.mubr.bf16.mxu1 %v2189_v29  ;;  %v2275_v25 = vld [vmem:[%s2427_s13 + $0x18c] ss:$16 sps:$4 sm:$0xff]   ;;  %v2280_v29 = vld [vmem:[%s2427_s13 + $0x1a8] ss:$16 sps:$4 sm:$0xff]  }
  0x30   : > { %1975 = vmatprep.subr.bf16.mxu1 %v2187_v28  ;;  %893 = vmatprep.mubr.bf16.mxu0 %v2215_v35  ;;  %v2288_v28 = vld [vmem:[%s2720_s2 + $0x8] sm:$0xff]  }
  0x31   : > { %2101 = vmatprep.subr.bf16.mxu0 %v2288_v28 }
  0x32   : > { %2102 = vmatpush3.bf16.msra.mxu0 %v2288_v28 }
  0x33   : > { %1976 = vmatpush3.bf16.msra.mxu1 %v2188_v31  ;;  %v2283_v31 = vld [vmem:[%s2427_s13 + $0x1c8] ss:$16 sps:$4 sm:$0xff]  }
  0x34   : > { %1977 = vmatprep.subr.bf16.mxu1 %v2192_v33  ;;  %v2286_v33 = vld [vmem:[%s2427_s13 + $0x1e8] ss:$16 sps:$4 sm:$0xff]  }
  0x36   : > { %990 = vmatmul.mubr.bf16.gmra.mrb[8].mxu1 %v2191_v32  ;;  %894 = vmatmul.mubr.bf16.gmra.mrb[8].mxu0 %v2219_v42  ;;  %v2284_v32 = vld [vmem:[%s2427_s13 + $0x1ec] ss:$16 sps:$4 sm:$0xff]  }
  0x37   : > { %1978 = vmatpush3.bf16.msra.mxu1 %v2193_v36  ;;  %997 = vmatprep.mubr.bf16.mxu1 %v2196_v37 }
  0x38   : > { %1979 = vmatprep.subr.bf16.mxu1 %v2194_v38  ;;  %901 = vmatprep.mubr.bf16.mxu0 %v2221_v43 }
  0x3b   : > { %1980 = vmatpush3.bf16.msra.mxu1 %v2195_v39 }
  0x3c   : > { %1981 = vmatprep.subr.bf16.mxu1 %v2199_v41 }
  0x3e   : > { %998 = vmatmul.mubr.bf16.gmra.mrb[12].mxu1 %v2198_v40  ;;  %902 = vmatmul.mubr.bf16.gmra.mrb[12].mxu0 %v2225_v49 }
  0x3f   : > { %1982 = vmatpush3.bf16.msra.mxu1 %v2200_v44  ;;  %1038 = vmatprep.mubr.bf16.mxu1 %v2208_v45 }
  0x40   : > { %1983 = vmatprep.subr.bf16.mxu1 %v2201_v46  ;;  %909 = vmatprep.mubr.bf16.mxu0 %v2227_v50 }
  0x43   : > { %1984 = vmatpush3.bf16.msra.mxu1 %v2202_v47 }
  0x46   : > { %1039 = vmatmul.mubr.bf16.vlgmr.msra.gmra.mrb[16].mxu1 %v2206_v48  ;;  %910 = vmatmul.mubr.bf16.gmra.mrb[16].mxu0 %v2231_v52 }
  0x47   : > { %1046 = vmatprep.mubr.bf16.mxu1 %v2211_v51  ;;  %917 = vmatprep.mubr.bf16.mxu0 %v2233_v54 }
  0x4e   : > { %1047 = vmatmul.mubr.bf16.gmra.mrb[20].mxu1 %v2214_v53  ;;  %918 = vmatmul.mubr.bf16.gmra.mrb[20].mxu0 %v2237_v56 }
  0x4f   : > { %1054 = vmatprep.mubr.bf16.mxu1 %v2217_v55  ;;  %925 = vmatprep.mubr.bf16.mxu0 %v2239_v58 }
  0x56   : > { %1055 = vmatmul.mubr.bf16.gmra.mrb[24].mxu1 %v2220_v57  ;;  %926 = vmatmul.mubr.bf16.gmra.mrb[24].mxu0 %v2243_v60 }
  0x57   : > { %1062 = vmatprep.mubr.bf16.mxu1 %v2223_v59  ;;  %933 = vmatprep.mubr.bf16.mxu0 %v2245_v62 }
  0x5e   : > { %1063 = vmatmul.mubr.bf16.gmra.mrb[28].mxu1 %v2226_v61  ;;  %934 = vmatmul.mubr.bf16.gmra.mrb[28].mxu0 %v2249_v0 }
  0x5f   : > { %1070 = vmatprep.mubr.bf16.mxu1 %v2229_v63  ;;  %941 = vmatprep.mubr.bf16.mxu0 %v2251_v2 }
  0x66   : > { %1071 = vmatmul.mubr.bf16.gmra.mrb[32].mxu1 %v2232_v1  ;;  %942 = vmatmul.mubr.bf16.gmra.mrb[32].mxu0 %v2255_v4 }
  0x67   : > { %1078 = vmatprep.mubr.bf16.mxu1 %v2235_v3  ;;  %949 = vmatprep.mubr.bf16.mxu0 %v2257_v6 }
  0x6e   : > { %1079 = vmatmul.mubr.bf16.gmra.mrb[36].mxu1 %v2238_v5  ;;  %950 = vmatmul.mubr.bf16.gmra.mrb[36].mxu0 %v2261_v8 }
  0x6f   : > { %1086 = vmatprep.mubr.bf16.mxu1 %v2241_v7  ;;  %957 = vmatprep.mubr.bf16.mxu0 %v2263_v10 }
  0x76   : > { %1087 = vmatmul.mubr.bf16.gmra.mrb[40].mxu1 %v2244_v9  ;;  %958 = vmatmul.mubr.bf16.gmra.mrb[40].mxu0 %v2267_v12 }
  0x77   : > { %1094 = vmatprep.mubr.bf16.mxu1 %v2247_v11  ;;  %965 = vmatprep.mubr.bf16.mxu0 %v2269_v14 }
  0x7e   : > { %1095 = vmatmul.mubr.bf16.gmra.mrb[44].mxu1 %v2250_v13  ;;  %966 = vmatmul.mubr.bf16.gmra.mrb[44].mxu0 %v2273_v16 }
  0x7f   : > { %1102 = vmatprep.mubr.bf16.mxu1 %v2253_v15 }
  0x86   : > { %1103 = vmatmul.mubr.bf16.gmra.mrb[48].mxu1 %v2256_v17 }
  0x87   : > { %1110 = vmatprep.mubr.bf16.mxu1 %v2259_v18 }
  0x8e   : > { %1111 = vmatmul.mubr.bf16.gmra.mrb[52].mxu1 %v2262_v20 }
  0x8f   : > { %1118 = vmatprep.mubr.bf16.mxu1 %v2265_v21 }
  0x96   : > { %1119 = vmatmul.mubr.bf16.gmra.mrb[56].mxu1 %v2268_v22 }
  0x97   : > { %1126 = vmatprep.mubr.bf16.mxu1 %v2271_v23 }
  0x9e   : > { %1127 = vmatmul.mubr.bf16.gmra.mrb[60].mxu1 %v2274_v24 }
  0x9f   : > { %1134 = vmatprep.mubr.bf16.mxu1 %v2275_v25 }
  0xa6   : > { %1135 = vmatmul.mubr.bf16.gmra.mrb[64].mxu1 %v2277_v26 }
  0xa7   : > { %1142 = vmatprep.mubr.bf16.mxu1 %v2278_v27 }
  0xae   : > { %1143 = vmatmul.mubr.bf16.gmra.mrb[68].mxu1 %v2280_v29 }
  0xaf   : > { %1150 = vmatprep.mubr.bf16.mxu1 %v2281_v30 }
  0xb6   : > { %1151 = vmatmul.mubr.bf16.gmra.mrb[72].mxu1 %v2283_v31 }
  0xb7   : > { %1158 = vmatprep.mubr.bf16.mxu1 %v2284_v32 }
  0xbe   : > { %1159 = vmatmul.mubr.bf16.gmra.mrb[76].mxu1 %v2286_v33 }
  0xf9   : > { %v1945_v34 = vpop.f32.mrb[0].mxu1  ;;  %v1873_v40 = vpop.f32.mrb[0].mxu0 }
  0xfa   : > { %v1946_v35 = vpop.f32.mrb[1].mxu1  ;;  %v1874_v42 = vpop.f32.mrb[1].mxu0 }
  0xfb   : > { %v2568_v36 = vadd.f32 %v1946_v35, %v1945_v34  ;;  %v1948_v37 = vpop.f32.mrb[2].mxu1  ;;  %v1875_v44 = vadd.f32 %v1874_v42, %v1873_v40  ;;  %v1876_v45 = vpop.f32.mrb[2].mxu0 }
  0xfc   : > { %v1949_v38 = vpop.f32.mrb[3].mxu1  ;;  %v1877_v48 = vpop.f32.mrb[3].mxu0 }
  0xfd   : > { %v2570_v39 = vadd.f32 %v1949_v38, %v1948_v37  ;;  %v1878_v50 = vadd.f32 %v1877_v48, %v1876_v45 }
 0x101   : > { %v1951_v41 = vpop.f32.mrb[4].mxu1  ;;  %v1879_v52 = vpop.f32.mrb[4].mxu0 }
 0x102   : > { %v1952_v43 = vpop.f32.mrb[5].mxu1  ;;  %v1880_v54 = vpop.f32.mrb[5].mxu0 }
 0x103   : > { %v2572_v46 = vadd.f32 %v1952_v43, %v1951_v41  ;;  %v1954_v47 = vpop.f32.mrb[6].mxu1  ;;  %v1881_v56 = vadd.f32 %v1880_v54, %v1879_v52  ;;  %v1882_v57 = vpop.f32.mrb[6].mxu0 }
 0x104   : > { %v1955_v49 = vpop.f32.mrb[7].mxu1  ;;  %v1883_v60 = vpop.f32.mrb[7].mxu0 }
 0x105   : > { %v2574_v51 = vadd.f32 %v1955_v49, %v1954_v47  ;;  %v1884_v62 = vadd.f32 %v1883_v60, %v1882_v57 }
 0x109   : > { %v1957_v53 = vpop.f32.mrb[8].mxu1  ;;  %v1885_v0 = vpop.f32.mrb[8].mxu0 }
 0x10a   : > { %v1958_v55 = vpop.f32.mrb[9].mxu1  ;;  %v1886_v2 = vpop.f32.mrb[9].mxu0 }
 0x10b   : > { %v2576_v58 = vadd.f32 %v1958_v55, %v1957_v53  ;;  %v1960_v59 = vpop.f32.mrb[10].mxu1  ;;  %v1887_v4 = vadd.f32 %v1886_v2, %v1885_v0  ;;  %v1888_v5 = vpop.f32.mrb[10].mxu0 }
 0x10c   : > { %v1961_v61 = vpop.f32.mrb[11].mxu1  ;;  %v1889_v8 = vpop.f32.mrb[11].mxu0 }
 0x10d   : > { %v2578_v63 = vadd.f32 %v1961_v61, %v1960_v59  ;;  %v1890_v10 = vadd.f32 %v1889_v8, %v1888_v5 }
 0x111   : > { %v1963_v1 = vpop.f32.mrb[12].mxu1  ;;  %v1891_v12 = vpop.f32.mrb[12].mxu0 }
 0x112   : > { %v1964_v3 = vpop.f32.mrb[13].mxu1  ;;  %v1892_v14 = vpop.f32.mrb[13].mxu0 }
 0x113   : > { %v2580_v6 = vadd.f32 %v1964_v3, %v1963_v1  ;;  %v1966_v7 = vpop.f32.mrb[14].mxu1  ;;  %v1893_v16 = vadd.f32 %v1892_v14, %v1891_v12  ;;  %v1894_v17 = vpop.f32.mrb[14].mxu0 }
 0x114   : > { %v1967_v9 = vpop.f32.mrb[15].mxu1  ;;  %v1895_v20 = vpop.f32.mrb[15].mxu0 }
 0x115   : > { %v2582_v11 = vadd.f32 %v1967_v9, %v1966_v7  ;;  %v1896_v22 = vadd.f32 %v1895_v20, %v1894_v17 }
 0x119   : > { %v1985_v13 = vpop.f32.mrb[16].mxu1  ;;  %v1897_v26 = vpop.f32.mrb[16].mxu0 }
 0x11a   : > { %v1986_v15 = vpop.f32.mrb[17].mxu1  ;;  %v1898_v29 = vpop.f32.mrb[17].mxu0 }
 0x11b   : > { %v1987_v18 = vadd.f32 %v1986_v15, %v1985_v13  ;;  %v1988_v19 = vpop.f32.mrb[18].mxu1  ;;  %v1899_v31 = vadd.f32 %v1898_v29, %v1897_v26  ;;  %v1900_v32 = vpop.f32.mrb[18].mxu0 }
 0x11c   : > { %v1989_v21 = vpop.f32.mrb[19].mxu1  ;;  %v1901_v35 = vpop.f32.mrb[19].mxu0 }
 0x11d   : > { %v1041_v23 = vadd.f32 %v1987_v18, %v1875_v44  ;;  %v1990_v24 = vadd.f32 %v1989_v21, %v1988_v19  ;;  %v1902_v38 = vadd.f32 %v1901_v35, %v1900_v32 }
 0x11f   : > { %v1044_v25 = vadd.f32 %v1990_v24, %v1878_v50 }
 0x121   : > { %v1167_v27 = vpack.c.bf16 %v1044_v25, %v1041_v23  ;;  %v1991_v28 = vpop.f32.mrb[20].mxu1  ;;  %v1903_v43 = vpop.f32.mrb[20].mxu0 }
 0x122   : > { %v1992_v30 = vpop.f32.mrb[21].mxu1  ;;  %v1904_v47 = vpop.f32.mrb[21].mxu0 }
 0x123   : > { %v1993_v33 = vadd.f32 %v1992_v30, %v1991_v28  ;;  %v1994_v34 = vpop.f32.mrb[22].mxu1  ;;  %2103 = vmatprep.mubr.msk.bf16.mxu0 %vm1206_vm0, %v1167_v27  ;;  %v1905_v49 = vadd.f32 %v1904_v47, %v1903_v43  ;;  %v1906_v50 = vpop.f32.mrb[22].mxu0 }
 0x124   : > { %v1995_v37 = vpop.f32.mrb[23].mxu1  ;;  %v1907_v54 = vpop.f32.mrb[23].mxu0 }
 0x125   : > { %v1049_v40 = vadd.f32 %v1993_v33, %v1881_v56  ;;  %v1996_v41 = vadd.f32 %v1995_v37, %v1994_v34  ;;  %v1908_v57 = vadd.f32 %v1907_v54, %v1906_v50 }
 0x127   : > { %v1052_v42 = vadd.f32 %v1996_v41, %v1884_v62 }
 0x129   : > { %v1168_v44 = vpack.c.bf16 %v1052_v42, %v1049_v40  ;;  %v1997_v45 = vpop.f32.mrb[24].mxu1  ;;  %v1909_v56 = vpop.f32.mrb[24].mxu0 }
 0x12a   : > { %v1998_v48 = vpop.f32.mrb[25].mxu1  ;;  %v1910_v1 = vpop.f32.mrb[25].mxu0 }
 0x12b   : > { %v1999_v52 = vadd.f32 %v1998_v48, %v1997_v45  ;;  %v2000_v53 = vpop.f32.mrb[26].mxu1  ;;  %2104 = vmatmul.mubr.msk.bf16.vlgmr.msra.gmra.mrb[48].mxu0 %vm1206_vm0, %v1168_v44  ;;  %v1911_v3 = vadd.f32 %v1910_v1, %v1909_v56  ;;  %v1912_v5 = vpop.f32.mrb[26].mxu0 }
 0x12c   : > { %v2001_v55 = vpop.f32.mrb[27].mxu1  ;;  %v1913_v9 = vpop.f32.mrb[27].mxu0 }
 0x12d   : > { %v1057_v59 = vadd.f32 %v1999_v52, %v1887_v4  ;;  %v2002_v60 = vadd.f32 %v2001_v55, %v2000_v53  ;;  %v1914_v13 = vadd.f32 %v1913_v9, %v1912_v5 }
 0x12f   : > { %v1060_v61 = vadd.f32 %v2002_v60, %v1890_v10 }
 0x131   : > { %v1169_v0 = vpack.c.bf16 %v1060_v61, %v1057_v59  ;;  %v2003_v62 = vpop.f32.mrb[28].mxu1  ;;  %v1915_v4 = vpop.f32.mrb[28].mxu0 }
 0x132   : > { %v2004_v2 = vpop.f32.mrb[29].mxu1  ;;  %v1916_v19 = vpop.f32.mrb[29].mxu0 }
 0x133   : > { %v2005_v7 = vadd.f32 %v2004_v2, %v2003_v62  ;;  %v2006_v8 = vpop.f32.mrb[30].mxu1  ;;  %2107 = vmatprep.mubr.msk.bf16.mxu0 %vm1206_vm0, %v1169_v0  ;;  %v1917_v21 = vadd.f32 %v1916_v19, %v1915_v4  ;;  %v1918_v23 = vpop.f32.mrb[30].mxu0 }
 0x134   : > { %v2007_v12 = vpop.f32.mrb[31].mxu1  ;;  %v1919_v26 = vpop.f32.mrb[31].mxu0 }
 0x135   : > { %v1065_v14 = vadd.f32 %v2005_v7, %v1893_v16  ;;  %v2008_v15 = vadd.f32 %v2007_v12, %v2006_v8  ;;  %v1920_v28 = vadd.f32 %v1919_v26, %v1918_v23 }
 0x137   : > { %v1068_v17 = vadd.f32 %v2008_v15, %v1896_v22 }
 0x139   : > { %v1170_v18 = vpack.c.bf16 %v1068_v17, %v1065_v14  ;;  %v2009_v10 = vpop.f32.mrb[32].mxu1  ;;  %v1921_v16 = vpop.f32.mrb[32].mxu0 }
 0x13a   : > { %v2010_v20 = vpop.f32.mrb[33].mxu1  ;;  %v1922_v34 = vpop.f32.mrb[33].mxu0 }
 0x13b   : > { %v2011_v24 = vadd.f32 %v2010_v20, %v2009_v10  ;;  %v2012_v25 = vpop.f32.mrb[34].mxu1  ;;  %2108 = vmatmul.mubr.msk.bf16.gmra.mrb[52].mxu0 %vm1206_vm0, %v1170_v18  ;;  %v1923_v37 = vadd.f32 %v1922_v34, %v1921_v16  ;;  %v1924_v40 = vpop.f32.mrb[34].mxu0 }
 0x13c   : > { %v2013_v27 = vpop.f32.mrb[35].mxu1  ;;  %v1925_v43 = vpop.f32.mrb[35].mxu0 }
 0x13d   : > { %v1073_v29 = vadd.f32 %v2011_v24, %v1899_v31  ;;  %v2014_v30 = vadd.f32 %v2013_v27, %v2012_v25  ;;  %v1926_v45 = vadd.f32 %v1925_v43, %v1924_v40 }
 0x13f   : > { %v1076_v32 = vadd.f32 %v2014_v30, %v1902_v38 }
 0x141   : > { %v1171_v33 = vpack.c.bf16 %v1076_v32, %v1073_v29  ;;  %v2015_v22 = vpop.f32.mrb[36].mxu1  ;;  %v1927_v31 = vpop.f32.mrb[36].mxu0 }
 0x142   : > { %v2016_v35 = vpop.f32.mrb[37].mxu1  ;;  %v1928_v53 = vpop.f32.mrb[37].mxu0 }
 0x143   : > { %v2017_v41 = vadd.f32 %v2016_v35, %v2015_v22  ;;  %v2018_v42 = vpop.f32.mrb[38].mxu1  ;;  %2111 = vmatprep.mubr.msk.bf16.mxu0 %vm1206_vm0, %v1171_v33  ;;  %v1929_v55 = vadd.f32 %v1928_v53, %v1927_v31  ;;  %v1930_v59 = vpop.f32.mrb[38].mxu0 }
 0x144   : > { %v2019_v44 = vpop.f32.mrb[39].mxu1  ;;  %v1931_v56 = vpop.f32.mrb[39].mxu0 }
 0x145   : > { %v1081_v47 = vadd.f32 %v2017_v41, %v1905_v49  ;;  %v2020_v48 = vadd.f32 %v2019_v44, %v2018_v42  ;;  %v1932_v62 = vadd.f32 %v1931_v56, %v1930_v59 }
 0x147   : > { %v1084_v50 = vadd.f32 %v2020_v48, %v1908_v57 }
 0x149   : > { %v1172_v52 = vpack.c.bf16 %v1084_v50, %v1081_v47  ;;  %v2021_v38 = vpop.f32.mrb[40].mxu1  ;;  %v1933_v49 = vpop.f32.mrb[40].mxu0 }
 0x14a   : > { %v2022_v54 = vpop.f32.mrb[41].mxu1  ;;  %v1934_v8 = vpop.f32.mrb[41].mxu0 }
 0x14b   : > { %v2023_v60 = vadd.f32 %v2022_v54, %v2021_v38  ;;  %v2024_v61 = vpop.f32.mrb[42].mxu1  ;;  %2112 = vmatmul.mubr.msk.bf16.gmra.mrb[56].mxu0 %vm1206_vm0, %v1172_v52  ;;  %v1935_v12 = vadd.f32 %v1934_v8, %v1933_v49  ;;  %v1936_v14 = vpop.f32.mrb[42].mxu0 }
 0x14c   : > { %v2025_v0 = vpop.f32.mrb[43].mxu1  ;;  %v1937_v4 = vpop.f32.mrb[43].mxu0 }
 0x14d   : > { %v1089_v1 = vadd.f32 %v2023_v60, %v1911_v3  ;;  %v2026_v2 = vadd.f32 %v2025_v0, %v2024_v61  ;;  %v1938_v10 = vadd.f32 %v1937_v4, %v1936_v14 }
 0x14f   : > { %v1092_v5 = vadd.f32 %v2026_v2, %v1914_v13 }
 0x151   : > { %v1173_v7 = vpack.c.bf16 %v1092_v5, %v1089_v1  ;;  %v2027_v57 = vpop.f32.mrb[44].mxu1  ;;  %v1939_v3 = vpop.f32.mrb[44].mxu0 }
 0x152   : > { %v2028_v9 = vpop.f32.mrb[45].mxu1  ;;  %v1940_v25 = vpop.f32.mrb[45].mxu0 }
 0x153   : > { %v2029_v15 = vadd.f32 %v2028_v9, %v2027_v57  ;;  %v2030_v17 = vpop.f32.mrb[46].mxu1  ;;  %2115 = vmatprep.mubr.msk.bf16.mxu0 %vm1206_vm0, %v1173_v7  ;;  %v1941_v27 = vadd.f32 %v1940_v25, %v1939_v3  ;;  %v1942_v29 = vpop.f32.mrb[46].mxu0 }
 0x154   : > { %v2031_v18 = vpop.f32.mrb[47].mxu1  ;;  %v1943_v16 = vpop.f32.mrb[47].mxu0 }
 0x155   : > { %v1097_v19 = vadd.f32 %v2029_v15, %v1917_v21  ;;  %v2032_v20 = vadd.f32 %v2031_v18, %v2030_v17  ;;  %v1944_v22 = vadd.f32 %v1943_v16, %v1942_v29 }
 0x157   : > { %v1100_v23 = vadd.f32 %v2032_v20, %v1920_v28 }
 0x159   : > { %v1174_v24 = vpack.c.bf16 %v1100_v23, %v1097_v19  ;;  %v2033_v13 = vpop.f32.mrb[48].mxu1 }
 0x15a   : > { %v2034_v26 = vpop.f32.mrb[49].mxu1 }
 0x15b   : > { %v2035_v30 = vadd.f32 %v2034_v26, %v2033_v13  ;;  %v2036_v32 = vpop.f32.mrb[50].mxu1  ;;  %2116 = vmatmul.mubr.msk.bf16.gmra.mrb[60].mxu0 %vm1206_vm0, %v1174_v24 }
 0x15c   : > { %v2037_v33 = vpop.f32.mrb[51].mxu1 }
 0x15d   : > { %v1105_v34 = vadd.f32 %v2035_v30, %v1923_v37  ;;  %v2038_v35 = vadd.f32 %v2037_v33, %v2036_v32 }
 0x15f   : > { %v1108_v40 = vadd.f32 %v2038_v35, %v1926_v45 }
 0x161   : > { %v1175_v21 = vpack.c.bf16 %v1108_v40, %v1105_v34  ;;  %v2039_v41 = vpop.f32.mrb[52].mxu1 }
 0x162   : > { %v2040_v28 = vpop.f32.mrb[53].mxu1 }
 0x163   : > { %v2041_v42 = vadd.f32 %v2040_v28, %v2039_v41  ;;  %v2042_v43 = vpop.f32.mrb[54].mxu1  ;;  %2119 = vmatprep.mubr.msk.bf16.mxu0 %vm1206_vm0, %v1175_v21 }
 0x164   : > { %v2043_v44 = vpop.f32.mrb[55].mxu1 }
 0x165   : > { %v1113_v47 = vadd.f32 %v2041_v42, %v1929_v55  ;;  %v2044_v48 = vadd.f32 %v2043_v44, %v2042_v43 }
 0x167   : > { %v1116_v50 = vadd.f32 %v2044_v48, %v1932_v62 }
 0x169   : > { %v1176_v31 = vpack.c.bf16 %v1116_v50, %v1113_v47  ;;  %v2045_v52 = vpop.f32.mrb[56].mxu1 }
 0x16a   : > { %v2046_v38 = vpop.f32.mrb[57].mxu1 }
 0x16b   : > { %v2047_v53 = vadd.f32 %v2046_v38, %v2045_v52  ;;  %v2048_v54 = vpop.f32.mrb[58].mxu1  ;;  %2120 = vmatmul.mubr.msk.bf16.gmra.mrb[64].mxu0 %vm1206_vm0, %v1176_v31 }
 0x16c   : > { %v2049_v37 = vpop.f32.mrb[59].mxu1 }
 0x16d   : > { %v1121_v45 = vadd.f32 %v2047_v53, %v1935_v12  ;;  %v2050_v59 = vadd.f32 %v2049_v37, %v2048_v54 }
 0x16f   : > { %v1124_v60 = vadd.f32 %v2050_v59, %v1938_v10 }
 0x171   : > { %v1177_v61 = vpack.c.bf16 %v1124_v60, %v1121_v45  ;;  %v2051_v56 = vpop.f32.mrb[60].mxu1 }
 0x172   : > { %v2052_v0 = vpop.f32.mrb[61].mxu1 }
 0x173   : > { %v2053_v1 = vadd.f32 %v2052_v0, %v2051_v56  ;;  %v2054_v2 = vpop.f32.mrb[62].mxu1  ;;  %2123 = vmatprep.mubr.msk.bf16.mxu0 %vm1206_vm0, %v1177_v61 }
 0x174   : > { %v2055_v55 = vpop.f32.mrb[63].mxu1 }
 0x175   : > { %v1129_v62 = vadd.f32 %v2053_v1, %v1941_v27  ;;  %v2056_v5 = vadd.f32 %v2055_v55, %v2054_v2 }
 0x177   : > { %v1132_v49 = vadd.f32 %v2056_v5, %v1944_v22 }
 0x179   : > { %v1178_v7 = vpack.c.bf16 %v1132_v49, %v1129_v62  ;;  %v2057_v57 = vpop.f32.mrb[64].mxu1 }
 0x17a   : > { %v2058_v8 = vpop.f32.mrb[65].mxu1 }
 0x17b   : > { %v2059_v9 = vadd.f32 %v2058_v8, %v2057_v57  ;;  %v2060_v14 = vpop.f32.mrb[66].mxu1  ;;  %2124 = vmatmul.mubr.msk.bf16.gmra.mrb[68].mxu0 %vm1206_vm0, %v1178_v7 }
 0x17c   : > { %v2061_v12 = vpop.f32.mrb[67].mxu1 }
 0x17d   : > { %v1137_v15 = vadd.f32 %v2059_v9, %v2568_v36  ;;  %v2062_v17 = vadd.f32 %v2061_v12, %v2060_v14 }
 0x17f   : > { %v1140_v4 = vadd.f32 %v2062_v17, %v2570_v39 }
 0x181   : > { %v1179_v18 = vpack.c.bf16 %v1140_v4, %v1137_v15  ;;  %v2063_v10 = vpop.f32.mrb[68].mxu1 }
 0x182   : > { %v2064_v19 = vpop.f32.mrb[69].mxu1 }
 0x183   : > { %v2065_v20 = vadd.f32 %v2064_v19, %v2063_v10  ;;  %v2066_v23 = vpop.f32.mrb[70].mxu1  ;;  %2127 = vmatprep.mubr.msk.bf16.mxu0 %vm1206_vm0, %v1179_v18 }
 0x184   : > { %v2067_v3 = vpop.f32.mrb[71].mxu1 }
 0x185   : > { %v1145_v24 = vadd.f32 %v2065_v20, %v2572_v46  ;;  %v2068_v13 = vadd.f32 %v2067_v3, %v2066_v23 }
 0x187   : > { %v1148_v25 = vadd.f32 %v2068_v13, %v2574_v51 }
 0x189   : > { %v1180_v26 = vpack.c.bf16 %v1148_v25, %v1145_v24  ;;  %v2069_v27 = vpop.f32.mrb[72].mxu1 }
 0x18a   : > { %v2070_v29 = vpop.f32.mrb[73].mxu1 }
 0x18b   : > { %v2071_v36 = vadd.f32 %v2070_v29, %v2069_v27  ;;  %v2072_v30 = vpop.f32.mrb[74].mxu1  ;;  %2128 = vmatmul.mubr.msk.bf16.gmra.mrb[72].mxu0 %vm1206_vm0, %v1180_v26 }
 0x18c   : > { %v2073_v39 = vpop.f32.mrb[75].mxu1 }
 0x18d   : > { %v1153_v32 = vadd.f32 %v2071_v36, %v2576_v58  ;;  %v2074_v16 = vadd.f32 %v2073_v39, %v2072_v30  ;;  %v2611_v58 = vld [vmem:[%s2721_s3] ss:$0 sm:$0xff] }
 0x18f   : > { %v1156_v33 = vadd.f32 %v2074_v16, %v2578_v63 }
 0x191   : > { %v1181_v22 = vpack.c.bf16 %v1156_v33, %v1153_v32  ;;  %v2075_v34 = vpop.f32.mrb[76].mxu1 }
 0x192   : > { %v2076_v35 = vpop.f32.mrb[77].mxu1 }
 0x193   : > { %v2077_v46 = vadd.f32 %v2076_v35, %v2075_v34  ;;  %v2078_v40 = vpop.f32.mrb[78].mxu1  ;;  %2131 = vmatprep.mubr.msk.bf16.mxu0 %vm1206_vm0, %v1181_v22 }
 0x194   : > { %v2079_v51 = vpop.f32.mrb[79].mxu1 }
 0x195   : > { %v1161_v21 = vadd.f32 %v2077_v46, %v2580_v6  ;;  %v2080_v41 = vadd.f32 %v2079_v51, %v2078_v40 }
 0x197   : > { %v1164_v28 = vadd.f32 %v2080_v41, %v2582_v11 }
 0x199   : > { %v1182_v42 = vpack.c.bf16 %v1164_v28, %v1161_v21 }
 0x19b   : > { %2132 = vmatmul.mubr.msk.bf16.gmra.mrb[76].mxu0 %vm1206_vm0, %v1182_v42 }
 0x1fe   : > { %v2105_v63 = vpop.f32.mrb[48].mxu0 }
 0x1ff   : > { %v1298_v43 = vadd.f32 %v2105_v63, %v2611_v58  ;;  %v1289_v44 = vpop.f32.mrb[49].mxu0 }
 0x200   : > { %v1290_v47 = vadd.f32 %v2611_v58, %v1289_v44  ;;  %v2106_v48 = vpop.f32.mrb[50].mxu0 }
 0x201   : > { %v1450_v6 = vmin.f32 %v1298_v43, 0.0  ;;  %v1301_v50 = vadd.f32 %v2106_v48, %v2611_v58  ;;  %v1292_v11 = vpop.f32.mrb[51].mxu0  ;;  %vm1418_vm1 = vcmp.gt.f32.partialorder %v1298_v43, 0.0 }
 0x202   : > { %v1448_v31 = vmin.f32 %v1290_v47, 0.0  ;;  %v1293_v52 = vadd.f32 %v2611_v58, %v1292_v11  ;;  %vm1416_vm3 = vcmp.gt.f32.partialorder %v1290_v47, 0.0 }
 0x203   : > { %v1484_v38 = vmul.f32 1.442695, %v1450_v6  ;;  %v1451_v53 = vmin.f32 %v1301_v50, 0.0  ;;  %vm1419_vm4 = vcmp.gt.f32.partialorder %v1301_v50, 0.0 }
 0x204   : > { %v1480_v54 = vmul.f32 1.442695, %v1448_v31  ;;  %v1449_v37 = vmin.f32 %v1293_v52, 0.0  ;;  %vm1417_vm5 = vcmp.gt.f32.partialorder %v1293_v52, 0.0 }
 0x205   : > { %2289 = vpow2.f32 %v1484_v38  ;;  %v1486_v45 = vmul.f32 1.442695, %v1451_v53 }
 0x206   : > { %2291 = vpow2.f32 %v1480_v54  ;;  %v1482_v59 = vmul.f32 1.442695, %v1449_v37 }
 0x207   : > { %2293 = vpow2.f32 %v1486_v45 }
 0x208   : > { %2295 = vpow2.f32 %v1482_v59 }
 0x20e   : > { %v2109_v60 = vpop.f32.mrb[52].mxu0 }
 0x20f   : > { %v2290_v61 = vpop.eup %2289  ;;  %v1314_v56 = vadd.f32 %v2109_v60, %v2611_v58  ;;  %v1305_v0 = vpop.f32.mrb[53].mxu0 }
 0x210   : > { %v2292_v1 = vpop.eup %2291  ;;  %v1824_v2 = vadd.f32 -1.0, %v2290_v61  ;;  %v1306_v55 = vadd.f32 %v2611_v58, %v1305_v0  ;;  %v2110_v62 = vpop.f32.mrb[54].mxu0 }
 0x211   : > { %v2294_v5 = vpop.eup %2293  ;;  %v1822_v49 = vadd.f32 -1.0, %v2292_v1  ;;  %v1454_v7 = vmin.f32 %v1314_v56, 0.0  ;;  %v1317_v57 = vadd.f32 %v2110_v62, %v2611_v58  ;;  %v1308_v8 = vpop.f32.mrb[55].mxu0  ;;  %vm1422_vm6 = vcmp.gt.f32.partialorder %v1314_v56, 0.0 }
 0x212   : > { %v2296_v9 = vpop.eup %2295  ;;  %v1578_v14 = vsel %vm1418_vm1, %v1298_v43, %v1824_v2  ;;  %v1825_v12 = vadd.f32 -1.0, %v2294_v5  ;;  %v1452_v15 = vmin.f32 %v1306_v55, 0.0  ;;  %v1309_v23 = vadd.f32 %v2611_v58, %v1308_v8 }
 0x213   : > { %1611 = vst.msk [vmem:[%s2622_s24 + $0x10] sm:$0xff] %vm1608_vm2, %v1578_v14  ;;  %v1576_v17 = vsel %vm1416_vm3, %v1290_v47, %v1822_v49  ;;  %v1823_v4 = vadd.f32 -1.0, %v2296_v9  ;;  %v1492_v18 = vmul.f32 1.442695, %v1454_v7  ;;  %v1455_v20 = vmin.f32 %v1317_v57, 0.0 }
 0x214   : > { %1609 = vst.msk [vmem:[%s2622_s24] sm:$0xff] %vm1608_vm2, %v1576_v17  ;;  %v1579_v10 = vsel %vm1419_vm4, %v1301_v50, %v1825_v12  ;;  %v1488_v19 = vmul.f32 1.442695, %v1452_v15  ;;  %v1453_v13 = vmin.f32 %v1309_v23, 0.0  ;;  %vm1420_vm7 = vcmp.gt.f32.partialorder %v1306_v55, 0.0 }
 0x215   : > { %1612 = vst.msk [vmem:[%s2622_s24 + $0x18] sm:$0xff] %vm1608_vm2, %v1579_v10  ;;  %v1577_v3 = vsel %vm1417_vm5, %v1293_v52, %v1823_v4  ;;  %2297 = vpow2.f32 %v1492_v18  ;;  %v1494_v24 = vmul.f32 1.442695, %v1455_v20  ;;  %vm1423_vm8 = vcmp.gt.f32.partialorder %v1317_v57, 0.0 }
 0x216   : > { %1610 = vst.msk [vmem:[%s2622_s24 + $0x8] sm:$0xff] %vm1608_vm2, %v1577_v3  ;;  %2299 = vpow2.f32 %v1488_v19  ;;  %v1490_v25 = vmul.f32 1.442695, %v1453_v13  ;;  %vm1421_vm9 = vcmp.gt.f32.partialorder %v1309_v23, 0.0 }
 0x217   : > { %2301 = vpow2.f32 %v1494_v24 }
 0x218   : > { %2303 = vpow2.f32 %v1490_v25 }
 0x21e   : > { %v2113_v26 = vpop.f32.mrb[56].mxu0 }
 0x21f   : > { %v2298_v27 = vpop.eup %2297  ;;  %v1330_v29 = vadd.f32 %v2113_v26, %v2611_v58  ;;  %v1321_v36 = vpop.f32.mrb[57].mxu0 }
 0x220   : > { %v2300_v30 = vpop.eup %2299  ;;  %v1828_v39 = vadd.f32 -1.0, %v2298_v27  ;;  %v1322_v32 = vadd.f32 %v2611_v58, %v1321_v36  ;;  %v2114_v16 = vpop.f32.mrb[58].mxu0 }
 0x221   : > { %v1826_v33 = vadd.f32 -1.0, %v2300_v30  ;;  %v1458_v22 = vmin.f32 %v1330_v29, 0.0  ;;  %v1333_v34 = vadd.f32 %v2114_v16, %v2611_v58  ;;  %v1324_v35 = vpop.f32.mrb[59].mxu0  ;;  %v2302_v46 = vpop.eup %2301  ;;  %vm1426_vm10 = vcmp.gt.f32.partialorder %v1330_v29, 0.0 }
 0x222   : > { %v1582_v40 = vsel %vm1422_vm6, %v1314_v56, %v1828_v39  ;;  %v1456_v51 = vmin.f32 %v1322_v32, 0.0  ;;  %v1325_v21 = vadd.f32 %v2611_v58, %v1324_v35  ;;  %v1829_v28 = vadd.f32 -1.0, %v2302_v46  ;;  %v2304_v63 = vpop.eup %2303 }
 0x223   : > { %1615 = vst.msk [vmem:[%s2622_s24 + $0x30] sm:$0xff] %vm1608_vm2, %v1582_v40  ;;  %v1580_v41 = vsel %vm1420_vm7, %v1306_v55, %v1826_v33  ;;  %v1500_v42 = vmul.f32 1.442695, %v1458_v22  ;;  %v1459_v44 = vmin.f32 %v1333_v34, 0.0  ;;  %v1827_v6 = vadd.f32 -1.0, %v2304_v63 }
 0x224   : > { %1613 = vst.msk [vmem:[%s2622_s24 + $0x20] sm:$0xff] %vm1608_vm2, %v1580_v41  ;;  %v1496_v43 = vmul.f32 1.442695, %v1456_v51  ;;  %v1457_v47 = vmin.f32 %v1325_v21, 0.0  ;;  %v1583_v48 = vsel %vm1423_vm8, %v1317_v57, %v1829_v28  ;;  %vm1424_vm11 = vcmp.gt.f32.partialorder %v1322_v32, 0.0 }
 0x225   : > { %2305 = vpow2.f32 %v1500_v42  ;;  %1616 = vst.msk [vmem:[%s2622_s24 + $0x38] sm:$0xff] %vm1608_vm2, %v1583_v48  ;;  %v1502_v50 = vmul.f32 1.442695, %v1459_v44  ;;  %v1581_v31 = vsel %vm1421_vm9, %v1309_v23, %v1827_v6  ;;  %vm1427_vm12 = vcmp.gt.f32.partialorder %v1333_v34, 0.0 }
 0x226   : > { %2307 = vpow2.f32 %v1496_v43  ;;  %v1498_v11 = vmul.f32 1.442695, %v1457_v47  ;;  %1614 = vst.msk [vmem:[%s2622_s24 + $0x28] sm:$0xff] %vm1608_vm2, %v1581_v31  ;;  %vm1425_vm13 = vcmp.gt.f32.partialorder %v1325_v21, 0.0 }
 0x227   : > { %2309 = vpow2.f32 %v1502_v50 }
 0x228   : > { %2311 = vpow2.f32 %v1498_v11 }
 0x22e   : > { %v2117_v52 = vpop.f32.mrb[60].mxu0 }
 0x22f   : > { %v2306_v38 = vpop.eup %2305  ;;  %v1346_v53 = vadd.f32 %v2117_v52, %v2611_v58  ;;  %v1337_v54 = vpop.f32.mrb[61].mxu0 }
 0x230   : > { %v2308_v37 = vpop.eup %2307  ;;  %v1832_v45 = vadd.f32 -1.0, %v2306_v38  ;;  %v1338_v59 = vadd.f32 %v2611_v58, %v1337_v54  ;;  %v2118_v60 = vpop.f32.mrb[62].mxu0 }
 0x231   : > { %v1830_v61 = vadd.f32 -1.0, %v2308_v37  ;;  %v1462_v56 = vmin.f32 %v1346_v53, 0.0  ;;  %v1349_v0 = vadd.f32 %v2118_v60, %v2611_v58  ;;  %v1340_v1 = vpop.f32.mrb[63].mxu0  ;;  %v2310_v2 = vpop.eup %2309  ;;  %vm1430_vm14 = vcmp.gt.f32.partialorder %v1346_v53, 0.0 }
 0x232   : > { %v1586_v55 = vsel %vm1426_vm10, %v1330_v29, %v1832_v45  ;;  %v1460_v62 = vmin.f32 %v1338_v59, 0.0  ;;  %v1341_v5 = vadd.f32 %v2611_v58, %v1340_v1  ;;  %v2312_v49 = vpop.eup %2311  ;;  %v1833_v57 = vadd.f32 -1.0, %v2310_v2 }
 0x233   : > { %1619 = vst.msk [vmem:[%s2622_s24 + $0x50] sm:$0xff] %vm1608_vm2, %v1586_v55  ;;  %v1584_v7 = vsel %vm1424_vm11, %v1322_v32, %v1830_v61  ;;  %v1508_v8 = vmul.f32 1.442695, %v1462_v56  ;;  %v1831_v9 = vadd.f32 -1.0, %v2312_v49  ;;  %v1463_v12 = vmin.f32 %v1349_v0, 0.0 }
 0x234   : > { %1617 = vst.msk [vmem:[%s2622_s24 + $0x40] sm:$0xff] %vm1608_vm2, %v1584_v7  ;;  %v1504_v14 = vmul.f32 1.442695, %v1460_v62  ;;  %v1587_v15 = vsel %vm1427_vm12, %v1333_v34, %v1833_v57  ;;  %v1461_v17 = vmin.f32 %v1341_v5, 0.0  ;;  %vm1428_vm15 = vcmp.gt.f32.partialorder %v1338_v59, 0.0 }
 0x235   : > { %2313 = vpow2.f32 %v1508_v8  ;;  %1620 = vst.msk [vmem:[%s2622_s24 + $0x58] sm:$0xff] %vm1608_vm2, %v1587_v15  ;;  %v1585_v4 = vsel %vm1425_vm13, %v1325_v21, %v1831_v9  ;;  %v1510_v18 = vmul.f32 1.442695, %v1463_v12  ;;  %vm1431_vm0 = vcmp.gt.f32.partialorder %v1349_v0, 0.0 }
 0x236   : > { %2315 = vpow2.f32 %v1504_v14  ;;  %1618 = vst.msk [vmem:[%s2622_s24 + $0x48] sm:$0xff] %vm1608_vm2, %v1585_v4  ;;  %v1506_v10 = vmul.f32 1.442695, %v1461_v17  ;;  %vm1429_vm1 = vcmp.gt.f32.partialorder %v1341_v5, 0.0 }
 0x237   : > { %2317 = vpow2.f32 %v1510_v18 }
 0x238   : > { %2319 = vpow2.f32 %v1506_v10 }
 0x23e   : > { %v2121_v19 = vpop.f32.mrb[64].mxu0 }
 0x23f   : > { %v2314_v20 = vpop.eup %2313  ;;  %v1362_v23 = vadd.f32 %v2121_v19, %v2611_v58  ;;  %v1353_v3 = vpop.f32.mrb[65].mxu0 }
 0x240   : > { %v2316_v24 = vpop.eup %2315  ;;  %v1836_v13 = vadd.f32 -1.0, %v2314_v20  ;;  %v1354_v25 = vadd.f32 %v2611_v58, %v1353_v3  ;;  %v2122_v26 = vpop.f32.mrb[66].mxu0 }
 0x241   : > { %v1834_v27 = vadd.f32 -1.0, %v2316_v24  ;;  %v1466_v29 = vmin.f32 %v1362_v23, 0.0  ;;  %v1365_v36 = vadd.f32 %v2122_v26, %v2611_v58  ;;  %v1356_v30 = vpop.f32.mrb[67].mxu0  ;;  %v2318_v39 = vpop.eup %2317  ;;  %vm1434_vm3 = vcmp.gt.f32.partialorder %v1362_v23, 0.0 }
 0x242   : > { %v1590_v32 = vsel %vm1430_vm14, %v1346_v53, %v1836_v13  ;;  %v1464_v16 = vmin.f32 %v1354_v25, 0.0  ;;  %v1357_v33 = vadd.f32 %v2611_v58, %v1356_v30  ;;  %v2320_v22 = vpop.eup %2319  ;;  %v1837_v35 = vadd.f32 -1.0, %v2318_v39 }
 0x243   : > { %1623 = vst.msk [vmem:[%s2622_s24 + $0x70] sm:$0xff] %vm1608_vm2, %v1590_v32  ;;  %v1588_v34 = vsel %vm1428_vm15, %v1338_v59, %v1834_v27  ;;  %v1516_v46 = vmul.f32 1.442695, %v1466_v29  ;;  %v1835_v40 = vadd.f32 -1.0, %v2320_v22  ;;  %v1467_v21 = vmin.f32 %v1365_v36, 0.0 }
 0x244   : > { %1621 = vst.msk [vmem:[%s2622_s24 + $0x60] sm:$0xff] %vm1608_vm2, %v1588_v34  ;;  %v1512_v51 = vmul.f32 1.442695, %v1464_v16  ;;  %v1591_v41 = vsel %vm1431_vm0, %v1349_v0, %v1837_v35  ;;  %v1465_v28 = vmin.f32 %v1357_v33, 0.0  ;;  %vm1432_vm4 = vcmp.gt.f32.partialorder %v1354_v25, 0.0 }
 0x245   : > { %2321 = vpow2.f32 %v1516_v46  ;;  %1624 = vst.msk [vmem:[%s2622_s24 + $0x78] sm:$0xff] %vm1608_vm2, %v1591_v41  ;;  %v1589_v42 = vsel %vm1429_vm1, %v1341_v5, %v1835_v40  ;;  %v1518_v63 = vmul.f32 1.442695, %v1467_v21  ;;  %vm1435_vm5 = vcmp.gt.f32.partialorder %v1365_v36, 0.0 }
 0x246   : > { %2323 = vpow2.f32 %v1512_v51  ;;  %1622 = vst.msk [vmem:[%s2622_s24 + $0x68] sm:$0xff] %vm1608_vm2, %v1589_v42  ;;  %v1514_v43 = vmul.f32 1.442695, %v1465_v28  ;;  %vm1433_vm6 = vcmp.gt.f32.partialorder %v1357_v33, 0.0 }
 0x247   : > { %2325 = vpow2.f32 %v1518_v63 }
 0x248   : > { %2327 = vpow2.f32 %v1514_v43 }
 0x24e   : > { %v2125_v44 = vpop.f32.mrb[68].mxu0 }
 0x24f   : > { %v2322_v47 = vpop.eup %2321  ;;  %v1378_v48 = vadd.f32 %v2125_v44, %v2611_v58  ;;  %v1369_v6 = vpop.f32.mrb[69].mxu0 }
 0x250   : > { %v2324_v50 = vpop.eup %2323  ;;  %v1840_v11 = vadd.f32 -1.0, %v2322_v47  ;;  %v1370_v31 = vadd.f32 %v2611_v58, %v1369_v6  ;;  %v2126_v52 = vpop.f32.mrb[70].mxu0 }
 0x251   : > { %v1838_v38 = vadd.f32 -1.0, %v2324_v50  ;;  %v1470_v53 = vmin.f32 %v1378_v48, 0.0  ;;  %v1381_v54 = vadd.f32 %v2126_v52, %v2611_v58  ;;  %v1372_v37 = vpop.f32.mrb[71].mxu0  ;;  %v2326_v45 = vpop.eup %2325  ;;  %vm1438_vm7 = vcmp.gt.f32.partialorder %v1378_v48, 0.0 }
 0x252   : > { %v1594_v59 = vsel %vm1434_vm3, %v1362_v23, %v1840_v11  ;;  %v1468_v60 = vmin.f32 %v1370_v31, 0.0  ;;  %v1373_v61 = vadd.f32 %v2611_v58, %v1372_v37  ;;  %v2328_v56 = vpop.eup %2327  ;;  %v1841_v1 = vadd.f32 -1.0, %v2326_v45 }
 0x253   : > { %1627 = vst.msk [vmem:[%s2622_s24 + $0x90] sm:$0xff] %vm1608_vm2, %v1594_v59  ;;  %v1592_v0 = vsel %vm1432_vm4, %v1354_v25, %v1838_v38  ;;  %v1524_v2 = vmul.f32 1.442695, %v1470_v53  ;;  %v1839_v55 = vadd.f32 -1.0, %v2328_v56  ;;  %v1471_v5 = vmin.f32 %v1381_v54, 0.0 }
 0x254   : > { %1625 = vst.msk [vmem:[%s2622_s24 + $0x80] sm:$0xff] %vm1608_vm2, %v1592_v0  ;;  %v1520_v62 = vmul.f32 1.442695, %v1468_v60  ;;  %v1595_v49 = vsel %vm1435_vm5, %v1365_v36, %v1841_v1  ;;  %v1469_v7 = vmin.f32 %v1373_v61, 0.0  ;;  %vm1436_vm8 = vcmp.gt.f32.partialorder %v1370_v31, 0.0 }
 0x255   : > { %2329 = vpow2.f32 %v1524_v2  ;;  %1628 = vst.msk [vmem:[%s2622_s24 + $0x98] sm:$0xff] %vm1608_vm2, %v1595_v49  ;;  %v1593_v57 = vsel %vm1433_vm6, %v1357_v33, %v1839_v55  ;;  %v1526_v8 = vmul.f32 1.442695, %v1471_v5  ;;  %vm1439_vm9 = vcmp.gt.f32.partialorder %v1381_v54, 0.0 }
 0x256   : > { %2331 = vpow2.f32 %v1520_v62  ;;  %1626 = vst.msk [vmem:[%s2622_s24 + $0x88] sm:$0xff] %vm1608_vm2, %v1593_v57  ;;  %v1522_v9 = vmul.f32 1.442695, %v1469_v7  ;;  %vm1437_vm10 = vcmp.gt.f32.partialorder %v1373_v61, 0.0 }
 0x257   : > { %2333 = vpow2.f32 %v1526_v8 }
 0x258   : > { %2335 = vpow2.f32 %v1522_v9 }
 0x25e   : > { %v2129_v14 = vpop.f32.mrb[72].mxu0 }
 0x25f   : > { %v2330_v12 = vpop.eup %2329  ;;  %v1394_v15 = vadd.f32 %v2129_v14, %v2611_v58  ;;  %v1385_v17 = vpop.f32.mrb[73].mxu0 }
 0x260   : > { %v2332_v4 = vpop.eup %2331  ;;  %v1844_v18 = vadd.f32 -1.0, %v2330_v12  ;;  %v1386_v10 = vadd.f32 %v2611_v58, %v1385_v17  ;;  %v2130_v19 = vpop.f32.mrb[74].mxu0 }
 0x261   : > { %v1842_v20 = vadd.f32 -1.0, %v2332_v4  ;;  %v1474_v23 = vmin.f32 %v1394_v15, 0.0  ;;  %v1397_v3 = vadd.f32 %v2130_v19, %v2611_v58  ;;  %v1388_v24 = vpop.f32.mrb[75].mxu0  ;;  %v2334_v13 = vpop.eup %2333  ;;  %vm1442_vm11 = vcmp.gt.f32.partialorder %v1394_v15, 0.0 }
 0x262   : > { %v1598_v25 = vsel %vm1438_vm7, %v1378_v48, %v1844_v18  ;;  %v1472_v26 = vmin.f32 %v1386_v10, 0.0  ;;  %v1389_v27 = vadd.f32 %v2611_v58, %v1388_v24  ;;  %v2336_v29 = vpop.eup %2335  ;;  %v1845_v30 = vadd.f32 -1.0, %v2334_v13 }
 0x263   : > { %1631 = vst.msk [vmem:[%s2622_s24 + $0xb0] sm:$0xff] %vm1608_vm2, %v1598_v25  ;;  %v1596_v36 = vsel %vm1436_vm8, %v1370_v31, %v1842_v20  ;;  %v1532_v39 = vmul.f32 1.442695, %v1474_v23  ;;  %v1843_v32 = vadd.f32 -1.0, %v2336_v29  ;;  %v1475_v33 = vmin.f32 %v1397_v3, 0.0 }
 0x264   : > { %1629 = vst.msk [vmem:[%s2622_s24 + $0xa0] sm:$0xff] %vm1608_vm2, %v1596_v36  ;;  %v1528_v16 = vmul.f32 1.442695, %v1472_v26  ;;  %v1599_v22 = vsel %vm1439_vm9, %v1381_v54, %v1845_v30  ;;  %v1473_v34 = vmin.f32 %v1389_v27, 0.0  ;;  %vm1440_vm12 = vcmp.gt.f32.partialorder %v1386_v10, 0.0 }
 0x265   : > { %2337 = vpow2.f32 %v1532_v39  ;;  %1632 = vst.msk [vmem:[%s2622_s24 + $0xb8] sm:$0xff] %vm1608_vm2, %v1599_v22  ;;  %v1597_v35 = vsel %vm1437_vm10, %v1373_v61, %v1843_v32  ;;  %v1534_v46 = vmul.f32 1.442695, %v1475_v33  ;;  %vm1443_vm13 = vcmp.gt.f32.partialorder %v1397_v3, 0.0 }
 0x266   : > { %2339 = vpow2.f32 %v1528_v16  ;;  %1630 = vst.msk [vmem:[%s2622_s24 + $0xa8] sm:$0xff] %vm1608_vm2, %v1597_v35  ;;  %v1530_v40 = vmul.f32 1.442695, %v1473_v34  ;;  %vm1441_vm14 = vcmp.gt.f32.partialorder %v1389_v27, 0.0 }
 0x267   : > { %2341 = vpow2.f32 %v1534_v46 }
 0x268   : > { %2343 = vpow2.f32 %v1530_v40 }
 0x26e   : > { %v2133_v51 = vpop.f32.mrb[76].mxu0 }
 0x26f   : > { %v2338_v21 = vpop.eup %2337  ;;  %v1410_v41 = vadd.f32 %v2133_v51, %v2611_v58  ;;  %v1401_v28 = vpop.f32.mrb[77].mxu0 }
 0x270   : > { %v2340_v42 = vpop.eup %2339  ;;  %v1848_v63 = vadd.f32 -1.0, %v2338_v21  ;;  %v1402_v43 = vadd.f32 %v2611_v58, %v1401_v28  ;;  %v2134_v44 = vpop.f32.mrb[78].mxu0 }
 0x271   : > { %v1846_v47 = vadd.f32 -1.0, %v2340_v42  ;;  %v1478_v48 = vmin.f32 %v1410_v41, 0.0  ;;  %v1413_v6 = vadd.f32 %v2134_v44, %v2611_v58  ;;  %v1404_v50 = vpop.f32.mrb[79].mxu0  ;;  %v2342_v11 = vpop.eup %2341  ;;  %vm1446_vm15 = vcmp.gt.f32.partialorder %v1410_v41, 0.0 }
 0x272   : > { %v1602_v31 = vsel %vm1442_vm11, %v1394_v15, %v1848_v63  ;;  %v1476_v52 = vmin.f32 %v1402_v43, 0.0  ;;  %v1405_v38 = vadd.f32 %v2611_v58, %v1404_v50  ;;  %v2344_v53 = vpop.eup %2343  ;;  %v1849_v37 = vadd.f32 -1.0, %v2342_v11 }
 0x273   : > { %1635 = vst.msk [vmem:[%s2622_s24 + $0xd0] sm:$0xff] %vm1608_vm2, %v1602_v31  ;;  %v1600_v54 = vsel %vm1440_vm12, %v1386_v10, %v1846_v47  ;;  %v1540_v45 = vmul.f32 1.442695, %v1478_v48  ;;  %v1847_v59 = vadd.f32 -1.0, %v2344_v53  ;;  %v1479_v61 = vmin.f32 %v1413_v6, 0.0 }
 0x274   : > { %1633 = vst.msk [vmem:[%s2622_s24 + $0xc0] sm:$0xff] %vm1608_vm2, %v1600_v54  ;;  %v1536_v60 = vmul.f32 1.442695, %v1476_v52  ;;  %v1603_v56 = vsel %vm1443_vm13, %v1397_v3, %v1849_v37  ;;  %v1477_v0 = vmin.f32 %v1405_v38, 0.0  ;;  %vm1444_vm0 = vcmp.gt.f32.partialorder %v1402_v43, 0.0 }
 0x275   : > { %2345 = vpow2.f32 %v1540_v45  ;;  %1636 = vst.msk [vmem:[%s2622_s24 + $0xd8] sm:$0xff] %vm1608_vm2, %v1603_v56  ;;  %v1601_v58 = vsel %vm1441_vm14, %v1389_v27, %v1847_v59  ;;  %v1542_v1 = vmul.f32 1.442695, %v1479_v61  ;;  %vm1447_vm1 = vcmp.gt.f32.partialorder %v1413_v6, 0.0 }
 0x276   : > { %2347 = vpow2.f32 %v1536_v60  ;;  %1634 = vst.msk [vmem:[%s2622_s24 + $0xc8] sm:$0xff] %vm1608_vm2, %v1601_v58  ;;  %v1538_v2 = vmul.f32 1.442695, %v1477_v0  ;;  %vm1445_vm3 = vcmp.gt.f32.partialorder %v1405_v38, 0.0 }
 0x277   : > { %2349 = vpow2.f32 %v1542_v1 }
 0x278   : > { %2351 = vpow2.f32 %v1538_v2 }
 0x27f   : > { %v2346_v55 = vpop.eup %2345 }
 0x280   : > { %v2348_v62 = vpop.eup %2347  ;;  %v1852_v5 = vadd.f32 -1.0, %v2346_v55 }
 0x281   : > { %v1850_v49 = vadd.f32 -1.0, %v2348_v62  ;;  %v2350_v7 = vpop.eup %2349 }
 0x282   : > { %v1606_v57 = vsel %vm1446_vm15, %v1410_v41, %v1852_v5  ;;  %v2352_v8 = vpop.eup %2351  ;;  %v1853_v14 = vadd.f32 -1.0, %v2350_v7 }
 0x283   : > { %1639 = vst.msk [vmem:[%s2622_s24 + $0xf0] sm:$0xff] %vm1608_vm2, %v1606_v57  ;;  %v1604_v9 = vsel %vm1444_vm0, %v1402_v43, %v1850_v49  ;;  %v1851_v12 = vadd.f32 -1.0, %v2352_v8 }
 0x284   : > { %1637 = vst.msk [vmem:[%s2622_s24 + $0xe0] sm:$0xff] %vm1608_vm2, %v1604_v9  ;;  %v1607_v15 = vsel %vm1447_vm1, %v1413_v6, %v1853_v14 }
 0x285   : > { %1640 = vst.msk [vmem:[%s2622_s24 + $0xf8] sm:$0xff] %vm1608_vm2, %v1607_v15  ;;  %v1605_v17 = vsel %vm1445_vm3, %v1405_v38, %v1851_v12 }
 0x286   : > { %1638 = vst.msk [vmem:[%s2622_s24 + $0xe8] sm:$0xff] %vm1608_vm2, %v1605_v17 }
 0x287 PF: > { %s14_s15 = sadd.s32 1, %s2359_s15  }
 0x288   : > { %p11_p4 = scmp.ge.s32.totalorder %s14_s15, 4  }
 0x28a   :  { %13 = sbr.rel (!%p11_p4) target bundleno = 1 (0x1), region = 66 }

// kernel: gcn_net_forward.5
= control target key start
LH: loop header
LB: loop body
LE: loop exit
PB: predicated region body
PF: predicated region fallthrough
CT: control target
= control target key end

     0   :  { %s2411_s15 = smov 0   ;;  %s2749_s0 = inlined_call_operand.vmem [shape: bf16[512,512], index: 0, kind: input, shape index: {}]   ;;  %s2750_s1 = inlined_call_operand.vmem [shape: bf16[512,64], index: 1, kind: input, shape index: {}]   ;;  %s2751_s2 = inlined_call_operand.vmem [shape: bf16[64,64], index: 2, kind: input, shape index: {}]   ;;  %s2752_s3 = inlined_call_operand.vmem [shape: f32[1,64], index: 3, kind: input, shape index: {}]   ;;  %s2753_s4 = inlined_call_operand.vmem [shape: f32[512,64], index: 4, kind: output, shape index: {}]  }
   0x1 LB: > { %s1712_s16 = sadd.s32 4294967295, %s2384_s15   ;;  %p1716_p0 = scmp.ge.s32.totalorder %s2384_s15, 1  ;;  %s2384_s15 = sphi %s2411_s15, %s14_s15  }
   0x2   : > { %p164_p1 = scmp.lt.s32.totalorder %s2384_s15, 3 }
   0x4   : > { %p165_p2 = pnand %p1716_p0, %p164_p1 }
   0x5   : > { %v2182_v0 = vld [vmem:[%s2750_s1 + $0x40] sm:$0xff] (!%p165_p2)   ;;  %s1717_s19 = sshll.u32 (!%p165_p2), %s1712_s16, 5  ;;  %v2184_v2 = vld [vmem:[%s2750_s1 + $0x48] sm:$0xff] (!%p165_p2)   ;;  %v2186_v4 = vld [vmem:[%s2750_s1 + $0x50] sm:$0xff] (!%p165_p2)   ;;  %vm1222_vm0 = vcmask (!%p165_p2), 523264  }
   0x6   : > { %168 = sbr.rel (%p165_p2) target bundleno = 647 (0x287), region = 36  ;;  %v2183_v1 = vld [vmem:[%s2750_s1] sm:$0xff] (!%p165_p2)   ;;  %2158 = vmatprep.subr.bf16.mxu1 (!%p165_p2), %v2182_v0  ;;  %1874 = vmatprep.subr.bf16.mxu0 (!%p165_p2), %v2182_v0  ;;  %v2185_v3 = vld [vmem:[%s2750_s1 + $0x8] sm:$0xff] (!%p165_p2)   ;;  %p192_p3 = scmp.lt.s32.totalorder (!%p165_p2), %s1717_s19, 63  ;;  %v2187_v5 = vld [vmem:[%s2750_s1 + $0x10] sm:$0xff] (!%p165_p2)  }
   0x7   : > { %2166 = vmatpush3.bf16.msra.mxu1 (!%p165_p2), %v2183_v1  ;;  %1875 = vmatpush3.bf16.msra.mxu0 (!%p165_p2), %v2183_v1  ;;  %v2188_v6 = vld [vmem:[%s2750_s1 + $0x58] sm:$0xff] (!%p165_p2)   ;;  %v2190_v8 = vld [vmem:[%s2750_s1 + $0x60] sm:$0xff] (!%p165_p2)   ;;  %v2192_v10 = vld [vmem:[%s2750_s1 + $0x68] sm:$0xff] (!%p165_p2)  }
   0x8   : > { %2159 = vmatprep.subr.bf16.mxu1 (!%p165_p2), %v2184_v2  ;;  %1876 = vmatprep.subr.bf16.mxu0 (!%p165_p2), %v2184_v2  ;;  %v2189_v7 = vld [vmem:[%s2750_s1 + $0x18] sm:$0xff] (!%p165_p2)   ;;  %v2191_v9 = vld [vmem:[%s2750_s1 + $0x20] sm:$0xff] (!%p165_p2)   ;;  %v2193_v12 = vld [vmem:[%s2750_s1 + $0x28] sm:$0xff] (!%p165_p2)  }
   0x9   : > { %v2194_v13 = vld [vmem:[%s2750_s1 + $0x70] sm:$0xff] (!%p165_p2)   ;;  %v2196_v15 = vld [vmem:[%s2750_s1 + $0x78] sm:$0xff] (!%p165_p2)   ;;  %v2201_v17 = vld [vmem:[%s2750_s1 + $0xc0] sm:$0xff] (!%p165_p2)  }
   0xa   : > { %v2195_v14 = vld [vmem:[%s2750_s1 + $0x30] sm:$0xff] (!%p165_p2)   ;;  %v2197_v16 = vld [vmem:[%s2750_s1 + $0x38] sm:$0xff] (!%p165_p2)   ;;  %v2202_v19 = vld [vmem:[%s2750_s1 + $0x80] sm:$0xff] (!%p165_p2)  }
   0xb   : > { %2167 = vmatpush3.bf16.msra.mxu1 (!%p165_p2), %v2185_v3  ;;  %1877 = vmatpush3.bf16.msra.mxu0 (!%p165_p2), %v2185_v3  ;;  %v2203_v21 = vld [vmem:[%s2750_s1 + $0xc8] sm:$0xff] (!%p165_p2)   ;;  %v2208_v24 = vld [vmem:[%s2750_s1 + $0xd0] sm:$0xff] (!%p165_p2)   ;;  %v2210_v28 = vld [vmem:[%s2750_s1 + $0xd8] sm:$0xff] (!%p165_p2)  }
   0xc   : > { %2160 = vmatprep.subr.bf16.mxu1 (!%p165_p2), %v2186_v4  ;;  %1878 = vmatprep.subr.bf16.mxu0 (!%p165_p2), %v2186_v4  ;;  %v2204_v22 = vld [vmem:[%s2750_s1 + $0x88] sm:$0xff] (!%p165_p2)   ;;  %v2209_v25 = vld [vmem:[%s2750_s1 + $0x90] sm:$0xff] (!%p165_p2)   ;;  %v2211_v31 = vld [vmem:[%s2750_s1 + $0x98] sm:$0xff] (!%p165_p2)  }
   0xd   : > { %s2755_s19 = smov (!%p192_p3, %s1717_s19), 63  ;;  %v2215_v33 = vld [vmem:[%s2750_s1 + $0xe0] sm:$0xff]   ;;  %v2217_v38 = vld [vmem:[%s2750_s1 + $0xe8] sm:$0xff]   ;;  %v2222_v41 = vld [vmem:[%s2750_s1 + $0xf0] sm:$0xff]  }
   0xe   : > { %s1873_s8 = sshll.u32 %s2755_s19, 4  ;;  %v2216_v36 = vld [vmem:[%s2750_s1 + $0xa0] sm:$0xff]   ;;  %v2218_v39 = vld [vmem:[%s2750_s1 + $0xa8] sm:$0xff]   ;;  %v2223_v44 = vld [vmem:[%s2750_s1 + $0xb0] sm:$0xff]   ;;  %s1721_s25 = sshll.u32 %s2755_s19, 3 }
   0xf   : > { %2168 = vmatpush3.bf16.msra.mxu1 %v2187_v5  ;;  %1879 = vmatpush3.bf16.msra.mxu0 %v2187_v5  ;;  %s2452_s13 = scalar_lea.vmem %s2749_s0, %s1873_s8  ;;  %v2224_v46 = vld [vmem:[%s2750_s1 + $0xf8] sm:$0xff]   ;;  %s2653_s28 = scalar_lea.vmem %s2753_s4, %s1721_s25 }
  0x10   : > { %2161 = vmatprep.subr.bf16.mxu1 %v2188_v6  ;;  %1880 = vmatprep.subr.bf16.mxu0 %v2188_v6  ;;  %v2200_v11 = vld [vmem:[%s2452_s13 + $0x184] ss:$16 sps:$4 sm:$0xff]   ;;  %v2198_v18 = vld [vmem:[%s2452_s13 + $0x180] ss:$16 sps:$4 sm:$0xff]   ;;  %v2231_v45 = vld [vmem:[%s2452_s13 + $0xc] ss:$16 sps:$4 sm:$0xff]  }
  0x11   : > { %973 = vmatprep.mubr.bf16.mxu1 %v2200_v11  ;;  %v2205_v20 = vld [vmem:[%s2452_s13 + $0x1a4] ss:$16 sps:$4 sm:$0xff]   ;;  %v2207_v23 = vld [vmem:[%s2452_s13 + $0x1a0] ss:$16 sps:$4 sm:$0xff]   ;;  %v2225_v47 = vld [vmem:[%s2750_s1 + $0xb8] sm:$0xff]  }
  0x12   : > { %v2226_v26 = vld [vmem:[%s2452_s13] ss:$16 sps:$4 sm:$0xff]   ;;  %v2228_v27 = vld [vmem:[%s2452_s13 + $0x4] ss:$16 sps:$4 sm:$0xff]   ;;  %v2229_v48 = vld [vmem:[%s2452_s13 + $0x8] ss:$16 sps:$4 sm:$0xff]  }
  0x13   : > { %2169 = vmatpush3.bf16.msra.mxu1 %v2189_v7  ;;  %1881 = vmatpush3.bf16.msra.mxu0 %v2189_v7  ;;  %v2212_v29 = vld [vmem:[%s2452_s13 + $0x1c4] ss:$16 sps:$4 sm:$0xff]   ;;  %v2214_v32 = vld [vmem:[%s2452_s13 + $0x1c0] ss:$16 sps:$4 sm:$0xff]   ;;  %v2234_v51 = vld [vmem:[%s2452_s13 + $0x2c] ss:$16 sps:$4 sm:$0xff]  }
  0x14   : > { %2162 = vmatprep.subr.bf16.mxu1 %v2190_v8  ;;  %1882 = vmatprep.subr.bf16.mxu0 %v2190_v8  ;;  %v2232_v30 = vld [vmem:[%s2452_s13 + $0x24] ss:$16 sps:$4 sm:$0xff]   ;;  %v2236_v34 = vld [vmem:[%s2452_s13 + $0x20] ss:$16 sps:$4 sm:$0xff]   ;;  %v2237_v53 = vld [vmem:[%s2452_s13 + $0x28] ss:$16 sps:$4 sm:$0xff]  }
  0x15   : > { %877 = vmatprep.mubr.bf16.mxu0 %v2228_v27  ;;  %v2238_v35 = vld [vmem:[%s2452_s13 + $0x44] ss:$16 sps:$4 sm:$0xff]   ;;  %v2221_v40 = vld [vmem:[%s2452_s13 + $0x1e0] ss:$16 sps:$4 sm:$0xff]   ;;  %v2240_v55 = vld [vmem:[%s2452_s13 + $0x4c] ss:$16 sps:$4 sm:$0xff]  }
  0x16   : > { %v2219_v37 = vld [vmem:[%s2452_s13 + $0x1e4] ss:$16 sps:$4 sm:$0xff]   ;;  %v2242_v42 = vld [vmem:[%s2452_s13 + $0x40] ss:$16 sps:$4 sm:$0xff]   ;;  %v2243_v57 = vld [vmem:[%s2452_s13 + $0x48] ss:$16 sps:$4 sm:$0xff]  }
  0x17   : > { %2170 = vmatpush3.bf16.msra.mxu1 %v2191_v9  ;;  %1883 = vmatpush3.bf16.msra.mxu0 %v2191_v9  ;;  %v2244_v43 = vld [vmem:[%s2452_s13 + $0x64] ss:$16 sps:$4 sm:$0xff]   ;;  %v2248_v49 = vld [vmem:[%s2452_s13 + $0x60] ss:$16 sps:$4 sm:$0xff]   ;;  %v2246_v59 = vld [vmem:[%s2452_s13 + $0x6c] ss:$16 sps:$4 sm:$0xff]  }
  0x18   : > { %2163 = vmatprep.subr.bf16.mxu1 %v2192_v10  ;;  %1884 = vmatprep.subr.bf16.mxu0 %v2192_v10  ;;  %v2250_v50 = vld [vmem:[%s2452_s13 + $0x84] ss:$16 sps:$4 sm:$0xff]   ;;  %v2254_v52 = vld [vmem:[%s2452_s13 + $0x80] ss:$16 sps:$4 sm:$0xff]   ;;  %v2249_v61 = vld [vmem:[%s2452_s13 + $0x68] ss:$16 sps:$4 sm:$0xff]  }
  0x19   : > { %v2256_v54 = vld [vmem:[%s2452_s13 + $0xa4] ss:$16 sps:$4 sm:$0xff]   ;;  %v2260_v56 = vld [vmem:[%s2452_s13 + $0xa0] ss:$16 sps:$4 sm:$0xff]   ;;  %v2252_v63 = vld [vmem:[%s2452_s13 + $0x8c] ss:$16 sps:$4 sm:$0xff]  }
  0x1a   : > { %v2262_v58 = vld [vmem:[%s2452_s13 + $0xc4] ss:$16 sps:$4 sm:$0xff]   ;;  %v2266_v60 = vld [vmem:[%s2452_s13 + $0xc0] ss:$16 sps:$4 sm:$0xff]   ;;  %v2255_v1 = vld [vmem:[%s2452_s13 + $0x88] ss:$16 sps:$4 sm:$0xff]  }
  0x1b   : > { %2171 = vmatpush3.bf16.msra.mxu1 %v2193_v12  ;;  %1885 = vmatpush3.bf16.msra.mxu0 %v2193_v12  ;;  %v2268_v62 = vld [vmem:[%s2452_s13 + $0xe4] ss:$16 sps:$4 sm:$0xff]   ;;  %v2272_v0 = vld [vmem:[%s2452_s13 + $0xe0] ss:$16 sps:$4 sm:$0xff]   ;;  %v2258_v3 = vld [vmem:[%s2452_s13 + $0xac] ss:$16 sps:$4 sm:$0xff]  }
  0x1c   : > { %2164 = vmatprep.subr.bf16.mxu1 %v2194_v13  ;;  %1886 = vmatprep.subr.bf16.mxu0 %v2194_v13  ;;  %v2274_v2 = vld [vmem:[%s2452_s13 + $0x104] ss:$16 sps:$4 sm:$0xff]   ;;  %v2278_v4 = vld [vmem:[%s2452_s13 + $0x100] ss:$16 sps:$4 sm:$0xff]   ;;  %v2261_v5 = vld [vmem:[%s2452_s13 + $0xa8] ss:$16 sps:$4 sm:$0xff]  }
  0x1d   : > { %v2280_v6 = vld [vmem:[%s2452_s13 + $0x124] ss:$16 sps:$4 sm:$0xff]   ;;  %v2264_v7 = vld [vmem:[%s2452_s13 + $0xcc] ss:$16 sps:$4 sm:$0xff]   ;;  %v2284_v8 = vld [vmem:[%s2452_s13 + $0x120] ss:$16 sps:$4 sm:$0xff]  }
  0x1e   : > { %v2267_v9 = vld [vmem:[%s2452_s13 + $0xc8] ss:$16 sps:$4 sm:$0xff]   ;;  %v2286_v10 = vld [vmem:[%s2452_s13 + $0x144] ss:$16 sps:$4 sm:$0xff]   ;;  %v2270_v11 = vld [vmem:[%s2452_s13 + $0xec] ss:$16 sps:$4 sm:$0xff]  }
  0x1f   : > { %2172 = vmatpush3.bf16.msra.mxu1 %v2195_v14  ;;  %1887 = vmatpush3.bf16.msra.mxu0 %v2195_v14  ;;  %v2290_v12 = vld [vmem:[%s2452_s13 + $0x140] ss:$16 sps:$4 sm:$0xff]   ;;  %v2273_v13 = vld [vmem:[%s2452_s13 + $0xe8] ss:$16 sps:$4 sm:$0xff]   ;;  %v2292_v14 = vld [vmem:[%s2452_s13 + $0x164] ss:$16 sps:$4 sm:$0xff]  }
  0x20   : > { %2165 = vmatprep.subr.bf16.mxu1 %v2196_v15  ;;  %1888 = vmatprep.subr.bf16.mxu0 %v2196_v15  ;;  %v2276_v15 = vld [vmem:[%s2452_s13 + $0x10c] ss:$16 sps:$4 sm:$0xff]   ;;  %v2312_v27 = vld [vmem:[%s2751_s2 + $0x10] sm:$0xff]  }
  0x23   : > { %2173 = vmatpush3.bf16.msra.mxu1 %v2197_v16  ;;  %1889 = vmatpush3.bf16.msra.mxu0 %v2197_v16  ;;  %v2296_v16 = vld [vmem:[%s2452_s13 + $0x160] ss:$16 sps:$4 sm:$0xff]  }
  0x24   : > { %1986 = vmatprep.subr.bf16.mxu1 %v2201_v17  ;;  %v2279_v17 = vld [vmem:[%s2452_s13 + $0x108] ss:$16 sps:$4 sm:$0xff]  }
  0x26   : > { %974 = vmatmul.mubr.bf16.vlgmr.msra.gmra.mrb[0].mxu1 %v2198_v18  ;;  %878 = vmatmul.mubr.bf16.vlgmr.msra.gmra.mrb[0].mxu0 %v2226_v26  ;;  %v2282_v18 = vld [vmem:[%s2452_s13 + $0x12c] ss:$16 sps:$4 sm:$0xff]  }
  0x27   : > { %1987 = vmatpush3.bf16.msra.mxu1 %v2202_v19  ;;  %981 = vmatprep.mubr.bf16.mxu1 %v2205_v20  ;;  %v2310_v19 = vld [vmem:[%s2751_s2] sm:$0xff]   ;;  %v2285_v20 = vld [vmem:[%s2452_s13 + $0x128] ss:$16 sps:$4 sm:$0xff]  }
  0x28   : > { %1988 = vmatprep.subr.bf16.mxu1 %v2203_v21  ;;  %885 = vmatprep.mubr.bf16.mxu0 %v2232_v30  ;;  %v2288_v21 = vld [vmem:[%s2452_s13 + $0x14c] ss:$16 sps:$4 sm:$0xff]  }
  0x29   : > { %2118 = vmatprep.subr.bf16.mxu0 %v2310_v19  ;;  %v2311_v26 = vld [vmem:[%s2751_s2 + $0x8] sm:$0xff]   ;;  %v2313_v30 = vld [vmem:[%s2751_s2 + $0x18] sm:$0xff]  }
  0x2a   : > { %2119 = vmatpush3.bf16.msra.mxu0 %v2310_v19 }
  0x2b   : > { %1989 = vmatpush3.bf16.msra.mxu1 %v2204_v22  ;;  %v2291_v22 = vld [vmem:[%s2452_s13 + $0x148] ss:$16 sps:$4 sm:$0xff]   ;;  %2120 = vmatprep.subr.bf16.mxu0 %v2311_v26 }
  0x2c   : > { %1990 = vmatprep.subr.bf16.mxu1 %v2208_v24  ;;  %v2297_v24 = vld [vmem:[%s2452_s13 + $0x168] ss:$16 sps:$4 sm:$0xff]  }
  0x2e   : > { %982 = vmatmul.mubr.bf16.gmra.mrb[4].mxu1 %v2207_v23  ;;  %886 = vmatmul.mubr.bf16.gmra.mrb[4].mxu0 %v2236_v34  ;;  %v2294_v23 = vld [vmem:[%s2452_s13 + $0x16c] ss:$16 sps:$4 sm:$0xff]  }
  0x2f   : > { %1991 = vmatpush3.bf16.msra.mxu1 %v2209_v25  ;;  %989 = vmatprep.mubr.bf16.mxu1 %v2212_v29  ;;  %v2298_v25 = vld [vmem:[%s2452_s13 + $0x18c] ss:$16 sps:$4 sm:$0xff]  }
  0x30   : > { %1992 = vmatprep.subr.bf16.mxu1 %v2210_v28  ;;  %893 = vmatprep.mubr.bf16.mxu0 %v2238_v35  ;;  %v2300_v28 = vld [vmem:[%s2452_s13 + $0x188] ss:$16 sps:$4 sm:$0xff]   ;;  %v2301_v29 = vld [vmem:[%s2452_s13 + $0x1ac] ss:$16 sps:$4 sm:$0xff]  }
  0x31   : > { %2121 = vmatpush3.bf16.msra.mxu0 %v2311_v26  ;;  %v2307_v34 = vld [vmem:[%s2452_s13 + $0x1ec] ss:$16 sps:$4 sm:$0xff]   ;;  %v2309_v35 = vld [vmem:[%s2452_s13 + $0x1e8] ss:$16 sps:$4 sm:$0xff]  }
  0x32   : > { %2122 = vmatprep.subr.bf16.mxu0 %v2312_v27 }
  0x33   : > { %1993 = vmatpush3.bf16.msra.mxu1 %v2211_v31  ;;  %v2303_v31 = vld [vmem:[%s2452_s13 + $0x1a8] ss:$16 sps:$4 sm:$0xff]  }
  0x34   : > { %1994 = vmatprep.subr.bf16.mxu1 %v2215_v33  ;;  %v2306_v33 = vld [vmem:[%s2452_s13 + $0x1c8] ss:$16 sps:$4 sm:$0xff]  }
  0x35   : > { %2123 = vmatpush3.bf16.msra.mxu0 %v2312_v27 }
  0x36   : > { %990 = vmatmul.mubr.bf16.gmra.mrb[8].mxu1 %v2214_v32  ;;  %894 = vmatmul.mubr.bf16.gmra.mrb[8].mxu0 %v2242_v42  ;;  %v2304_v32 = vld [vmem:[%s2452_s13 + $0x1cc] ss:$16 sps:$4 sm:$0xff]  }
  0x37   : > { %1995 = vmatpush3.bf16.msra.mxu1 %v2216_v36  ;;  %997 = vmatprep.mubr.bf16.mxu1 %v2219_v37 }
  0x38   : > { %1996 = vmatprep.subr.bf16.mxu1 %v2217_v38  ;;  %901 = vmatprep.mubr.bf16.mxu0 %v2244_v43 }
  0x39   : > { %2124 = vmatprep.subr.bf16.mxu0 %v2313_v30 }
  0x3a   : > { %2125 = vmatpush3.bf16.msra.mxu0 %v2313_v30 }
  0x3b   : > { %1997 = vmatpush3.bf16.msra.mxu1 %v2218_v39 }
  0x3c   : > { %1998 = vmatprep.subr.bf16.mxu1 %v2222_v41 }
  0x3e   : > { %998 = vmatmul.mubr.bf16.gmra.mrb[12].mxu1 %v2221_v40  ;;  %902 = vmatmul.mubr.bf16.gmra.mrb[12].mxu0 %v2248_v49 }
  0x3f   : > { %1999 = vmatpush3.bf16.msra.mxu1 %v2223_v44  ;;  %1038 = vmatprep.mubr.bf16.mxu1 %v2231_v45 }
  0x40   : > { %2000 = vmatprep.subr.bf16.mxu1 %v2224_v46  ;;  %909 = vmatprep.mubr.bf16.mxu0 %v2250_v50 }
  0x43   : > { %2001 = vmatpush3.bf16.msra.mxu1 %v2225_v47 }
  0x46   : > { %1039 = vmatmul.mubr.bf16.vlgmr.msra.gmra.mrb[16].mxu1 %v2229_v48  ;;  %910 = vmatmul.mubr.bf16.gmra.mrb[16].mxu0 %v2254_v52 }
  0x47   : > { %1046 = vmatprep.mubr.bf16.mxu1 %v2234_v51  ;;  %917 = vmatprep.mubr.bf16.mxu0 %v2256_v54 }
  0x4e   : > { %1047 = vmatmul.mubr.bf16.gmra.mrb[20].mxu1 %v2237_v53  ;;  %918 = vmatmul.mubr.bf16.gmra.mrb[20].mxu0 %v2260_v56 }
  0x4f   : > { %1054 = vmatprep.mubr.bf16.mxu1 %v2240_v55  ;;  %925 = vmatprep.mubr.bf16.mxu0 %v2262_v58 }
  0x56   : > { %1055 = vmatmul.mubr.bf16.gmra.mrb[24].mxu1 %v2243_v57  ;;  %926 = vmatmul.mubr.bf16.gmra.mrb[24].mxu0 %v2266_v60 }
  0x57   : > { %1062 = vmatprep.mubr.bf16.mxu1 %v2246_v59  ;;  %933 = vmatprep.mubr.bf16.mxu0 %v2268_v62 }
  0x5e   : > { %1063 = vmatmul.mubr.bf16.gmra.mrb[28].mxu1 %v2249_v61  ;;  %934 = vmatmul.mubr.bf16.gmra.mrb[28].mxu0 %v2272_v0 }
  0x5f   : > { %1070 = vmatprep.mubr.bf16.mxu1 %v2252_v63  ;;  %941 = vmatprep.mubr.bf16.mxu0 %v2274_v2 }
  0x66   : > { %1071 = vmatmul.mubr.bf16.gmra.mrb[32].mxu1 %v2255_v1  ;;  %942 = vmatmul.mubr.bf16.gmra.mrb[32].mxu0 %v2278_v4 }
  0x67   : > { %1078 = vmatprep.mubr.bf16.mxu1 %v2258_v3  ;;  %949 = vmatprep.mubr.bf16.mxu0 %v2280_v6 }
  0x6e   : > { %1079 = vmatmul.mubr.bf16.gmra.mrb[36].mxu1 %v2261_v5  ;;  %950 = vmatmul.mubr.bf16.gmra.mrb[36].mxu0 %v2284_v8 }
  0x6f   : > { %1086 = vmatprep.mubr.bf16.mxu1 %v2264_v7  ;;  %957 = vmatprep.mubr.bf16.mxu0 %v2286_v10 }
  0x76   : > { %1087 = vmatmul.mubr.bf16.gmra.mrb[40].mxu1 %v2267_v9  ;;  %958 = vmatmul.mubr.bf16.gmra.mrb[40].mxu0 %v2290_v12 }
  0x77   : > { %1094 = vmatprep.mubr.bf16.mxu1 %v2270_v11  ;;  %965 = vmatprep.mubr.bf16.mxu0 %v2292_v14 }
  0x7e   : > { %1095 = vmatmul.mubr.bf16.gmra.mrb[44].mxu1 %v2273_v13  ;;  %966 = vmatmul.mubr.bf16.gmra.mrb[44].mxu0 %v2296_v16 }
  0x7f   : > { %1102 = vmatprep.mubr.bf16.mxu1 %v2276_v15 }
  0x86   : > { %1103 = vmatmul.mubr.bf16.gmra.mrb[48].mxu1 %v2279_v17 }
  0x87   : > { %1110 = vmatprep.mubr.bf16.mxu1 %v2282_v18 }
  0x8e   : > { %1111 = vmatmul.mubr.bf16.gmra.mrb[52].mxu1 %v2285_v20 }
  0x8f   : > { %1118 = vmatprep.mubr.bf16.mxu1 %v2288_v21 }
  0x96   : > { %1119 = vmatmul.mubr.bf16.gmra.mrb[56].mxu1 %v2291_v22 }
  0x97   : > { %1126 = vmatprep.mubr.bf16.mxu1 %v2294_v23 }
  0x9e   : > { %1127 = vmatmul.mubr.bf16.gmra.mrb[60].mxu1 %v2297_v24 }
  0x9f   : > { %1134 = vmatprep.mubr.bf16.mxu1 %v2298_v25 }
  0xa6   : > { %1135 = vmatmul.mubr.bf16.gmra.mrb[64].mxu1 %v2300_v28 }
  0xa7   : > { %1142 = vmatprep.mubr.bf16.mxu1 %v2301_v29 }
  0xae   : > { %1143 = vmatmul.mubr.bf16.gmra.mrb[68].mxu1 %v2303_v31 }
  0xaf   : > { %1150 = vmatprep.mubr.bf16.mxu1 %v2304_v32 }
  0xb6   : > { %1151 = vmatmul.mubr.bf16.gmra.mrb[72].mxu1 %v2306_v33 }
  0xb7   : > { %1158 = vmatprep.mubr.bf16.mxu1 %v2307_v34 }
  0xbe   : > { %1159 = vmatmul.mubr.bf16.gmra.mrb[76].mxu1 %v2309_v35 }
  0xf9   : > { %v1962_v36 = vpop.f32.mrb[0].mxu1  ;;  %v1890_v42 = vpop.f32.mrb[0].mxu0 }
  0xfa   : > { %v1963_v37 = vpop.f32.mrb[1].mxu1  ;;  %v1891_v44 = vpop.f32.mrb[1].mxu0 }
  0xfb   : > { %v2599_v38 = vadd.f32 %v1963_v37, %v1962_v36  ;;  %v1965_v39 = vpop.f32.mrb[2].mxu1  ;;  %v1892_v46 = vadd.f32 %v1891_v44, %v1890_v42  ;;  %v1893_v47 = vpop.f32.mrb[2].mxu0 }
  0xfc   : > { %v1966_v40 = vpop.f32.mrb[3].mxu1  ;;  %v1894_v50 = vpop.f32.mrb[3].mxu0 }
  0xfd   : > { %v2601_v41 = vadd.f32 %v1966_v40, %v1965_v39  ;;  %v1895_v52 = vadd.f32 %v1894_v50, %v1893_v47 }
 0x101   : > { %v1968_v43 = vpop.f32.mrb[4].mxu1  ;;  %v1896_v54 = vpop.f32.mrb[4].mxu0 }
 0x102   : > { %v1969_v45 = vpop.f32.mrb[5].mxu1  ;;  %v1897_v56 = vpop.f32.mrb[5].mxu0 }
 0x103   : > { %v2603_v48 = vadd.f32 %v1969_v45, %v1968_v43  ;;  %v1971_v49 = vpop.f32.mrb[6].mxu1  ;;  %v1898_v58 = vadd.f32 %v1897_v56, %v1896_v54  ;;  %v1899_v59 = vpop.f32.mrb[6].mxu0 }
 0x104   : > { %v1972_v51 = vpop.f32.mrb[7].mxu1  ;;  %v1900_v62 = vpop.f32.mrb[7].mxu0 }
 0x105   : > { %v2605_v53 = vadd.f32 %v1972_v51, %v1971_v49  ;;  %v1901_v0 = vadd.f32 %v1900_v62, %v1899_v59 }
 0x109   : > { %v1974_v55 = vpop.f32.mrb[8].mxu1  ;;  %v1902_v2 = vpop.f32.mrb[8].mxu0 }
 0x10a   : > { %v1975_v57 = vpop.f32.mrb[9].mxu1  ;;  %v1903_v4 = vpop.f32.mrb[9].mxu0 }
 0x10b   : > { %v2607_v60 = vadd.f32 %v1975_v57, %v1974_v55  ;;  %v1977_v61 = vpop.f32.mrb[10].mxu1  ;;  %v1904_v6 = vadd.f32 %v1903_v4, %v1902_v2  ;;  %v1905_v7 = vpop.f32.mrb[10].mxu0 }
 0x10c   : > { %v1978_v63 = vpop.f32.mrb[11].mxu1  ;;  %v1906_v10 = vpop.f32.mrb[11].mxu0 }
 0x10d   : > { %v2609_v1 = vadd.f32 %v1978_v63, %v1977_v61  ;;  %v1907_v12 = vadd.f32 %v1906_v10, %v1905_v7 }
 0x111   : > { %v1980_v3 = vpop.f32.mrb[12].mxu1  ;;  %v1908_v14 = vpop.f32.mrb[12].mxu0 }
 0x112   : > { %v1981_v5 = vpop.f32.mrb[13].mxu1  ;;  %v1909_v16 = vpop.f32.mrb[13].mxu0 }
 0x113   : > { %v2611_v8 = vadd.f32 %v1981_v5, %v1980_v3  ;;  %v1983_v9 = vpop.f32.mrb[14].mxu1  ;;  %v1910_v18 = vadd.f32 %v1909_v16, %v1908_v14  ;;  %v1911_v19 = vpop.f32.mrb[14].mxu0 }
 0x114   : > { %v1984_v11 = vpop.f32.mrb[15].mxu1  ;;  %v1912_v22 = vpop.f32.mrb[15].mxu0 }
 0x115   : > { %v2613_v13 = vadd.f32 %v1984_v11, %v1983_v9  ;;  %v1913_v24 = vadd.f32 %v1912_v22, %v1911_v19 }
 0x119   : > { %v2002_v15 = vpop.f32.mrb[16].mxu1  ;;  %v1914_v28 = vpop.f32.mrb[16].mxu0 }
 0x11a   : > { %v2003_v17 = vpop.f32.mrb[17].mxu1  ;;  %v1915_v31 = vpop.f32.mrb[17].mxu0 }
 0x11b   : > { %v2004_v20 = vadd.f32 %v2003_v17, %v2002_v15  ;;  %v2005_v21 = vpop.f32.mrb[18].mxu1  ;;  %v1916_v33 = vadd.f32 %v1915_v31, %v1914_v28  ;;  %v1917_v34 = vpop.f32.mrb[18].mxu0 }
 0x11c   : > { %v2006_v23 = vpop.f32.mrb[19].mxu1  ;;  %v1918_v37 = vpop.f32.mrb[19].mxu0 }
 0x11d   : > { %v1041_v25 = vadd.f32 %v2004_v20, %v1892_v46  ;;  %v2007_v26 = vadd.f32 %v2006_v23, %v2005_v21  ;;  %v1919_v40 = vadd.f32 %v1918_v37, %v1917_v34 }
 0x11f   : > { %v1044_v27 = vadd.f32 %v2007_v26, %v1895_v52 }
 0x121   : > { %v1167_v29 = vpack.c.bf16 %v1044_v27, %v1041_v25  ;;  %v2008_v30 = vpop.f32.mrb[20].mxu1  ;;  %v1920_v45 = vpop.f32.mrb[20].mxu0 }
 0x122   : > { %v2009_v32 = vpop.f32.mrb[21].mxu1  ;;  %v1921_v49 = vpop.f32.mrb[21].mxu0 }
 0x123   : > { %v2010_v35 = vadd.f32 %v2009_v32, %v2008_v30  ;;  %v2011_v36 = vpop.f32.mrb[22].mxu1  ;;  %2126 = vmatprep.mubr.msk.bf16.mxu0 %vm1222_vm0, %v1167_v29  ;;  %v1922_v51 = vadd.f32 %v1921_v49, %v1920_v45  ;;  %v1923_v52 = vpop.f32.mrb[22].mxu0 }
 0x124   : > { %v2012_v39 = vpop.f32.mrb[23].mxu1  ;;  %v1924_v56 = vpop.f32.mrb[23].mxu0 }
 0x125   : > { %v1049_v42 = vadd.f32 %v2010_v35, %v1898_v58  ;;  %v2013_v43 = vadd.f32 %v2012_v39, %v2011_v36  ;;  %v1925_v59 = vadd.f32 %v1924_v56, %v1923_v52 }
 0x127   : > { %v1052_v44 = vadd.f32 %v2013_v43, %v1901_v0 }
 0x129   : > { %v1168_v46 = vpack.c.bf16 %v1052_v44, %v1049_v42  ;;  %v2014_v47 = vpop.f32.mrb[24].mxu1  ;;  %v1926_v58 = vpop.f32.mrb[24].mxu0 }
 0x12a   : > { %v2015_v50 = vpop.f32.mrb[25].mxu1  ;;  %v1927_v3 = vpop.f32.mrb[25].mxu0 }
 0x12b   : > { %v2016_v54 = vadd.f32 %v2015_v50, %v2014_v47  ;;  %v2017_v55 = vpop.f32.mrb[26].mxu1  ;;  %2127 = vmatmul.mubr.msk.bf16.vlgmr.msra.gmra.mrb[48].mxu0 %vm1222_vm0, %v1168_v46  ;;  %v1928_v5 = vadd.f32 %v1927_v3, %v1926_v58  ;;  %v1929_v7 = vpop.f32.mrb[26].mxu0 }
 0x12c   : > { %v2018_v57 = vpop.f32.mrb[27].mxu1  ;;  %v1930_v11 = vpop.f32.mrb[27].mxu0 }
 0x12d   : > { %v1057_v61 = vadd.f32 %v2016_v54, %v1904_v6  ;;  %v2019_v62 = vadd.f32 %v2018_v57, %v2017_v55  ;;  %v1931_v15 = vadd.f32 %v1930_v11, %v1929_v7 }
 0x12f   : > { %v1060_v63 = vadd.f32 %v2019_v62, %v1907_v12 }
 0x131   : > { %v1169_v2 = vpack.c.bf16 %v1060_v63, %v1057_v61  ;;  %v2020_v0 = vpop.f32.mrb[28].mxu1  ;;  %v1932_v6 = vpop.f32.mrb[28].mxu0 }
 0x132   : > { %v2021_v4 = vpop.f32.mrb[29].mxu1  ;;  %v1933_v21 = vpop.f32.mrb[29].mxu0 }
 0x133   : > { %v2022_v9 = vadd.f32 %v2021_v4, %v2020_v0  ;;  %v2023_v10 = vpop.f32.mrb[30].mxu1  ;;  %2130 = vmatprep.mubr.msk.bf16.mxu0 %vm1222_vm0, %v1169_v2  ;;  %v1934_v23 = vadd.f32 %v1933_v21, %v1932_v6  ;;  %v1935_v25 = vpop.f32.mrb[30].mxu0 }
 0x134   : > { %v2024_v14 = vpop.f32.mrb[31].mxu1  ;;  %v1936_v28 = vpop.f32.mrb[31].mxu0 }
 0x135   : > { %v1065_v16 = vadd.f32 %v2022_v9, %v1910_v18  ;;  %v2025_v17 = vadd.f32 %v2024_v14, %v2023_v10  ;;  %v1937_v30 = vadd.f32 %v1936_v28, %v1935_v25 }
 0x137   : > { %v1068_v19 = vadd.f32 %v2025_v17, %v1913_v24 }
 0x139   : > { %v1170_v20 = vpack.c.bf16 %v1068_v19, %v1065_v16  ;;  %v2026_v12 = vpop.f32.mrb[32].mxu1  ;;  %v1938_v18 = vpop.f32.mrb[32].mxu0 }
 0x13a   : > { %v2027_v22 = vpop.f32.mrb[33].mxu1  ;;  %v1939_v36 = vpop.f32.mrb[33].mxu0 }
 0x13b   : > { %v2028_v26 = vadd.f32 %v2027_v22, %v2026_v12  ;;  %v2029_v27 = vpop.f32.mrb[34].mxu1  ;;  %2131 = vmatmul.mubr.msk.bf16.gmra.mrb[52].mxu0 %vm1222_vm0, %v1170_v20  ;;  %v1940_v39 = vadd.f32 %v1939_v36, %v1938_v18  ;;  %v1941_v42 = vpop.f32.mrb[34].mxu0 }
 0x13c   : > { %v2030_v29 = vpop.f32.mrb[35].mxu1  ;;  %v1942_v45 = vpop.f32.mrb[35].mxu0 }
 0x13d   : > { %v1073_v31 = vadd.f32 %v2028_v26, %v1916_v33  ;;  %v2031_v32 = vadd.f32 %v2030_v29, %v2029_v27  ;;  %v1943_v47 = vadd.f32 %v1942_v45, %v1941_v42 }
 0x13f   : > { %v1076_v34 = vadd.f32 %v2031_v32, %v1919_v40 }
 0x141   : > { %v1171_v35 = vpack.c.bf16 %v1076_v34, %v1073_v31  ;;  %v2032_v24 = vpop.f32.mrb[36].mxu1  ;;  %v1944_v33 = vpop.f32.mrb[36].mxu0 }
 0x142   : > { %v2033_v37 = vpop.f32.mrb[37].mxu1  ;;  %v1945_v55 = vpop.f32.mrb[37].mxu0 }
 0x143   : > { %v2034_v43 = vadd.f32 %v2033_v37, %v2032_v24  ;;  %v2035_v44 = vpop.f32.mrb[38].mxu1  ;;  %2134 = vmatprep.mubr.msk.bf16.mxu0 %vm1222_vm0, %v1171_v35  ;;  %v1946_v57 = vadd.f32 %v1945_v55, %v1944_v33  ;;  %v1947_v61 = vpop.f32.mrb[38].mxu0 }
 0x144   : > { %v2036_v46 = vpop.f32.mrb[39].mxu1  ;;  %v1948_v58 = vpop.f32.mrb[39].mxu0 }
 0x145   : > { %v1081_v49 = vadd.f32 %v2034_v43, %v1922_v51  ;;  %v2037_v50 = vadd.f32 %v2036_v46, %v2035_v44  ;;  %v1949_v0 = vadd.f32 %v1948_v58, %v1947_v61 }
 0x147   : > { %v1084_v52 = vadd.f32 %v2037_v50, %v1925_v59 }
 0x149   : > { %v1172_v54 = vpack.c.bf16 %v1084_v52, %v1081_v49  ;;  %v2038_v40 = vpop.f32.mrb[40].mxu1  ;;  %v1950_v51 = vpop.f32.mrb[40].mxu0 }
 0x14a   : > { %v2039_v56 = vpop.f32.mrb[41].mxu1  ;;  %v1951_v10 = vpop.f32.mrb[41].mxu0 }
 0x14b   : > { %v2040_v62 = vadd.f32 %v2039_v56, %v2038_v40  ;;  %v2041_v63 = vpop.f32.mrb[42].mxu1  ;;  %2135 = vmatmul.mubr.msk.bf16.gmra.mrb[56].mxu0 %vm1222_vm0, %v1172_v54  ;;  %v1952_v14 = vadd.f32 %v1951_v10, %v1950_v51  ;;  %v1953_v16 = vpop.f32.mrb[42].mxu0 }
 0x14c   : > { %v2042_v2 = vpop.f32.mrb[43].mxu1  ;;  %v1954_v6 = vpop.f32.mrb[43].mxu0 }
 0x14d   : > { %v1089_v3 = vadd.f32 %v2040_v62, %v1928_v5  ;;  %v2043_v4 = vadd.f32 %v2042_v2, %v2041_v63  ;;  %v1955_v12 = vadd.f32 %v1954_v6, %v1953_v16 }
 0x14f   : > { %v1092_v7 = vadd.f32 %v2043_v4, %v1931_v15 }
 0x151   : > { %v1173_v9 = vpack.c.bf16 %v1092_v7, %v1089_v3  ;;  %v2044_v59 = vpop.f32.mrb[44].mxu1  ;;  %v1956_v5 = vpop.f32.mrb[44].mxu0 }
 0x152   : > { %v2045_v11 = vpop.f32.mrb[45].mxu1  ;;  %v1957_v27 = vpop.f32.mrb[45].mxu0 }
 0x153   : > { %v2046_v17 = vadd.f32 %v2045_v11, %v2044_v59  ;;  %v2047_v19 = vpop.f32.mrb[46].mxu1  ;;  %2138 = vmatprep.mubr.msk.bf16.mxu0 %vm1222_vm0, %v1173_v9  ;;  %v1958_v29 = vadd.f32 %v1957_v27, %v1956_v5  ;;  %v1959_v31 = vpop.f32.mrb[46].mxu0 }
 0x154   : > { %v2048_v20 = vpop.f32.mrb[47].mxu1  ;;  %v1960_v18 = vpop.f32.mrb[47].mxu0 }
 0x155   : > { %v1097_v21 = vadd.f32 %v2046_v17, %v1934_v23  ;;  %v2049_v22 = vadd.f32 %v2048_v20, %v2047_v19  ;;  %v1961_v24 = vadd.f32 %v1960_v18, %v1959_v31 }
 0x157   : > { %v1100_v25 = vadd.f32 %v2049_v22, %v1937_v30 }
 0x159   : > { %v1174_v26 = vpack.c.bf16 %v1100_v25, %v1097_v21  ;;  %v2050_v15 = vpop.f32.mrb[48].mxu1 }
 0x15a   : > { %v2051_v28 = vpop.f32.mrb[49].mxu1 }
 0x15b   : > { %v2052_v32 = vadd.f32 %v2051_v28, %v2050_v15  ;;  %v2053_v34 = vpop.f32.mrb[50].mxu1  ;;  %2139 = vmatmul.mubr.msk.bf16.gmra.mrb[60].mxu0 %vm1222_vm0, %v1174_v26 }
 0x15c   : > { %v2054_v35 = vpop.f32.mrb[51].mxu1 }
 0x15d   : > { %v1105_v36 = vadd.f32 %v2052_v32, %v1940_v39  ;;  %v2055_v37 = vadd.f32 %v2054_v35, %v2053_v34 }
 0x15f   : > { %v1108_v42 = vadd.f32 %v2055_v37, %v1943_v47 }
 0x161   : > { %v1175_v23 = vpack.c.bf16 %v1108_v42, %v1105_v36  ;;  %v2056_v43 = vpop.f32.mrb[52].mxu1 }
 0x162   : > { %v2057_v30 = vpop.f32.mrb[53].mxu1 }
 0x163   : > { %v2058_v44 = vadd.f32 %v2057_v30, %v2056_v43  ;;  %v2059_v45 = vpop.f32.mrb[54].mxu1  ;;  %2142 = vmatprep.mubr.msk.bf16.mxu0 %vm1222_vm0, %v1175_v23 }
 0x164   : > { %v2060_v46 = vpop.f32.mrb[55].mxu1 }
 0x165   : > { %v1113_v49 = vadd.f32 %v2058_v44, %v1946_v57  ;;  %v2061_v50 = vadd.f32 %v2060_v46, %v2059_v45 }
 0x167   : > { %v1116_v52 = vadd.f32 %v2061_v50, %v1949_v0 }
 0x169   : > { %v1176_v33 = vpack.c.bf16 %v1116_v52, %v1113_v49  ;;  %v2062_v54 = vpop.f32.mrb[56].mxu1 }
 0x16a   : > { %v2063_v40 = vpop.f32.mrb[57].mxu1 }
 0x16b   : > { %v2064_v55 = vadd.f32 %v2063_v40, %v2062_v54  ;;  %v2065_v56 = vpop.f32.mrb[58].mxu1  ;;  %2143 = vmatmul.mubr.msk.bf16.gmra.mrb[64].mxu0 %vm1222_vm0, %v1176_v33 }
 0x16c   : > { %v2066_v39 = vpop.f32.mrb[59].mxu1 }
 0x16d   : > { %v1121_v47 = vadd.f32 %v2064_v55, %v1952_v14  ;;  %v2067_v61 = vadd.f32 %v2066_v39, %v2065_v56 }
 0x16f   : > { %v1124_v62 = vadd.f32 %v2067_v61, %v1955_v12 }
 0x171   : > { %v1177_v63 = vpack.c.bf16 %v1124_v62, %v1121_v47  ;;  %v2068_v58 = vpop.f32.mrb[60].mxu1 }
 0x172   : > { %v2069_v2 = vpop.f32.mrb[61].mxu1 }
 0x173   : > { %v2070_v3 = vadd.f32 %v2069_v2, %v2068_v58  ;;  %v2071_v4 = vpop.f32.mrb[62].mxu1  ;;  %2146 = vmatprep.mubr.msk.bf16.mxu0 %vm1222_vm0, %v1177_v63 }
 0x174   : > { %v2072_v57 = vpop.f32.mrb[63].mxu1 }
 0x175   : > { %v1129_v0 = vadd.f32 %v2070_v3, %v1958_v29  ;;  %v2073_v7 = vadd.f32 %v2072_v57, %v2071_v4 }
 0x177   : > { %v1132_v51 = vadd.f32 %v2073_v7, %v1961_v24 }
 0x179   : > { %v1178_v9 = vpack.c.bf16 %v1132_v51, %v1129_v0  ;;  %v2074_v59 = vpop.f32.mrb[64].mxu1 }
 0x17a   : > { %v2075_v10 = vpop.f32.mrb[65].mxu1 }
 0x17b   : > { %v2076_v11 = vadd.f32 %v2075_v10, %v2074_v59  ;;  %v2077_v16 = vpop.f32.mrb[66].mxu1  ;;  %2147 = vmatmul.mubr.msk.bf16.gmra.mrb[68].mxu0 %vm1222_vm0, %v1178_v9 }
 0x17c   : > { %v2078_v14 = vpop.f32.mrb[67].mxu1 }
 0x17d   : > { %v1137_v17 = vadd.f32 %v2076_v11, %v2599_v38  ;;  %v2079_v19 = vadd.f32 %v2078_v14, %v2077_v16 }
 0x17f   : > { %v1140_v6 = vadd.f32 %v2079_v19, %v2601_v41 }
 0x181   : > { %v1179_v20 = vpack.c.bf16 %v1140_v6, %v1137_v17  ;;  %v2080_v12 = vpop.f32.mrb[68].mxu1 }
 0x182   : > { %v2081_v21 = vpop.f32.mrb[69].mxu1 }
 0x183   : > { %v2082_v22 = vadd.f32 %v2081_v21, %v2080_v12  ;;  %v2083_v25 = vpop.f32.mrb[70].mxu1  ;;  %2150 = vmatprep.mubr.msk.bf16.mxu0 %vm1222_vm0, %v1179_v20 }
 0x184   : > { %v2084_v5 = vpop.f32.mrb[71].mxu1 }
 0x185   : > { %v1145_v26 = vadd.f32 %v2082_v22, %v2603_v48  ;;  %v2085_v15 = vadd.f32 %v2084_v5, %v2083_v25 }
 0x187   : > { %v1148_v27 = vadd.f32 %v2085_v15, %v2605_v53 }
 0x189   : > { %v1180_v28 = vpack.c.bf16 %v1148_v27, %v1145_v26  ;;  %v2086_v29 = vpop.f32.mrb[72].mxu1 }
 0x18a   : > { %v2087_v31 = vpop.f32.mrb[73].mxu1 }
 0x18b   : > { %v2088_v38 = vadd.f32 %v2087_v31, %v2086_v29  ;;  %v2089_v32 = vpop.f32.mrb[74].mxu1  ;;  %2151 = vmatmul.mubr.msk.bf16.gmra.mrb[72].mxu0 %vm1222_vm0, %v1180_v28 }
 0x18c   : > { %v2090_v41 = vpop.f32.mrb[75].mxu1 }
 0x18d   : > { %v1153_v34 = vadd.f32 %v2088_v38, %v2607_v60  ;;  %v2091_v18 = vadd.f32 %v2090_v41, %v2089_v32  ;;  %v2642_v60 = vld [vmem:[%s2752_s3] ss:$0 sm:$0xff] }
 0x18f   : > { %v1156_v35 = vadd.f32 %v2091_v18, %v2609_v1 }
 0x191   : > { %v1181_v24 = vpack.c.bf16 %v1156_v35, %v1153_v34  ;;  %v2092_v36 = vpop.f32.mrb[76].mxu1 }
 0x192   : > { %v2093_v37 = vpop.f32.mrb[77].mxu1 }
 0x193   : > { %v2094_v48 = vadd.f32 %v2093_v37, %v2092_v36  ;;  %v2095_v42 = vpop.f32.mrb[78].mxu1  ;;  %2154 = vmatprep.mubr.msk.bf16.mxu0 %vm1222_vm0, %v1181_v24 }
 0x194   : > { %v2096_v53 = vpop.f32.mrb[79].mxu1 }
 0x195   : > { %v1161_v23 = vadd.f32 %v2094_v48, %v2611_v8  ;;  %v2097_v43 = vadd.f32 %v2096_v53, %v2095_v42 }
 0x197   : > { %v1164_v30 = vadd.f32 %v2097_v43, %v2613_v13 }
 0x199   : > { %v1182_v44 = vpack.c.bf16 %v1164_v30, %v1161_v23 }
 0x19b   : > { %2155 = vmatmul.mubr.msk.bf16.gmra.mrb[76].mxu0 %vm1222_vm0, %v1182_v44 }
 0x1fe   : > { %v2128_v1 = vpop.f32.mrb[48].mxu0 }
 0x1ff   : > { %v1314_v45 = vadd.f32 %v2128_v1, %v2642_v60  ;;  %v1305_v46 = vpop.f32.mrb[49].mxu0 }
 0x200   : > { %v1306_v49 = vadd.f32 %v2642_v60, %v1305_v46  ;;  %v2129_v50 = vpop.f32.mrb[50].mxu0 }
 0x201   : > { %v1466_v8 = vmin.f32 %v1314_v45, 0.0  ;;  %v1317_v52 = vadd.f32 %v2129_v50, %v2642_v60  ;;  %v1308_v13 = vpop.f32.mrb[51].mxu0  ;;  %vm1434_vm1 = vcmp.gt.f32.partialorder %v1314_v45, 0.0 }
 0x202   : > { %v1464_v33 = vmin.f32 %v1306_v49, 0.0  ;;  %v1309_v54 = vadd.f32 %v2642_v60, %v1308_v13  ;;  %vm1432_vm2 = vcmp.gt.f32.partialorder %v1306_v49, 0.0 }
 0x203   : > { %v1500_v40 = vmul.f32 1.442695, %v1466_v8  ;;  %v1467_v55 = vmin.f32 %v1317_v52, 0.0  ;;  %vm1435_vm3 = vcmp.gt.f32.partialorder %v1317_v52, 0.0 }
 0x204   : > { %v1496_v56 = vmul.f32 1.442695, %v1464_v33  ;;  %v1465_v39 = vmin.f32 %v1309_v54, 0.0  ;;  %vm1433_vm4 = vcmp.gt.f32.partialorder %v1309_v54, 0.0 }
 0x205   : > { %2314 = vpow2.f32 %v1500_v40  ;;  %v1502_v47 = vmul.f32 1.442695, %v1467_v55 }
 0x206   : > { %2316 = vpow2.f32 %v1496_v56  ;;  %v1498_v61 = vmul.f32 1.442695, %v1465_v39 }
 0x207   : > { %2318 = vpow2.f32 %v1502_v47 }
 0x208   : > { %2320 = vpow2.f32 %v1498_v61 }
 0x20e   : > { %v2132_v62 = vpop.f32.mrb[52].mxu0 }
 0x20f   : > { %v2315_v63 = vpop.eup %2314  ;;  %v1330_v58 = vadd.f32 %v2132_v62, %v2642_v60  ;;  %v1321_v2 = vpop.f32.mrb[53].mxu0 }
 0x210   : > { %v2317_v3 = vpop.eup %2316  ;;  %v1841_v4 = vadd.f32 -1.0, %v2315_v63  ;;  %v1322_v57 = vadd.f32 %v2642_v60, %v1321_v2  ;;  %v2133_v0 = vpop.f32.mrb[54].mxu0 }
 0x211   : > { %v2319_v7 = vpop.eup %2318  ;;  %v1839_v51 = vadd.f32 -1.0, %v2317_v3  ;;  %v1470_v9 = vmin.f32 %v1330_v58, 0.0  ;;  %v1333_v59 = vadd.f32 %v2133_v0, %v2642_v60  ;;  %v1324_v10 = vpop.f32.mrb[55].mxu0  ;;  %vm1438_vm5 = vcmp.gt.f32.partialorder %v1330_v58, 0.0 }
 0x212   : > { %v2321_v11 = vpop.eup %2320  ;;  %v1594_v16 = vsel %vm1434_vm1, %v1314_v45, %v1841_v4  ;;  %v1842_v14 = vadd.f32 -1.0, %v2319_v7  ;;  %v1468_v17 = vmin.f32 %v1322_v57, 0.0  ;;  %v1325_v25 = vadd.f32 %v2642_v60, %v1324_v10 }
 0x213   : > { %1626 = vst.msk [vmem:[%s2653_s28 + $0x10] sm:$0xff] %vm1222_vm0, %v1594_v16  ;;  %v1592_v19 = vsel %vm1432_vm2, %v1306_v49, %v1839_v51  ;;  %v1840_v6 = vadd.f32 -1.0, %v2321_v11  ;;  %v1508_v20 = vmul.f32 1.442695, %v1470_v9  ;;  %v1471_v22 = vmin.f32 %v1333_v59, 0.0 }
 0x214   : > { %1624 = vst.msk [vmem:[%s2653_s28] sm:$0xff] %vm1222_vm0, %v1592_v19  ;;  %v1595_v12 = vsel %vm1435_vm3, %v1317_v52, %v1842_v14  ;;  %v1504_v21 = vmul.f32 1.442695, %v1468_v17  ;;  %v1469_v15 = vmin.f32 %v1325_v25, 0.0  ;;  %vm1436_vm6 = vcmp.gt.f32.partialorder %v1322_v57, 0.0 }
 0x215   : > { %1627 = vst.msk [vmem:[%s2653_s28 + $0x18] sm:$0xff] %vm1222_vm0, %v1595_v12  ;;  %v1593_v5 = vsel %vm1433_vm4, %v1309_v54, %v1840_v6  ;;  %2322 = vpow2.f32 %v1508_v20  ;;  %v1510_v26 = vmul.f32 1.442695, %v1471_v22  ;;  %vm1439_vm7 = vcmp.gt.f32.partialorder %v1333_v59, 0.0 }
 0x216   : > { %1625 = vst.msk [vmem:[%s2653_s28 + $0x8] sm:$0xff] %vm1222_vm0, %v1593_v5  ;;  %2324 = vpow2.f32 %v1504_v21  ;;  %v1506_v27 = vmul.f32 1.442695, %v1469_v15  ;;  %vm1437_vm8 = vcmp.gt.f32.partialorder %v1325_v25, 0.0 }
 0x217   : > { %2326 = vpow2.f32 %v1510_v26 }
 0x218   : > { %2328 = vpow2.f32 %v1506_v27 }
 0x21e   : > { %v2136_v28 = vpop.f32.mrb[56].mxu0 }
 0x21f   : > { %v2323_v29 = vpop.eup %2322  ;;  %v1346_v31 = vadd.f32 %v2136_v28, %v2642_v60  ;;  %v1337_v38 = vpop.f32.mrb[57].mxu0 }
 0x220   : > { %v2325_v32 = vpop.eup %2324  ;;  %v1845_v41 = vadd.f32 -1.0, %v2323_v29  ;;  %v1338_v34 = vadd.f32 %v2642_v60, %v1337_v38  ;;  %v2137_v18 = vpop.f32.mrb[58].mxu0 }
 0x221   : > { %v1843_v35 = vadd.f32 -1.0, %v2325_v32  ;;  %v1474_v24 = vmin.f32 %v1346_v31, 0.0  ;;  %v1349_v36 = vadd.f32 %v2137_v18, %v2642_v60  ;;  %v1340_v37 = vpop.f32.mrb[59].mxu0  ;;  %v2327_v48 = vpop.eup %2326  ;;  %vm1442_vm9 = vcmp.gt.f32.partialorder %v1346_v31, 0.0 }
 0x222   : > { %v1598_v42 = vsel %vm1438_vm5, %v1330_v58, %v1845_v41  ;;  %v1472_v53 = vmin.f32 %v1338_v34, 0.0  ;;  %v1341_v23 = vadd.f32 %v2642_v60, %v1340_v37  ;;  %v1846_v30 = vadd.f32 -1.0, %v2327_v48  ;;  %v2329_v1 = vpop.eup %2328 }
 0x223   : > { %1630 = vst.msk [vmem:[%s2653_s28 + $0x30] sm:$0xff] %vm1222_vm0, %v1598_v42  ;;  %v1596_v43 = vsel %vm1436_vm6, %v1322_v57, %v1843_v35  ;;  %v1516_v44 = vmul.f32 1.442695, %v1474_v24  ;;  %v1475_v46 = vmin.f32 %v1349_v36, 0.0  ;;  %v1844_v8 = vadd.f32 -1.0, %v2329_v1 }
 0x224   : > { %1628 = vst.msk [vmem:[%s2653_s28 + $0x20] sm:$0xff] %vm1222_vm0, %v1596_v43  ;;  %v1512_v45 = vmul.f32 1.442695, %v1472_v53  ;;  %v1473_v49 = vmin.f32 %v1341_v23, 0.0  ;;  %v1599_v50 = vsel %vm1439_vm7, %v1333_v59, %v1846_v30  ;;  %vm1440_vm10 = vcmp.gt.f32.partialorder %v1338_v34, 0.0 }
 0x225   : > { %2330 = vpow2.f32 %v1516_v44  ;;  %1631 = vst.msk [vmem:[%s2653_s28 + $0x38] sm:$0xff] %vm1222_vm0, %v1599_v50  ;;  %v1518_v52 = vmul.f32 1.442695, %v1475_v46  ;;  %v1597_v33 = vsel %vm1437_vm8, %v1325_v25, %v1844_v8  ;;  %vm1443_vm11 = vcmp.gt.f32.partialorder %v1349_v36, 0.0 }
 0x226   : > { %2332 = vpow2.f32 %v1512_v45  ;;  %v1514_v13 = vmul.f32 1.442695, %v1473_v49  ;;  %1629 = vst.msk [vmem:[%s2653_s28 + $0x28] sm:$0xff] %vm1222_vm0, %v1597_v33  ;;  %vm1441_vm12 = vcmp.gt.f32.partialorder %v1341_v23, 0.0 }
 0x227   : > { %2334 = vpow2.f32 %v1518_v52 }
 0x228   : > { %2336 = vpow2.f32 %v1514_v13 }
 0x22e   : > { %v2140_v54 = vpop.f32.mrb[60].mxu0 }
 0x22f   : > { %v2331_v40 = vpop.eup %2330  ;;  %v1362_v55 = vadd.f32 %v2140_v54, %v2642_v60  ;;  %v1353_v56 = vpop.f32.mrb[61].mxu0 }
 0x230   : > { %v2333_v39 = vpop.eup %2332  ;;  %v1849_v47 = vadd.f32 -1.0, %v2331_v40  ;;  %v1354_v61 = vadd.f32 %v2642_v60, %v1353_v56  ;;  %v2141_v62 = vpop.f32.mrb[62].mxu0 }
 0x231   : > { %v1847_v63 = vadd.f32 -1.0, %v2333_v39  ;;  %v1478_v58 = vmin.f32 %v1362_v55, 0.0  ;;  %v1365_v2 = vadd.f32 %v2141_v62, %v2642_v60  ;;  %v1356_v3 = vpop.f32.mrb[63].mxu0  ;;  %v2335_v4 = vpop.eup %2334  ;;  %vm1446_vm13 = vcmp.gt.f32.partialorder %v1362_v55, 0.0 }
 0x232   : > { %v1602_v57 = vsel %vm1442_vm9, %v1346_v31, %v1849_v47  ;;  %v1476_v0 = vmin.f32 %v1354_v61, 0.0  ;;  %v1357_v7 = vadd.f32 %v2642_v60, %v1356_v3  ;;  %v2337_v51 = vpop.eup %2336  ;;  %v1850_v59 = vadd.f32 -1.0, %v2335_v4 }
 0x233   : > { %1634 = vst.msk [vmem:[%s2653_s28 + $0x50] sm:$0xff] %vm1222_vm0, %v1602_v57  ;;  %v1600_v9 = vsel %vm1440_vm10, %v1338_v34, %v1847_v63  ;;  %v1524_v10 = vmul.f32 1.442695, %v1478_v58  ;;  %v1848_v11 = vadd.f32 -1.0, %v2337_v51  ;;  %v1479_v14 = vmin.f32 %v1365_v2, 0.0 }
 0x234   : > { %1632 = vst.msk [vmem:[%s2653_s28 + $0x40] sm:$0xff] %vm1222_vm0, %v1600_v9  ;;  %v1520_v16 = vmul.f32 1.442695, %v1476_v0  ;;  %v1603_v17 = vsel %vm1443_vm11, %v1349_v36, %v1850_v59  ;;  %v1477_v19 = vmin.f32 %v1357_v7, 0.0  ;;  %vm1444_vm14 = vcmp.gt.f32.partialorder %v1354_v61, 0.0 }
 0x235   : > { %2338 = vpow2.f32 %v1524_v10  ;;  %1635 = vst.msk [vmem:[%s2653_s28 + $0x58] sm:$0xff] %vm1222_vm0, %v1603_v17  ;;  %v1601_v6 = vsel %vm1441_vm12, %v1341_v23, %v1848_v11  ;;  %v1526_v20 = vmul.f32 1.442695, %v1479_v14  ;;  %vm1447_vm15 = vcmp.gt.f32.partialorder %v1365_v2, 0.0 }
 0x236   : > { %2340 = vpow2.f32 %v1520_v16  ;;  %1633 = vst.msk [vmem:[%s2653_s28 + $0x48] sm:$0xff] %vm1222_vm0, %v1601_v6  ;;  %v1522_v12 = vmul.f32 1.442695, %v1477_v19  ;;  %vm1445_vm1 = vcmp.gt.f32.partialorder %v1357_v7, 0.0 }
 0x237   : > { %2342 = vpow2.f32 %v1526_v20 }
 0x238   : > { %2344 = vpow2.f32 %v1522_v12 }
 0x23e   : > { %v2144_v21 = vpop.f32.mrb[64].mxu0 }
 0x23f   : > { %v2339_v22 = vpop.eup %2338  ;;  %v1378_v25 = vadd.f32 %v2144_v21, %v2642_v60  ;;  %v1369_v5 = vpop.f32.mrb[65].mxu0 }
 0x240   : > { %v2341_v26 = vpop.eup %2340  ;;  %v1853_v15 = vadd.f32 -1.0, %v2339_v22  ;;  %v1370_v27 = vadd.f32 %v2642_v60, %v1369_v5  ;;  %v2145_v28 = vpop.f32.mrb[66].mxu0 }
 0x241   : > { %v1851_v29 = vadd.f32 -1.0, %v2341_v26  ;;  %v1482_v31 = vmin.f32 %v1378_v25, 0.0  ;;  %v1381_v38 = vadd.f32 %v2145_v28, %v2642_v60  ;;  %v1372_v32 = vpop.f32.mrb[67].mxu0  ;;  %v2343_v41 = vpop.eup %2342  ;;  %vm1450_vm2 = vcmp.gt.f32.partialorder %v1378_v25, 0.0 }
 0x242   : > { %v1606_v34 = vsel %vm1446_vm13, %v1362_v55, %v1853_v15  ;;  %v1480_v18 = vmin.f32 %v1370_v27, 0.0  ;;  %v1373_v35 = vadd.f32 %v2642_v60, %v1372_v32  ;;  %v2345_v24 = vpop.eup %2344  ;;  %v1854_v37 = vadd.f32 -1.0, %v2343_v41 }
 0x243   : > { %1638 = vst.msk [vmem:[%s2653_s28 + $0x70] sm:$0xff] %vm1222_vm0, %v1606_v34  ;;  %v1604_v36 = vsel %vm1444_vm14, %v1354_v61, %v1851_v29  ;;  %v1532_v48 = vmul.f32 1.442695, %v1482_v31  ;;  %v1852_v42 = vadd.f32 -1.0, %v2345_v24  ;;  %v1483_v23 = vmin.f32 %v1381_v38, 0.0 }
 0x244   : > { %1636 = vst.msk [vmem:[%s2653_s28 + $0x60] sm:$0xff] %vm1222_vm0, %v1604_v36  ;;  %v1528_v53 = vmul.f32 1.442695, %v1480_v18  ;;  %v1607_v43 = vsel %vm1447_vm15, %v1365_v2, %v1854_v37  ;;  %v1481_v30 = vmin.f32 %v1373_v35, 0.0  ;;  %vm1448_vm3 = vcmp.gt.f32.partialorder %v1370_v27, 0.0 }
 0x245   : > { %2346 = vpow2.f32 %v1532_v48  ;;  %1639 = vst.msk [vmem:[%s2653_s28 + $0x78] sm:$0xff] %vm1222_vm0, %v1607_v43  ;;  %v1605_v44 = vsel %vm1445_vm1, %v1357_v7, %v1852_v42  ;;  %v1534_v1 = vmul.f32 1.442695, %v1483_v23  ;;  %vm1451_vm4 = vcmp.gt.f32.partialorder %v1381_v38, 0.0 }
 0x246   : > { %2348 = vpow2.f32 %v1528_v53  ;;  %1637 = vst.msk [vmem:[%s2653_s28 + $0x68] sm:$0xff] %vm1222_vm0, %v1605_v44  ;;  %v1530_v45 = vmul.f32 1.442695, %v1481_v30  ;;  %vm1449_vm5 = vcmp.gt.f32.partialorder %v1373_v35, 0.0 }
 0x247   : > { %2350 = vpow2.f32 %v1534_v1 }
 0x248   : > { %2352 = vpow2.f32 %v1530_v45 }
 0x24e   : > { %v2148_v46 = vpop.f32.mrb[68].mxu0 }
 0x24f   : > { %v2347_v49 = vpop.eup %2346  ;;  %v1394_v50 = vadd.f32 %v2148_v46, %v2642_v60  ;;  %v1385_v8 = vpop.f32.mrb[69].mxu0 }
 0x250   : > { %v2349_v52 = vpop.eup %2348  ;;  %v1857_v13 = vadd.f32 -1.0, %v2347_v49  ;;  %v1386_v33 = vadd.f32 %v2642_v60, %v1385_v8  ;;  %v2149_v54 = vpop.f32.mrb[70].mxu0 }
 0x251   : > { %v1855_v40 = vadd.f32 -1.0, %v2349_v52  ;;  %v1486_v55 = vmin.f32 %v1394_v50, 0.0  ;;  %v1397_v56 = vadd.f32 %v2149_v54, %v2642_v60  ;;  %v1388_v39 = vpop.f32.mrb[71].mxu0  ;;  %v2351_v47 = vpop.eup %2350  ;;  %vm1454_vm6 = vcmp.gt.f32.partialorder %v1394_v50, 0.0 }
 0x252   : > { %v1610_v61 = vsel %vm1450_vm2, %v1378_v25, %v1857_v13  ;;  %v1484_v62 = vmin.f32 %v1386_v33, 0.0  ;;  %v1389_v63 = vadd.f32 %v2642_v60, %v1388_v39  ;;  %v2353_v58 = vpop.eup %2352  ;;  %v1858_v3 = vadd.f32 -1.0, %v2351_v47 }
 0x253   : > { %1642 = vst.msk [vmem:[%s2653_s28 + $0x90] sm:$0xff] %vm1222_vm0, %v1610_v61  ;;  %v1608_v2 = vsel %vm1448_vm3, %v1370_v27, %v1855_v40  ;;  %v1540_v4 = vmul.f32 1.442695, %v1486_v55  ;;  %v1856_v57 = vadd.f32 -1.0, %v2353_v58  ;;  %v1487_v7 = vmin.f32 %v1397_v56, 0.0 }
 0x254   : > { %1640 = vst.msk [vmem:[%s2653_s28 + $0x80] sm:$0xff] %vm1222_vm0, %v1608_v2  ;;  %v1536_v0 = vmul.f32 1.442695, %v1484_v62  ;;  %v1611_v51 = vsel %vm1451_vm4, %v1381_v38, %v1858_v3  ;;  %v1485_v9 = vmin.f32 %v1389_v63, 0.0  ;;  %vm1452_vm7 = vcmp.gt.f32.partialorder %v1386_v33, 0.0 }
 0x255   : > { %2354 = vpow2.f32 %v1540_v4  ;;  %1643 = vst.msk [vmem:[%s2653_s28 + $0x98] sm:$0xff] %vm1222_vm0, %v1611_v51  ;;  %v1609_v59 = vsel %vm1449_vm5, %v1373_v35, %v1856_v57  ;;  %v1542_v10 = vmul.f32 1.442695, %v1487_v7  ;;  %vm1455_vm8 = vcmp.gt.f32.partialorder %v1397_v56, 0.0 }
 0x256   : > { %2356 = vpow2.f32 %v1536_v0  ;;  %1641 = vst.msk [vmem:[%s2653_s28 + $0x88] sm:$0xff] %vm1222_vm0, %v1609_v59  ;;  %v1538_v11 = vmul.f32 1.442695, %v1485_v9  ;;  %vm1453_vm9 = vcmp.gt.f32.partialorder %v1389_v63, 0.0 }
 0x257   : > { %2358 = vpow2.f32 %v1542_v10 }
 0x258   : > { %2360 = vpow2.f32 %v1538_v11 }
 0x25e   : > { %v2152_v16 = vpop.f32.mrb[72].mxu0 }
 0x25f   : > { %v2355_v14 = vpop.eup %2354  ;;  %v1410_v17 = vadd.f32 %v2152_v16, %v2642_v60  ;;  %v1401_v19 = vpop.f32.mrb[73].mxu0 }
 0x260   : > { %v2357_v6 = vpop.eup %2356  ;;  %v1861_v20 = vadd.f32 -1.0, %v2355_v14  ;;  %v1402_v12 = vadd.f32 %v2642_v60, %v1401_v19  ;;  %v2153_v21 = vpop.f32.mrb[74].mxu0 }
 0x261   : > { %v1859_v22 = vadd.f32 -1.0, %v2357_v6  ;;  %v1490_v25 = vmin.f32 %v1410_v17, 0.0  ;;  %v1413_v5 = vadd.f32 %v2153_v21, %v2642_v60  ;;  %v1404_v26 = vpop.f32.mrb[75].mxu0  ;;  %v2359_v15 = vpop.eup %2358  ;;  %vm1458_vm10 = vcmp.gt.f32.partialorder %v1410_v17, 0.0 }
 0x262   : > { %v1614_v27 = vsel %vm1454_vm6, %v1394_v50, %v1861_v20  ;;  %v1488_v28 = vmin.f32 %v1402_v12, 0.0  ;;  %v1405_v29 = vadd.f32 %v2642_v60, %v1404_v26  ;;  %v2361_v31 = vpop.eup %2360  ;;  %v1862_v32 = vadd.f32 -1.0, %v2359_v15 }
 0x263   : > { %1646 = vst.msk [vmem:[%s2653_s28 + $0xb0] sm:$0xff] %vm1222_vm0, %v1614_v27  ;;  %v1612_v38 = vsel %vm1452_vm7, %v1386_v33, %v1859_v22  ;;  %v1548_v41 = vmul.f32 1.442695, %v1490_v25  ;;  %v1860_v34 = vadd.f32 -1.0, %v2361_v31  ;;  %v1491_v35 = vmin.f32 %v1413_v5, 0.0 }
 0x264   : > { %1644 = vst.msk [vmem:[%s2653_s28 + $0xa0] sm:$0xff] %vm1222_vm0, %v1612_v38  ;;  %v1544_v18 = vmul.f32 1.442695, %v1488_v28  ;;  %v1615_v24 = vsel %vm1455_vm8, %v1397_v56, %v1862_v32  ;;  %v1489_v36 = vmin.f32 %v1405_v29, 0.0  ;;  %vm1456_vm11 = vcmp.gt.f32.partialorder %v1402_v12, 0.0 }
 0x265   : > { %2362 = vpow2.f32 %v1548_v41  ;;  %1647 = vst.msk [vmem:[%s2653_s28 + $0xb8] sm:$0xff] %vm1222_vm0, %v1615_v24  ;;  %v1613_v37 = vsel %vm1453_vm9, %v1389_v63, %v1860_v34  ;;  %v1550_v48 = vmul.f32 1.442695, %v1491_v35  ;;  %vm1459_vm12 = vcmp.gt.f32.partialorder %v1413_v5, 0.0 }
 0x266   : > { %2364 = vpow2.f32 %v1544_v18  ;;  %1645 = vst.msk [vmem:[%s2653_s28 + $0xa8] sm:$0xff] %vm1222_vm0, %v1613_v37  ;;  %v1546_v42 = vmul.f32 1.442695, %v1489_v36  ;;  %vm1457_vm13 = vcmp.gt.f32.partialorder %v1405_v29, 0.0 }
 0x267   : > { %2366 = vpow2.f32 %v1550_v48 }
 0x268   : > { %2368 = vpow2.f32 %v1546_v42 }
 0x26e   : > { %v2156_v53 = vpop.f32.mrb[76].mxu0 }
 0x26f   : > { %v2363_v23 = vpop.eup %2362  ;;  %v1426_v43 = vadd.f32 %v2156_v53, %v2642_v60  ;;  %v1417_v30 = vpop.f32.mrb[77].mxu0 }
 0x270   : > { %v2365_v44 = vpop.eup %2364  ;;  %v1865_v1 = vadd.f32 -1.0, %v2363_v23  ;;  %v1418_v45 = vadd.f32 %v2642_v60, %v1417_v30  ;;  %v2157_v46 = vpop.f32.mrb[78].mxu0 }
 0x271   : > { %v1863_v49 = vadd.f32 -1.0, %v2365_v44  ;;  %v1494_v50 = vmin.f32 %v1426_v43, 0.0  ;;  %v1429_v8 = vadd.f32 %v2157_v46, %v2642_v60  ;;  %v1420_v52 = vpop.f32.mrb[79].mxu0  ;;  %v2367_v13 = vpop.eup %2366  ;;  %vm1462_vm14 = vcmp.gt.f32.partialorder %v1426_v43, 0.0 }
 0x272   : > { %v1618_v33 = vsel %vm1458_vm10, %v1410_v17, %v1865_v1  ;;  %v1492_v54 = vmin.f32 %v1418_v45, 0.0  ;;  %v1421_v40 = vadd.f32 %v2642_v60, %v1420_v52  ;;  %v2369_v55 = vpop.eup %2368  ;;  %v1866_v39 = vadd.f32 -1.0, %v2367_v13 }
 0x273   : > { %1650 = vst.msk [vmem:[%s2653_s28 + $0xd0] sm:$0xff] %vm1222_vm0, %v1618_v33  ;;  %v1616_v56 = vsel %vm1456_vm11, %v1402_v12, %v1863_v49  ;;  %v1556_v47 = vmul.f32 1.442695, %v1494_v50  ;;  %v1864_v61 = vadd.f32 -1.0, %v2369_v55  ;;  %v1495_v63 = vmin.f32 %v1429_v8, 0.0 }
 0x274   : > { %1648 = vst.msk [vmem:[%s2653_s28 + $0xc0] sm:$0xff] %vm1222_vm0, %v1616_v56  ;;  %v1552_v62 = vmul.f32 1.442695, %v1492_v54  ;;  %v1619_v58 = vsel %vm1459_vm12, %v1413_v5, %v1866_v39  ;;  %v1493_v2 = vmin.f32 %v1421_v40, 0.0  ;;  %vm1460_vm15 = vcmp.gt.f32.partialorder %v1418_v45, 0.0 }
 0x275   : > { %2370 = vpow2.f32 %v1556_v47  ;;  %1651 = vst.msk [vmem:[%s2653_s28 + $0xd8] sm:$0xff] %vm1222_vm0, %v1619_v58  ;;  %v1617_v60 = vsel %vm1457_vm13, %v1405_v29, %v1864_v61  ;;  %v1558_v3 = vmul.f32 1.442695, %v1495_v63  ;;  %vm1463_vm1 = vcmp.gt.f32.partialorder %v1429_v8, 0.0 }
 0x276   : > { %2372 = vpow2.f32 %v1552_v62  ;;  %1649 = vst.msk [vmem:[%s2653_s28 + $0xc8] sm:$0xff] %vm1222_vm0, %v1617_v60  ;;  %v1554_v4 = vmul.f32 1.442695, %v1493_v2  ;;  %vm1461_vm2 = vcmp.gt.f32.partialorder %v1421_v40, 0.0 }
 0x277   : > { %2374 = vpow2.f32 %v1558_v3 }
 0x278   : > { %2376 = vpow2.f32 %v1554_v4 }
 0x27f   : > { %v2371_v57 = vpop.eup %2370 }
 0x280   : > { %v2373_v0 = vpop.eup %2372  ;;  %v1869_v7 = vadd.f32 -1.0, %v2371_v57 }
 0x281   : > { %v1867_v51 = vadd.f32 -1.0, %v2373_v0  ;;  %v2375_v9 = vpop.eup %2374 }
 0x282   : > { %v1622_v59 = vsel %vm1462_vm14, %v1426_v43, %v1869_v7  ;;  %v2377_v10 = vpop.eup %2376  ;;  %v1870_v16 = vadd.f32 -1.0, %v2375_v9 }
 0x283   : > { %1654 = vst.msk [vmem:[%s2653_s28 + $0xf0] sm:$0xff] %vm1222_vm0, %v1622_v59  ;;  %v1620_v11 = vsel %vm1460_vm15, %v1418_v45, %v1867_v51  ;;  %v1868_v14 = vadd.f32 -1.0, %v2377_v10 }
 0x284   : > { %1652 = vst.msk [vmem:[%s2653_s28 + $0xe0] sm:$0xff] %vm1222_vm0, %v1620_v11  ;;  %v1623_v17 = vsel %vm1463_vm1, %v1429_v8, %v1870_v16 }
 0x285   : > { %1655 = vst.msk [vmem:[%s2653_s28 + $0xf8] sm:$0xff] %vm1222_vm0, %v1623_v17  ;;  %v1621_v19 = vsel %vm1461_vm2, %v1421_v40, %v1868_v14 }
 0x286   : > { %1653 = vst.msk [vmem:[%s2653_s28 + $0xe8] sm:$0xff] %vm1222_vm0, %v1621_v19 }
 0x287 PF: > { %s14_s15 = sadd.s32 1, %s2384_s15  }
 0x288   : > { %p11_p4 = scmp.ge.s32.totalorder %s14_s15, 4  }
 0x28a   :  { %13 = sbr.rel (!%p11_p4) target bundleno = 1 (0x1), region = 66 }

// kernel: gcn_net_forward.7
= control target key start
LH: loop header
LB: loop body
LE: loop exit
PB: predicated region body
PF: predicated region fallthrough
CT: control target
= control target key end

     0   :  { %s767_s12 = smov 0   ;;  %s931_s0 = inlined_call_operand.vmem [shape: bf16[512,32], index: 0, kind: input, shape index: {}]   ;;  %s932_s1 = inlined_call_operand.vmem [shape: bf16[32,8], index: 1, kind: input, shape index: {}]   ;;  %s933_s2 = inlined_call_operand.vmem [shape: f32[1,8], index: 2, kind: input, shape index: {}]   ;;  %s934_s3 = inlined_call_operand.vmem [shape: f32[512,8], index: 3, kind: output, shape index: {}]  }
   0x1 LB: > { %s609_s13 = sadd.s32 4294967295, %s745_s12   ;;  %p613_p0 = scmp.ge.s32.totalorder %s745_s12, 1  ;;  %s745_s12 = sphi %s767_s12, %s13_s12  }
   0x2   : > { %p138_p1 = scmp.lt.s32.totalorder %s745_s12, 3 }
   0x4   : > { %p139_p2 = pnand %p613_p0, %p138_p1 }
   0x5   : > { %v721_v0 = vld [vmem:[%s932_s1] sm:$0xff] (!%p139_p2)   ;;  %s614_s16 = sshll.u32 (!%p139_p2), %s609_s13, 5  ;;  %v722_v1 = vld [vmem:[%s932_s1 + $0x8] sm:$0xff] (!%p139_p2)   ;;  %vm310_vm0 = vcmask (!%p139_p2), 261120   ;;  %vm520_vm1 = vcmask (!%p139_p2), 64512  }
   0x6   : > { %142 = sbr.rel (%p139_p2) target bundleno = 261 (0x105), region = 32  ;;  %p163_p3 = scmp.lt.s32.totalorder (!%p139_p2), %s614_s16, 63  ;;  %673 = vmatprep.subr.bf16.mxu0 (!%p139_p2), %v721_v0  ;;  %709 = vmatprep.subr.bf16.mxu1 (!%p139_p2), %v721_v0  ;;  %v825_v18 = vld [vmem:[%s933_s2] ss:$0 sm:$0xff] (!%p139_p2) }
   0x7   : > { %674 = vmatpush3.bf16.msra.mxu0 (!%p139_p2), %v721_v0  ;;  %711 = vmatpush3.bf16.msra.mxu1 (!%p139_p2), %v721_v0 }
   0x8   : > { %675 = vmatprep.subr.bf16.mxu0 (!%p139_p2), %v722_v1  ;;  %710 = vmatprep.subr.bf16.mxu1 (!%p139_p2), %v722_v1 }
   0xb   : > { %676 = vmatpush3.bf16.msra.mxu0 (!%p139_p2), %v722_v1  ;;  %712 = vmatpush3.bf16.msra.mxu1 (!%p139_p2), %v722_v1 }
   0xd   : > { %s936_s16 = smov (!%p163_p3, %s614_s16), 63 }
   0xe   : > { %s615_s19 = sshll.u32 %s936_s16, 2  ;;  %s617_s23 = sshll.u32 %s936_s16, 3 }
   0xf   : > { %s787_s22 = scalar_lea.vmem %s931_s0, %s615_s19  ;;  %s830_s28 = scalar_lea.vmem %s934_s3, %s617_s23 }
  0x10   : > { %v723_v2 = vld [vmem:[%s787_s22] sm:$0xff]   ;;  %v725_v4 = vld [vmem:[%s787_s22 + $0x8] sm:$0xff]   ;;  %v727_v6 = vld [vmem:[%s787_s22 + $0x10] sm:$0xff]  }
  0x11   : > { %v724_v3 = vld [vmem:[%s787_s22 + $0x40] sm:$0xff]   ;;  %677 = vmatprep.mubr.msk.bf16.mxu0 %vm310_vm0, %v723_v2  ;;  %v726_v5 = vld [vmem:[%s787_s22 + $0x48] sm:$0xff]   ;;  %v728_v7 = vld [vmem:[%s787_s22 + $0x50] sm:$0xff]  }
  0x12   : > { %693 = vmatprep.mubr.msk.bf16.mxu1 %vm310_vm0, %v724_v3  ;;  %678 = vmatmul.mubr.msk.bf16.vlgmr.msra.gmra.mrb[0].mxu0 %vm310_vm0, %v725_v4  ;;  %v729_v8 = vld [vmem:[%s787_s22 + $0x18] sm:$0xff]   ;;  %v731_v10 = vld [vmem:[%s787_s22 + $0x20] sm:$0xff]   ;;  %v733_v12 = vld [vmem:[%s787_s22 + $0x28] sm:$0xff]  }
  0x13   : > { %694 = vmatmul.mubr.msk.bf16.vlgmr.msra.gmra.mrb[0].mxu1 %vm310_vm0, %v726_v5  ;;  %681 = vmatprep.mubr.msk.bf16.mxu0 %vm310_vm0, %v727_v6  ;;  %v730_v9 = vld [vmem:[%s787_s22 + $0x58] sm:$0xff]   ;;  %v732_v11 = vld [vmem:[%s787_s22 + $0x60] sm:$0xff]   ;;  %v734_v13 = vld [vmem:[%s787_s22 + $0x68] sm:$0xff]  }
  0x14   : > { %697 = vmatprep.mubr.msk.bf16.mxu1 %vm310_vm0, %v728_v7  ;;  %v735_v14 = vld [vmem:[%s787_s22 + $0x30] sm:$0xff]   ;;  %v737_v16 = vld [vmem:[%s787_s22 + $0x38] sm:$0xff]  }
  0x15   : > { %v736_v15 = vld [vmem:[%s787_s22 + $0x70] sm:$0xff]   ;;  %v738_v17 = vld [vmem:[%s787_s22 + $0x78] sm:$0xff]  }
  0x1a   : > { %682 = vmatmul.mubr.msk.bf16.gmra.mrb[4].mxu0 %vm310_vm0, %v729_v8 }
  0x1b   : > { %698 = vmatmul.mubr.msk.bf16.gmra.mrb[4].mxu1 %vm310_vm0, %v730_v9  ;;  %685 = vmatprep.mubr.msk.bf16.mxu0 %vm310_vm0, %v731_v10 }
  0x1c   : > { %701 = vmatprep.mubr.msk.bf16.mxu1 %vm310_vm0, %v732_v11 }
  0x22   : > { %686 = vmatmul.mubr.msk.bf16.gmra.mrb[8].mxu0 %vm310_vm0, %v733_v12 }
  0x23   : > { %702 = vmatmul.mubr.msk.bf16.gmra.mrb[8].mxu1 %vm310_vm0, %v734_v13  ;;  %689 = vmatprep.mubr.msk.bf16.mxu0 %vm310_vm0, %v735_v14 }
  0x24   : > { %705 = vmatprep.mubr.msk.bf16.mxu1 %vm310_vm0, %v736_v15 }
  0x2a   : > { %690 = vmatmul.mubr.msk.bf16.gmra.mrb[12].mxu0 %vm310_vm0, %v737_v16 }
  0x2b   : > { %706 = vmatmul.mubr.msk.bf16.gmra.mrb[12].mxu1 %vm310_vm0, %v738_v17 }
  0xe5   : > { %v679_v19 = vpop.f32.mrb[0].mxu0 }
  0xe6   : > { %v402_v20 = vadd.f32 %v679_v19, %v825_v18  ;;  %v695_v21 = vpop.f32.mrb[0].mxu1  ;;  %v393_v22 = vpop.f32.mrb[1].mxu0 }
  0xe7   : > { %v466_v23 = vadd.f32 %v695_v21, %v825_v18  ;;  %v394_v24 = vadd.f32 %v825_v18, %v393_v22  ;;  %v457_v25 = vpop.f32.mrb[1].mxu1  ;;  %v680_v26 = vpop.f32.mrb[2].mxu0 }
  0xe8   : > { %523 = vst.msk [vmem:[%s830_s28 + $0x10] sm:$0xff] %vm520_vm1, %v402_v20  ;;  %v458_v27 = vadd.f32 %v825_v18, %v457_v25  ;;  %v405_v28 = vadd.f32 %v680_v26, %v825_v18  ;;  %v696_v29 = vpop.f32.mrb[2].mxu1  ;;  %v396_v30 = vpop.f32.mrb[3].mxu0 }
  0xe9   : > { %539 = vst.msk [vmem:[%s830_s28 + $0x90] sm:$0xff] %vm520_vm1, %v466_v23  ;;  %521 = vst.msk [vmem:[%s830_s28] sm:$0xff] %vm520_vm1, %v394_v24  ;;  %v469_v31 = vadd.f32 %v696_v29, %v825_v18  ;;  %v397_v32 = vadd.f32 %v825_v18, %v396_v30  ;;  %v460_v33 = vpop.f32.mrb[3].mxu1 }
  0xea   : > { %537 = vst.msk [vmem:[%s830_s28 + $0x80] sm:$0xff] %vm520_vm1, %v458_v27  ;;  %524 = vst.msk [vmem:[%s830_s28 + $0x18] sm:$0xff] %vm520_vm1, %v405_v28  ;;  %v461_v34 = vadd.f32 %v825_v18, %v460_v33 }
  0xeb   : > { %540 = vst.msk [vmem:[%s830_s28 + $0x98] sm:$0xff] %vm520_vm1, %v469_v31  ;;  %522 = vst.msk [vmem:[%s830_s28 + $0x8] sm:$0xff] %vm520_vm1, %v397_v32 }
  0xec   : > { %538 = vst.msk [vmem:[%s830_s28 + $0x88] sm:$0xff] %vm520_vm1, %v461_v34 }
  0xed   : > { %v683_v35 = vpop.f32.mrb[4].mxu0 }
  0xee   : > { %v418_v36 = vadd.f32 %v683_v35, %v825_v18  ;;  %v699_v37 = vpop.f32.mrb[4].mxu1  ;;  %v409_v38 = vpop.f32.mrb[5].mxu0 }
  0xef   : > { %v482_v39 = vadd.f32 %v699_v37, %v825_v18  ;;  %v410_v40 = vadd.f32 %v825_v18, %v409_v38  ;;  %v473_v41 = vpop.f32.mrb[5].mxu1  ;;  %v684_v42 = vpop.f32.mrb[6].mxu0 }
  0xf0   : > { %527 = vst.msk [vmem:[%s830_s28 + $0x30] sm:$0xff] %vm520_vm1, %v418_v36  ;;  %v474_v43 = vadd.f32 %v825_v18, %v473_v41  ;;  %v421_v44 = vadd.f32 %v684_v42, %v825_v18  ;;  %v700_v45 = vpop.f32.mrb[6].mxu1  ;;  %v412_v46 = vpop.f32.mrb[7].mxu0 }
  0xf1   : > { %543 = vst.msk [vmem:[%s830_s28 + $0xb0] sm:$0xff] %vm520_vm1, %v482_v39  ;;  %525 = vst.msk [vmem:[%s830_s28 + $0x20] sm:$0xff] %vm520_vm1, %v410_v40  ;;  %v485_v47 = vadd.f32 %v700_v45, %v825_v18  ;;  %v413_v48 = vadd.f32 %v825_v18, %v412_v46  ;;  %v476_v49 = vpop.f32.mrb[7].mxu1 }
  0xf2   : > { %541 = vst.msk [vmem:[%s830_s28 + $0xa0] sm:$0xff] %vm520_vm1, %v474_v43  ;;  %528 = vst.msk [vmem:[%s830_s28 + $0x38] sm:$0xff] %vm520_vm1, %v421_v44  ;;  %v477_v50 = vadd.f32 %v825_v18, %v476_v49 }
  0xf3   : > { %544 = vst.msk [vmem:[%s830_s28 + $0xb8] sm:$0xff] %vm520_vm1, %v485_v47  ;;  %526 = vst.msk [vmem:[%s830_s28 + $0x28] sm:$0xff] %vm520_vm1, %v413_v48 }
  0xf4   : > { %542 = vst.msk [vmem:[%s830_s28 + $0xa8] sm:$0xff] %vm520_vm1, %v477_v50 }
  0xf5   : > { %v687_v51 = vpop.f32.mrb[8].mxu0 }
  0xf6   : > { %v434_v52 = vadd.f32 %v687_v51, %v825_v18  ;;  %v703_v53 = vpop.f32.mrb[8].mxu1  ;;  %v425_v54 = vpop.f32.mrb[9].mxu0 }
  0xf7   : > { %v498_v55 = vadd.f32 %v703_v53, %v825_v18  ;;  %v426_v56 = vadd.f32 %v825_v18, %v425_v54  ;;  %v489_v57 = vpop.f32.mrb[9].mxu1  ;;  %v688_v58 = vpop.f32.mrb[10].mxu0 }
  0xf8   : > { %531 = vst.msk [vmem:[%s830_s28 + $0x50] sm:$0xff] %vm520_vm1, %v434_v52  ;;  %v490_v59 = vadd.f32 %v825_v18, %v489_v57  ;;  %v437_v60 = vadd.f32 %v688_v58, %v825_v18  ;;  %v704_v61 = vpop.f32.mrb[10].mxu1  ;;  %v428_v62 = vpop.f32.mrb[11].mxu0 }
  0xf9   : > { %547 = vst.msk [vmem:[%s830_s28 + $0xd0] sm:$0xff] %vm520_vm1, %v498_v55  ;;  %529 = vst.msk [vmem:[%s830_s28 + $0x40] sm:$0xff] %vm520_vm1, %v426_v56  ;;  %v501_v63 = vadd.f32 %v704_v61, %v825_v18  ;;  %v429_v0 = vadd.f32 %v825_v18, %v428_v62  ;;  %v492_v1 = vpop.f32.mrb[11].mxu1 }
  0xfa   : > { %545 = vst.msk [vmem:[%s830_s28 + $0xc0] sm:$0xff] %vm520_vm1, %v490_v59  ;;  %532 = vst.msk [vmem:[%s830_s28 + $0x58] sm:$0xff] %vm520_vm1, %v437_v60  ;;  %v493_v2 = vadd.f32 %v825_v18, %v492_v1 }
  0xfb   : > { %548 = vst.msk [vmem:[%s830_s28 + $0xd8] sm:$0xff] %vm520_vm1, %v501_v63  ;;  %530 = vst.msk [vmem:[%s830_s28 + $0x48] sm:$0xff] %vm520_vm1, %v429_v0 }
  0xfc   : > { %546 = vst.msk [vmem:[%s830_s28 + $0xc8] sm:$0xff] %vm520_vm1, %v493_v2 }
  0xfd   : > { %v691_v3 = vpop.f32.mrb[12].mxu0 }
  0xfe   : > { %v450_v4 = vadd.f32 %v691_v3, %v825_v18  ;;  %v707_v5 = vpop.f32.mrb[12].mxu1  ;;  %v441_v6 = vpop.f32.mrb[13].mxu0 }
  0xff   : > { %v514_v7 = vadd.f32 %v707_v5, %v825_v18  ;;  %v442_v8 = vadd.f32 %v825_v18, %v441_v6  ;;  %v505_v9 = vpop.f32.mrb[13].mxu1  ;;  %v692_v10 = vpop.f32.mrb[14].mxu0 }
 0x100   : > { %535 = vst.msk [vmem:[%s830_s28 + $0x70] sm:$0xff] %vm520_vm1, %v450_v4  ;;  %v506_v11 = vadd.f32 %v825_v18, %v505_v9  ;;  %v453_v12 = vadd.f32 %v692_v10, %v825_v18  ;;  %v708_v13 = vpop.f32.mrb[14].mxu1  ;;  %v444_v14 = vpop.f32.mrb[15].mxu0 }
 0x101   : > { %551 = vst.msk [vmem:[%s830_s28 + $0xf0] sm:$0xff] %vm520_vm1, %v514_v7  ;;  %533 = vst.msk [vmem:[%s830_s28 + $0x60] sm:$0xff] %vm520_vm1, %v442_v8  ;;  %v517_v15 = vadd.f32 %v708_v13, %v825_v18  ;;  %v445_v16 = vadd.f32 %v825_v18, %v444_v14  ;;  %v508_v17 = vpop.f32.mrb[15].mxu1 }
 0x102   : > { %549 = vst.msk [vmem:[%s830_s28 + $0xe0] sm:$0xff] %vm520_vm1, %v506_v11  ;;  %536 = vst.msk [vmem:[%s830_s28 + $0x78] sm:$0xff] %vm520_vm1, %v453_v12  ;;  %v509_v19 = vadd.f32 %v825_v18, %v508_v17 }
 0x103   : > { %552 = vst.msk [vmem:[%s830_s28 + $0xf8] sm:$0xff] %vm520_vm1, %v517_v15  ;;  %534 = vst.msk [vmem:[%s830_s28 + $0x68] sm:$0xff] %vm520_vm1, %v445_v16 }
 0x104   : > { %550 = vst.msk [vmem:[%s830_s28 + $0xe8] sm:$0xff] %vm520_vm1, %v509_v19 }
 0x105 PF: > { %s13_s12 = sadd.s32 1, %s745_s12  }
 0x106   : > { %p10_p4 = scmp.ge.s32.totalorder %s13_s12, 4  }
 0x108   :  { %12 = sbr.rel (!%p10_p4) target bundleno = 1 (0x1), region = 62 }

// kernel: gcn_net_forward.6
= control target key start
LH: loop header
LB: loop body
LE: loop exit
PB: predicated region body
PF: predicated region fallthrough
CT: control target
= control target key end

     0   :  { %s2124_s15 = smov 0   ;;  %s2462_s0 = inlined_call_operand.vmem [shape: bf16[512,512], index: 0, kind: input, shape index: {}]   ;;  %s2463_s1 = inlined_call_operand.vmem [shape: bf16[512,64], index: 1, kind: input, shape index: {}]   ;;  %s2464_s2 = inlined_call_operand.vmem [shape: bf16[64,32], index: 2, kind: input, shape index: {}]   ;;  %s2465_s3 = inlined_call_operand.vmem [shape: f32[1,32], index: 3, kind: input, shape index: {}]   ;;  %s2466_s4 = inlined_call_operand.vmem [shape: f32[512,32], index: 4, kind: output, shape index: {}]  }
   0x1 LB: > { %s1521_s16 = sadd.s32 4294967295, %s2097_s15   ;;  %p1525_p0 = scmp.ge.s32.totalorder %s2097_s15, 1  ;;  %s2097_s15 = sphi %s2124_s15, %s14_s15  }
   0x2   : > { %p164_p1 = scmp.lt.s32.totalorder %s2097_s15, 3 }
   0x4   : > { %p165_p2 = pnand %p1525_p0, %p164_p1 }
   0x5   : > { %v1959_v0 = vld [vmem:[%s2463_s1 + $0x40] sm:$0xff] (!%p165_p2)   ;;  %s1526_s19 = sshll.u32 (!%p165_p2), %s1521_s16, 5  ;;  %v1961_v2 = vld [vmem:[%s2463_s1 + $0x48] sm:$0xff] (!%p165_p2)   ;;  %v1963_v4 = vld [vmem:[%s2463_s1 + $0x50] sm:$0xff] (!%p165_p2)   ;;  %vm1222_vm0 = vcmask (!%p165_p2), 523264   ;;  %vm1432_vm1 = vcmask (!%p165_p2), 261120  }
   0x6   : > { %168 = sbr.rel (%p165_p2) target bundleno = 629 (0x275), region = 36  ;;  %v1960_v1 = vld [vmem:[%s2463_s1] sm:$0xff] (!%p165_p2)   ;;  %1935 = vmatprep.subr.bf16.mxu1 (!%p165_p2), %v1959_v0  ;;  %1651 = vmatprep.subr.bf16.mxu0 (!%p165_p2), %v1959_v0  ;;  %v1962_v3 = vld [vmem:[%s2463_s1 + $0x8] sm:$0xff] (!%p165_p2)   ;;  %p192_p3 = scmp.lt.s32.totalorder (!%p165_p2), %s1526_s19, 63  ;;  %v1964_v5 = vld [vmem:[%s2463_s1 + $0x10] sm:$0xff] (!%p165_p2)  }
   0x7   : > { %1943 = vmatpush3.bf16.msra.mxu1 (!%p165_p2), %v1960_v1  ;;  %1652 = vmatpush3.bf16.msra.mxu0 (!%p165_p2), %v1960_v1  ;;  %v1965_v6 = vld [vmem:[%s2463_s1 + $0x58] sm:$0xff] (!%p165_p2)   ;;  %v1967_v8 = vld [vmem:[%s2463_s1 + $0x60] sm:$0xff] (!%p165_p2)   ;;  %v1969_v10 = vld [vmem:[%s2463_s1 + $0x68] sm:$0xff] (!%p165_p2)  }
   0x8   : > { %1936 = vmatprep.subr.bf16.mxu1 (!%p165_p2), %v1961_v2  ;;  %1653 = vmatprep.subr.bf16.mxu0 (!%p165_p2), %v1961_v2  ;;  %v1966_v7 = vld [vmem:[%s2463_s1 + $0x18] sm:$0xff] (!%p165_p2)   ;;  %v1968_v9 = vld [vmem:[%s2463_s1 + $0x20] sm:$0xff] (!%p165_p2)   ;;  %v1970_v12 = vld [vmem:[%s2463_s1 + $0x28] sm:$0xff] (!%p165_p2)  }
   0x9   : > { %v1971_v13 = vld [vmem:[%s2463_s1 + $0x70] sm:$0xff] (!%p165_p2)   ;;  %v1973_v15 = vld [vmem:[%s2463_s1 + $0x78] sm:$0xff] (!%p165_p2)   ;;  %v1978_v17 = vld [vmem:[%s2463_s1 + $0xc0] sm:$0xff] (!%p165_p2)  }
   0xa   : > { %v1972_v14 = vld [vmem:[%s2463_s1 + $0x30] sm:$0xff] (!%p165_p2)   ;;  %v1974_v16 = vld [vmem:[%s2463_s1 + $0x38] sm:$0xff] (!%p165_p2)   ;;  %v1979_v19 = vld [vmem:[%s2463_s1 + $0x80] sm:$0xff] (!%p165_p2)  }
   0xb   : > { %1944 = vmatpush3.bf16.msra.mxu1 (!%p165_p2), %v1962_v3  ;;  %1654 = vmatpush3.bf16.msra.mxu0 (!%p165_p2), %v1962_v3  ;;  %v1980_v21 = vld [vmem:[%s2463_s1 + $0xc8] sm:$0xff] (!%p165_p2)   ;;  %v1985_v24 = vld [vmem:[%s2463_s1 + $0xd0] sm:$0xff] (!%p165_p2)   ;;  %v1987_v28 = vld [vmem:[%s2463_s1 + $0xd8] sm:$0xff] (!%p165_p2)  }
   0xc   : > { %1937 = vmatprep.subr.bf16.mxu1 (!%p165_p2), %v1963_v4  ;;  %1655 = vmatprep.subr.bf16.mxu0 (!%p165_p2), %v1963_v4  ;;  %v1981_v22 = vld [vmem:[%s2463_s1 + $0x88] sm:$0xff] (!%p165_p2)   ;;  %v1986_v25 = vld [vmem:[%s2463_s1 + $0x90] sm:$0xff] (!%p165_p2)   ;;  %v1988_v31 = vld [vmem:[%s2463_s1 + $0x98] sm:$0xff] (!%p165_p2)  }
   0xd   : > { %s2468_s19 = smov (!%p192_p3, %s1526_s19), 63  ;;  %v1992_v33 = vld [vmem:[%s2463_s1 + $0xe0] sm:$0xff]   ;;  %v1994_v38 = vld [vmem:[%s2463_s1 + $0xe8] sm:$0xff]   ;;  %v1999_v41 = vld [vmem:[%s2463_s1 + $0xf0] sm:$0xff]  }
   0xe   : > { %s1650_s8 = sshll.u32 %s2468_s19, 4  ;;  %v1993_v36 = vld [vmem:[%s2463_s1 + $0xa0] sm:$0xff]   ;;  %v1995_v39 = vld [vmem:[%s2463_s1 + $0xa8] sm:$0xff]   ;;  %v2000_v44 = vld [vmem:[%s2463_s1 + $0xb0] sm:$0xff]  }
   0xf   : > { %1945 = vmatpush3.bf16.msra.mxu1 %v1964_v5  ;;  %1656 = vmatpush3.bf16.msra.mxu0 %v1964_v5  ;;  %s2165_s13 = scalar_lea.vmem %s2462_s0, %s1650_s8  ;;  %v2001_v46 = vld [vmem:[%s2463_s1 + $0xf8] sm:$0xff]  }
  0x10   : > { %1938 = vmatprep.subr.bf16.mxu1 %v1965_v6  ;;  %1657 = vmatprep.subr.bf16.mxu0 %v1965_v6  ;;  %v1977_v11 = vld [vmem:[%s2165_s13 + $0x184] ss:$16 sps:$4 sm:$0xff]   ;;  %v1975_v18 = vld [vmem:[%s2165_s13 + $0x180] ss:$16 sps:$4 sm:$0xff]   ;;  %v2008_v45 = vld [vmem:[%s2165_s13 + $0xc] ss:$16 sps:$4 sm:$0xff]  }
  0x11   : > { %973 = vmatprep.mubr.bf16.mxu1 %v1977_v11  ;;  %v1982_v20 = vld [vmem:[%s2165_s13 + $0x1a4] ss:$16 sps:$4 sm:$0xff]   ;;  %v1984_v23 = vld [vmem:[%s2165_s13 + $0x1a0] ss:$16 sps:$4 sm:$0xff]   ;;  %v2002_v47 = vld [vmem:[%s2463_s1 + $0xb8] sm:$0xff]  }
  0x12   : > { %v2003_v26 = vld [vmem:[%s2165_s13] ss:$16 sps:$4 sm:$0xff]   ;;  %v2005_v27 = vld [vmem:[%s2165_s13 + $0x4] ss:$16 sps:$4 sm:$0xff]   ;;  %v2006_v48 = vld [vmem:[%s2165_s13 + $0x8] ss:$16 sps:$4 sm:$0xff]  }
  0x13   : > { %1946 = vmatpush3.bf16.msra.mxu1 %v1966_v7  ;;  %1658 = vmatpush3.bf16.msra.mxu0 %v1966_v7  ;;  %v1989_v29 = vld [vmem:[%s2165_s13 + $0x1c4] ss:$16 sps:$4 sm:$0xff]   ;;  %v1991_v32 = vld [vmem:[%s2165_s13 + $0x1c0] ss:$16 sps:$4 sm:$0xff]   ;;  %v2011_v51 = vld [vmem:[%s2165_s13 + $0x2c] ss:$16 sps:$4 sm:$0xff]  }
  0x14   : > { %1939 = vmatprep.subr.bf16.mxu1 %v1967_v8  ;;  %1659 = vmatprep.subr.bf16.mxu0 %v1967_v8  ;;  %v2009_v30 = vld [vmem:[%s2165_s13 + $0x24] ss:$16 sps:$4 sm:$0xff]   ;;  %v2013_v34 = vld [vmem:[%s2165_s13 + $0x20] ss:$16 sps:$4 sm:$0xff]   ;;  %v2014_v53 = vld [vmem:[%s2165_s13 + $0x28] ss:$16 sps:$4 sm:$0xff]  }
  0x15   : > { %877 = vmatprep.mubr.bf16.mxu0 %v2005_v27  ;;  %v2015_v35 = vld [vmem:[%s2165_s13 + $0x44] ss:$16 sps:$4 sm:$0xff]   ;;  %v1998_v40 = vld [vmem:[%s2165_s13 + $0x1e0] ss:$16 sps:$4 sm:$0xff]   ;;  %v2017_v55 = vld [vmem:[%s2165_s13 + $0x4c] ss:$16 sps:$4 sm:$0xff]  }
  0x16   : > { %v1996_v37 = vld [vmem:[%s2165_s13 + $0x1e4] ss:$16 sps:$4 sm:$0xff]   ;;  %v2019_v42 = vld [vmem:[%s2165_s13 + $0x40] ss:$16 sps:$4 sm:$0xff]   ;;  %v2020_v57 = vld [vmem:[%s2165_s13 + $0x48] ss:$16 sps:$4 sm:$0xff]  }
  0x17   : > { %1947 = vmatpush3.bf16.msra.mxu1 %v1968_v9  ;;  %1660 = vmatpush3.bf16.msra.mxu0 %v1968_v9  ;;  %v2021_v43 = vld [vmem:[%s2165_s13 + $0x64] ss:$16 sps:$4 sm:$0xff]   ;;  %v2025_v49 = vld [vmem:[%s2165_s13 + $0x60] ss:$16 sps:$4 sm:$0xff]   ;;  %v2023_v59 = vld [vmem:[%s2165_s13 + $0x6c] ss:$16 sps:$4 sm:$0xff]  }
  0x18   : > { %1940 = vmatprep.subr.bf16.mxu1 %v1969_v10  ;;  %1661 = vmatprep.subr.bf16.mxu0 %v1969_v10  ;;  %v2027_v50 = vld [vmem:[%s2165_s13 + $0x84] ss:$16 sps:$4 sm:$0xff]   ;;  %v2031_v52 = vld [vmem:[%s2165_s13 + $0x80] ss:$16 sps:$4 sm:$0xff]   ;;  %v2026_v61 = vld [vmem:[%s2165_s13 + $0x68] ss:$16 sps:$4 sm:$0xff]  }
  0x19   : > { %v2033_v54 = vld [vmem:[%s2165_s13 + $0xa4] ss:$16 sps:$4 sm:$0xff]   ;;  %v2037_v56 = vld [vmem:[%s2165_s13 + $0xa0] ss:$16 sps:$4 sm:$0xff]   ;;  %v2029_v63 = vld [vmem:[%s2165_s13 + $0x8c] ss:$16 sps:$4 sm:$0xff]  }
  0x1a   : > { %v2039_v58 = vld [vmem:[%s2165_s13 + $0xc4] ss:$16 sps:$4 sm:$0xff]   ;;  %v2043_v60 = vld [vmem:[%s2165_s13 + $0xc0] ss:$16 sps:$4 sm:$0xff]   ;;  %v2032_v1 = vld [vmem:[%s2165_s13 + $0x88] ss:$16 sps:$4 sm:$0xff]  }
  0x1b   : > { %1948 = vmatpush3.bf16.msra.mxu1 %v1970_v12  ;;  %1662 = vmatpush3.bf16.msra.mxu0 %v1970_v12  ;;  %v2045_v62 = vld [vmem:[%s2165_s13 + $0xe4] ss:$16 sps:$4 sm:$0xff]   ;;  %v2049_v0 = vld [vmem:[%s2165_s13 + $0xe0] ss:$16 sps:$4 sm:$0xff]   ;;  %v2035_v3 = vld [vmem:[%s2165_s13 + $0xac] ss:$16 sps:$4 sm:$0xff]  }
  0x1c   : > { %1941 = vmatprep.subr.bf16.mxu1 %v1971_v13  ;;  %1663 = vmatprep.subr.bf16.mxu0 %v1971_v13  ;;  %v2051_v2 = vld [vmem:[%s2165_s13 + $0x104] ss:$16 sps:$4 sm:$0xff]   ;;  %v2055_v4 = vld [vmem:[%s2165_s13 + $0x100] ss:$16 sps:$4 sm:$0xff]   ;;  %v2038_v5 = vld [vmem:[%s2165_s13 + $0xa8] ss:$16 sps:$4 sm:$0xff]  }
  0x1d   : > { %v2057_v6 = vld [vmem:[%s2165_s13 + $0x124] ss:$16 sps:$4 sm:$0xff]   ;;  %v2041_v7 = vld [vmem:[%s2165_s13 + $0xcc] ss:$16 sps:$4 sm:$0xff]   ;;  %v2061_v8 = vld [vmem:[%s2165_s13 + $0x120] ss:$16 sps:$4 sm:$0xff]  }
  0x1e   : > { %v2044_v9 = vld [vmem:[%s2165_s13 + $0xc8] ss:$16 sps:$4 sm:$0xff]   ;;  %v2063_v10 = vld [vmem:[%s2165_s13 + $0x144] ss:$16 sps:$4 sm:$0xff]   ;;  %v2047_v11 = vld [vmem:[%s2165_s13 + $0xec] ss:$16 sps:$4 sm:$0xff]  }
  0x1f   : > { %1949 = vmatpush3.bf16.msra.mxu1 %v1972_v14  ;;  %1664 = vmatpush3.bf16.msra.mxu0 %v1972_v14  ;;  %v2067_v12 = vld [vmem:[%s2165_s13 + $0x140] ss:$16 sps:$4 sm:$0xff]   ;;  %v2050_v13 = vld [vmem:[%s2165_s13 + $0xe8] ss:$16 sps:$4 sm:$0xff]   ;;  %v2069_v14 = vld [vmem:[%s2165_s13 + $0x164] ss:$16 sps:$4 sm:$0xff]  }
  0x20   : > { %1942 = vmatprep.subr.bf16.mxu1 %v1973_v15  ;;  %1665 = vmatprep.subr.bf16.mxu0 %v1973_v15  ;;  %v2053_v15 = vld [vmem:[%s2165_s13 + $0x10c] ss:$16 sps:$4 sm:$0xff]   ;;  %v2089_v27 = vld [vmem:[%s2464_s2 + $0x10] sm:$0xff]  }
  0x23   : > { %1950 = vmatpush3.bf16.msra.mxu1 %v1974_v16  ;;  %1666 = vmatpush3.bf16.msra.mxu0 %v1974_v16  ;;  %v2073_v16 = vld [vmem:[%s2165_s13 + $0x160] ss:$16 sps:$4 sm:$0xff]  }
  0x24   : > { %1763 = vmatprep.subr.bf16.mxu1 %v1978_v17  ;;  %v2056_v17 = vld [vmem:[%s2165_s13 + $0x108] ss:$16 sps:$4 sm:$0xff]  }
  0x26   : > { %974 = vmatmul.mubr.bf16.vlgmr.msra.gmra.mrb[0].mxu1 %v1975_v18  ;;  %878 = vmatmul.mubr.bf16.vlgmr.msra.gmra.mrb[0].mxu0 %v2003_v26  ;;  %v2059_v18 = vld [vmem:[%s2165_s13 + $0x12c] ss:$16 sps:$4 sm:$0xff]  }
  0x27   : > { %1764 = vmatpush3.bf16.msra.mxu1 %v1979_v19  ;;  %981 = vmatprep.mubr.bf16.mxu1 %v1982_v20  ;;  %v2087_v19 = vld [vmem:[%s2464_s2] sm:$0xff]   ;;  %v2062_v20 = vld [vmem:[%s2165_s13 + $0x128] ss:$16 sps:$4 sm:$0xff]  }
  0x28   : > { %1765 = vmatprep.subr.bf16.mxu1 %v1980_v21  ;;  %885 = vmatprep.mubr.bf16.mxu0 %v2009_v30  ;;  %v2065_v21 = vld [vmem:[%s2165_s13 + $0x14c] ss:$16 sps:$4 sm:$0xff]  }
  0x29   : > { %1895 = vmatprep.subr.bf16.mxu0 %v2087_v19  ;;  %v2088_v26 = vld [vmem:[%s2464_s2 + $0x8] sm:$0xff]   ;;  %v2090_v30 = vld [vmem:[%s2464_s2 + $0x18] sm:$0xff]  }
  0x2a   : > { %1896 = vmatpush3.bf16.msra.mxu0 %v2087_v19 }
  0x2b   : > { %1766 = vmatpush3.bf16.msra.mxu1 %v1981_v22  ;;  %v2068_v22 = vld [vmem:[%s2165_s13 + $0x148] ss:$16 sps:$4 sm:$0xff]   ;;  %1897 = vmatprep.subr.bf16.mxu0 %v2088_v26 }
  0x2c   : > { %1767 = vmatprep.subr.bf16.mxu1 %v1985_v24  ;;  %v2074_v24 = vld [vmem:[%s2165_s13 + $0x168] ss:$16 sps:$4 sm:$0xff]  }
  0x2e   : > { %982 = vmatmul.mubr.bf16.gmra.mrb[4].mxu1 %v1984_v23  ;;  %886 = vmatmul.mubr.bf16.gmra.mrb[4].mxu0 %v2013_v34  ;;  %v2071_v23 = vld [vmem:[%s2165_s13 + $0x16c] ss:$16 sps:$4 sm:$0xff]  }
  0x2f   : > { %1768 = vmatpush3.bf16.msra.mxu1 %v1986_v25  ;;  %989 = vmatprep.mubr.bf16.mxu1 %v1989_v29  ;;  %v2075_v25 = vld [vmem:[%s2165_s13 + $0x18c] ss:$16 sps:$4 sm:$0xff]  }
  0x30   : > { %1769 = vmatprep.subr.bf16.mxu1 %v1987_v28  ;;  %893 = vmatprep.mubr.bf16.mxu0 %v2015_v35  ;;  %v2077_v28 = vld [vmem:[%s2165_s13 + $0x188] ss:$16 sps:$4 sm:$0xff]   ;;  %v2078_v29 = vld [vmem:[%s2165_s13 + $0x1ac] ss:$16 sps:$4 sm:$0xff]  }
  0x31   : > { %1898 = vmatpush3.bf16.msra.mxu0 %v2088_v26  ;;  %v2084_v34 = vld [vmem:[%s2165_s13 + $0x1ec] ss:$16 sps:$4 sm:$0xff]   ;;  %v2086_v35 = vld [vmem:[%s2165_s13 + $0x1e8] ss:$16 sps:$4 sm:$0xff]  }
  0x32   : > { %1899 = vmatprep.subr.bf16.mxu0 %v2089_v27 }
  0x33   : > { %1770 = vmatpush3.bf16.msra.mxu1 %v1988_v31  ;;  %v2080_v31 = vld [vmem:[%s2165_s13 + $0x1a8] ss:$16 sps:$4 sm:$0xff]  }
  0x34   : > { %1771 = vmatprep.subr.bf16.mxu1 %v1992_v33  ;;  %v2083_v33 = vld [vmem:[%s2165_s13 + $0x1c8] ss:$16 sps:$4 sm:$0xff]  }
  0x35   : > { %1900 = vmatpush3.bf16.msra.mxu0 %v2089_v27 }
  0x36   : > { %990 = vmatmul.mubr.bf16.gmra.mrb[8].mxu1 %v1991_v32  ;;  %894 = vmatmul.mubr.bf16.gmra.mrb[8].mxu0 %v2019_v42  ;;  %v2081_v32 = vld [vmem:[%s2165_s13 + $0x1cc] ss:$16 sps:$4 sm:$0xff]   ;;  %s1530_s13 = sshll.u32 %s2468_s19, 3 }
  0x37   : > { %1772 = vmatpush3.bf16.msra.mxu1 %v1993_v36  ;;  %997 = vmatprep.mubr.bf16.mxu1 %v1996_v37  ;;  %s2361_s28 = scalar_lea.vmem %s2466_s4, %s1530_s13 }
  0x38   : > { %1773 = vmatprep.subr.bf16.mxu1 %v1994_v38  ;;  %901 = vmatprep.mubr.bf16.mxu0 %v2021_v43 }
  0x39   : > { %1901 = vmatprep.subr.bf16.mxu0 %v2090_v30 }
  0x3a   : > { %1902 = vmatpush3.bf16.msra.mxu0 %v2090_v30 }
  0x3b   : > { %1774 = vmatpush3.bf16.msra.mxu1 %v1995_v39 }
  0x3c   : > { %1775 = vmatprep.subr.bf16.mxu1 %v1999_v41 }
  0x3e   : > { %998 = vmatmul.mubr.bf16.gmra.mrb[12].mxu1 %v1998_v40  ;;  %902 = vmatmul.mubr.bf16.gmra.mrb[12].mxu0 %v2025_v49 }
  0x3f   : > { %1776 = vmatpush3.bf16.msra.mxu1 %v2000_v44  ;;  %1038 = vmatprep.mubr.bf16.mxu1 %v2008_v45 }
  0x40   : > { %1777 = vmatprep.subr.bf16.mxu1 %v2001_v46  ;;  %909 = vmatprep.mubr.bf16.mxu0 %v2027_v50 }
  0x43   : > { %1778 = vmatpush3.bf16.msra.mxu1 %v2002_v47 }
  0x46   : > { %1039 = vmatmul.mubr.bf16.vlgmr.msra.gmra.mrb[16].mxu1 %v2006_v48  ;;  %910 = vmatmul.mubr.bf16.gmra.mrb[16].mxu0 %v2031_v52 }
  0x47   : > { %1046 = vmatprep.mubr.bf16.mxu1 %v2011_v51  ;;  %917 = vmatprep.mubr.bf16.mxu0 %v2033_v54 }
  0x4e   : > { %1047 = vmatmul.mubr.bf16.gmra.mrb[20].mxu1 %v2014_v53  ;;  %918 = vmatmul.mubr.bf16.gmra.mrb[20].mxu0 %v2037_v56 }
  0x4f   : > { %1054 = vmatprep.mubr.bf16.mxu1 %v2017_v55  ;;  %925 = vmatprep.mubr.bf16.mxu0 %v2039_v58 }
  0x56   : > { %1055 = vmatmul.mubr.bf16.gmra.mrb[24].mxu1 %v2020_v57  ;;  %926 = vmatmul.mubr.bf16.gmra.mrb[24].mxu0 %v2043_v60 }
  0x57   : > { %1062 = vmatprep.mubr.bf16.mxu1 %v2023_v59  ;;  %933 = vmatprep.mubr.bf16.mxu0 %v2045_v62 }
  0x5e   : > { %1063 = vmatmul.mubr.bf16.gmra.mrb[28].mxu1 %v2026_v61  ;;  %934 = vmatmul.mubr.bf16.gmra.mrb[28].mxu0 %v2049_v0 }
  0x5f   : > { %1070 = vmatprep.mubr.bf16.mxu1 %v2029_v63  ;;  %941 = vmatprep.mubr.bf16.mxu0 %v2051_v2 }
  0x66   : > { %1071 = vmatmul.mubr.bf16.gmra.mrb[32].mxu1 %v2032_v1  ;;  %942 = vmatmul.mubr.bf16.gmra.mrb[32].mxu0 %v2055_v4 }
  0x67   : > { %1078 = vmatprep.mubr.bf16.mxu1 %v2035_v3  ;;  %949 = vmatprep.mubr.bf16.mxu0 %v2057_v6 }
  0x6e   : > { %1079 = vmatmul.mubr.bf16.gmra.mrb[36].mxu1 %v2038_v5  ;;  %950 = vmatmul.mubr.bf16.gmra.mrb[36].mxu0 %v2061_v8 }
  0x6f   : > { %1086 = vmatprep.mubr.bf16.mxu1 %v2041_v7  ;;  %957 = vmatprep.mubr.bf16.mxu0 %v2063_v10 }
  0x76   : > { %1087 = vmatmul.mubr.bf16.gmra.mrb[40].mxu1 %v2044_v9  ;;  %958 = vmatmul.mubr.bf16.gmra.mrb[40].mxu0 %v2067_v12 }
  0x77   : > { %1094 = vmatprep.mubr.bf16.mxu1 %v2047_v11  ;;  %965 = vmatprep.mubr.bf16.mxu0 %v2069_v14 }
  0x7e   : > { %1095 = vmatmul.mubr.bf16.gmra.mrb[44].mxu1 %v2050_v13  ;;  %966 = vmatmul.mubr.bf16.gmra.mrb[44].mxu0 %v2073_v16 }
  0x7f   : > { %1102 = vmatprep.mubr.bf16.mxu1 %v2053_v15 }
  0x86   : > { %1103 = vmatmul.mubr.bf16.gmra.mrb[48].mxu1 %v2056_v17 }
  0x87   : > { %1110 = vmatprep.mubr.bf16.mxu1 %v2059_v18 }
  0x8e   : > { %1111 = vmatmul.mubr.bf16.gmra.mrb[52].mxu1 %v2062_v20 }
  0x8f   : > { %1118 = vmatprep.mubr.bf16.mxu1 %v2065_v21 }
  0x96   : > { %1119 = vmatmul.mubr.bf16.gmra.mrb[56].mxu1 %v2068_v22 }
  0x97   : > { %1126 = vmatprep.mubr.bf16.mxu1 %v2071_v23 }
  0x9e   : > { %1127 = vmatmul.mubr.bf16.gmra.mrb[60].mxu1 %v2074_v24 }
  0x9f   : > { %1134 = vmatprep.mubr.bf16.mxu1 %v2075_v25 }
  0xa6   : > { %1135 = vmatmul.mubr.bf16.gmra.mrb[64].mxu1 %v2077_v28 }
  0xa7   : > { %1142 = vmatprep.mubr.bf16.mxu1 %v2078_v29 }
  0xae   : > { %1143 = vmatmul.mubr.bf16.gmra.mrb[68].mxu1 %v2080_v31 }
  0xaf   : > { %1150 = vmatprep.mubr.bf16.mxu1 %v2081_v32 }
  0xb6   : > { %1151 = vmatmul.mubr.bf16.gmra.mrb[72].mxu1 %v2083_v33 }
  0xb7   : > { %1158 = vmatprep.mubr.bf16.mxu1 %v2084_v34 }
  0xbe   : > { %1159 = vmatmul.mubr.bf16.gmra.mrb[76].mxu1 %v2086_v35 }
  0xf9   : > { %v1739_v36 = vpop.f32.mrb[0].mxu1  ;;  %v1667_v42 = vpop.f32.mrb[0].mxu0 }
  0xfa   : > { %v1740_v37 = vpop.f32.mrb[1].mxu1  ;;  %v1668_v44 = vpop.f32.mrb[1].mxu0 }
  0xfb   : > { %v2312_v38 = vadd.f32 %v1740_v37, %v1739_v36  ;;  %v1742_v39 = vpop.f32.mrb[2].mxu1  ;;  %v1669_v46 = vadd.f32 %v1668_v44, %v1667_v42  ;;  %v1670_v47 = vpop.f32.mrb[2].mxu0 }
  0xfc   : > { %v1743_v40 = vpop.f32.mrb[3].mxu1  ;;  %v1671_v50 = vpop.f32.mrb[3].mxu0 }
  0xfd   : > { %v2314_v41 = vadd.f32 %v1743_v40, %v1742_v39  ;;  %v1672_v52 = vadd.f32 %v1671_v50, %v1670_v47 }
 0x101   : > { %v1745_v43 = vpop.f32.mrb[4].mxu1  ;;  %v1673_v54 = vpop.f32.mrb[4].mxu0 }
 0x102   : > { %v1746_v45 = vpop.f32.mrb[5].mxu1  ;;  %v1674_v56 = vpop.f32.mrb[5].mxu0 }
 0x103   : > { %v2316_v48 = vadd.f32 %v1746_v45, %v1745_v43  ;;  %v1748_v49 = vpop.f32.mrb[6].mxu1  ;;  %v1675_v58 = vadd.f32 %v1674_v56, %v1673_v54  ;;  %v1676_v59 = vpop.f32.mrb[6].mxu0 }
 0x104   : > { %v1749_v51 = vpop.f32.mrb[7].mxu1  ;;  %v1677_v62 = vpop.f32.mrb[7].mxu0 }
 0x105   : > { %v2318_v53 = vadd.f32 %v1749_v51, %v1748_v49  ;;  %v1678_v0 = vadd.f32 %v1677_v62, %v1676_v59 }
 0x109   : > { %v1751_v55 = vpop.f32.mrb[8].mxu1  ;;  %v1679_v2 = vpop.f32.mrb[8].mxu0 }
 0x10a   : > { %v1752_v57 = vpop.f32.mrb[9].mxu1  ;;  %v1680_v4 = vpop.f32.mrb[9].mxu0 }
 0x10b   : > { %v2320_v60 = vadd.f32 %v1752_v57, %v1751_v55  ;;  %v1754_v61 = vpop.f32.mrb[10].mxu1  ;;  %v1681_v6 = vadd.f32 %v1680_v4, %v1679_v2  ;;  %v1682_v7 = vpop.f32.mrb[10].mxu0 }
 0x10c   : > { %v1755_v63 = vpop.f32.mrb[11].mxu1  ;;  %v1683_v10 = vpop.f32.mrb[11].mxu0 }
 0x10d   : > { %v2322_v1 = vadd.f32 %v1755_v63, %v1754_v61  ;;  %v1684_v12 = vadd.f32 %v1683_v10, %v1682_v7 }
 0x111   : > { %v1757_v3 = vpop.f32.mrb[12].mxu1  ;;  %v1685_v14 = vpop.f32.mrb[12].mxu0 }
 0x112   : > { %v1758_v5 = vpop.f32.mrb[13].mxu1  ;;  %v1686_v16 = vpop.f32.mrb[13].mxu0 }
 0x113   : > { %v2324_v8 = vadd.f32 %v1758_v5, %v1757_v3  ;;  %v1760_v9 = vpop.f32.mrb[14].mxu1  ;;  %v1687_v18 = vadd.f32 %v1686_v16, %v1685_v14  ;;  %v1688_v19 = vpop.f32.mrb[14].mxu0 }
 0x114   : > { %v1761_v11 = vpop.f32.mrb[15].mxu1  ;;  %v1689_v22 = vpop.f32.mrb[15].mxu0 }
 0x115   : > { %v2326_v13 = vadd.f32 %v1761_v11, %v1760_v9  ;;  %v1690_v24 = vadd.f32 %v1689_v22, %v1688_v19 }
 0x119   : > { %v1779_v15 = vpop.f32.mrb[16].mxu1  ;;  %v1691_v28 = vpop.f32.mrb[16].mxu0 }
 0x11a   : > { %v1780_v17 = vpop.f32.mrb[17].mxu1  ;;  %v1692_v31 = vpop.f32.mrb[17].mxu0 }
 0x11b   : > { %v1781_v20 = vadd.f32 %v1780_v17, %v1779_v15  ;;  %v1782_v21 = vpop.f32.mrb[18].mxu1  ;;  %v1693_v33 = vadd.f32 %v1692_v31, %v1691_v28  ;;  %v1694_v34 = vpop.f32.mrb[18].mxu0 }
 0x11c   : > { %v1783_v23 = vpop.f32.mrb[19].mxu1  ;;  %v1695_v37 = vpop.f32.mrb[19].mxu0 }
 0x11d   : > { %v1041_v25 = vadd.f32 %v1781_v20, %v1669_v46  ;;  %v1784_v26 = vadd.f32 %v1783_v23, %v1782_v21  ;;  %v1696_v40 = vadd.f32 %v1695_v37, %v1694_v34 }
 0x11f   : > { %v1044_v27 = vadd.f32 %v1784_v26, %v1672_v52 }
 0x121   : > { %v1167_v29 = vpack.c.bf16 %v1044_v27, %v1041_v25  ;;  %v1785_v30 = vpop.f32.mrb[20].mxu1  ;;  %v1697_v45 = vpop.f32.mrb[20].mxu0 }
 0x122   : > { %v1786_v32 = vpop.f32.mrb[21].mxu1  ;;  %v1698_v49 = vpop.f32.mrb[21].mxu0 }
 0x123   : > { %v1787_v35 = vadd.f32 %v1786_v32, %v1785_v30  ;;  %v1788_v36 = vpop.f32.mrb[22].mxu1  ;;  %1903 = vmatprep.mubr.msk.bf16.mxu0 %vm1222_vm0, %v1167_v29  ;;  %v1699_v51 = vadd.f32 %v1698_v49, %v1697_v45  ;;  %v1700_v52 = vpop.f32.mrb[22].mxu0 }
 0x124   : > { %v1789_v39 = vpop.f32.mrb[23].mxu1  ;;  %v1701_v56 = vpop.f32.mrb[23].mxu0 }
 0x125   : > { %v1049_v42 = vadd.f32 %v1787_v35, %v1675_v58  ;;  %v1790_v43 = vadd.f32 %v1789_v39, %v1788_v36  ;;  %v1702_v59 = vadd.f32 %v1701_v56, %v1700_v52 }
 0x127   : > { %v1052_v44 = vadd.f32 %v1790_v43, %v1678_v0 }
 0x129   : > { %v1168_v46 = vpack.c.bf16 %v1052_v44, %v1049_v42  ;;  %v1791_v47 = vpop.f32.mrb[24].mxu1  ;;  %v1703_v58 = vpop.f32.mrb[24].mxu0 }
 0x12a   : > { %v1792_v50 = vpop.f32.mrb[25].mxu1  ;;  %v1704_v3 = vpop.f32.mrb[25].mxu0 }
 0x12b   : > { %v1793_v54 = vadd.f32 %v1792_v50, %v1791_v47  ;;  %v1794_v55 = vpop.f32.mrb[26].mxu1  ;;  %1904 = vmatmul.mubr.msk.bf16.vlgmr.msra.gmra.mrb[48].mxu0 %vm1222_vm0, %v1168_v46  ;;  %v1705_v5 = vadd.f32 %v1704_v3, %v1703_v58  ;;  %v1706_v7 = vpop.f32.mrb[26].mxu0 }
 0x12c   : > { %v1795_v57 = vpop.f32.mrb[27].mxu1  ;;  %v1707_v11 = vpop.f32.mrb[27].mxu0 }
 0x12d   : > { %v1057_v61 = vadd.f32 %v1793_v54, %v1681_v6  ;;  %v1796_v62 = vadd.f32 %v1795_v57, %v1794_v55  ;;  %v1708_v15 = vadd.f32 %v1707_v11, %v1706_v7 }
 0x12f   : > { %v1060_v63 = vadd.f32 %v1796_v62, %v1684_v12 }
 0x131   : > { %v1169_v2 = vpack.c.bf16 %v1060_v63, %v1057_v61  ;;  %v1797_v0 = vpop.f32.mrb[28].mxu1  ;;  %v1709_v6 = vpop.f32.mrb[28].mxu0 }
 0x132   : > { %v1798_v4 = vpop.f32.mrb[29].mxu1  ;;  %v1710_v21 = vpop.f32.mrb[29].mxu0 }
 0x133   : > { %v1799_v9 = vadd.f32 %v1798_v4, %v1797_v0  ;;  %v1800_v10 = vpop.f32.mrb[30].mxu1  ;;  %1907 = vmatprep.mubr.msk.bf16.mxu0 %vm1222_vm0, %v1169_v2  ;;  %v1711_v23 = vadd.f32 %v1710_v21, %v1709_v6  ;;  %v1712_v25 = vpop.f32.mrb[30].mxu0 }
 0x134   : > { %v1801_v14 = vpop.f32.mrb[31].mxu1  ;;  %v1713_v28 = vpop.f32.mrb[31].mxu0 }
 0x135   : > { %v1065_v16 = vadd.f32 %v1799_v9, %v1687_v18  ;;  %v1802_v17 = vadd.f32 %v1801_v14, %v1800_v10  ;;  %v1714_v30 = vadd.f32 %v1713_v28, %v1712_v25 }
 0x137   : > { %v1068_v19 = vadd.f32 %v1802_v17, %v1690_v24 }
 0x139   : > { %v1170_v20 = vpack.c.bf16 %v1068_v19, %v1065_v16  ;;  %v1803_v12 = vpop.f32.mrb[32].mxu1  ;;  %v1715_v18 = vpop.f32.mrb[32].mxu0 }
 0x13a   : > { %v1804_v22 = vpop.f32.mrb[33].mxu1  ;;  %v1716_v36 = vpop.f32.mrb[33].mxu0 }
 0x13b   : > { %v1805_v26 = vadd.f32 %v1804_v22, %v1803_v12  ;;  %v1806_v27 = vpop.f32.mrb[34].mxu1  ;;  %1908 = vmatmul.mubr.msk.bf16.gmra.mrb[52].mxu0 %vm1222_vm0, %v1170_v20  ;;  %v1717_v39 = vadd.f32 %v1716_v36, %v1715_v18  ;;  %v1718_v42 = vpop.f32.mrb[34].mxu0 }
 0x13c   : > { %v1807_v29 = vpop.f32.mrb[35].mxu1  ;;  %v1719_v45 = vpop.f32.mrb[35].mxu0 }
 0x13d   : > { %v1073_v31 = vadd.f32 %v1805_v26, %v1693_v33  ;;  %v1808_v32 = vadd.f32 %v1807_v29, %v1806_v27  ;;  %v1720_v47 = vadd.f32 %v1719_v45, %v1718_v42 }
 0x13f   : > { %v1076_v34 = vadd.f32 %v1808_v32, %v1696_v40 }
 0x141   : > { %v1171_v35 = vpack.c.bf16 %v1076_v34, %v1073_v31  ;;  %v1809_v24 = vpop.f32.mrb[36].mxu1  ;;  %v1721_v33 = vpop.f32.mrb[36].mxu0 }
 0x142   : > { %v1810_v37 = vpop.f32.mrb[37].mxu1  ;;  %v1722_v55 = vpop.f32.mrb[37].mxu0 }
 0x143   : > { %v1811_v43 = vadd.f32 %v1810_v37, %v1809_v24  ;;  %v1812_v44 = vpop.f32.mrb[38].mxu1  ;;  %1911 = vmatprep.mubr.msk.bf16.mxu0 %vm1222_vm0, %v1171_v35  ;;  %v1723_v57 = vadd.f32 %v1722_v55, %v1721_v33  ;;  %v1724_v61 = vpop.f32.mrb[38].mxu0 }
 0x144   : > { %v1813_v46 = vpop.f32.mrb[39].mxu1  ;;  %v1725_v58 = vpop.f32.mrb[39].mxu0 }
 0x145   : > { %v1081_v49 = vadd.f32 %v1811_v43, %v1699_v51  ;;  %v1814_v50 = vadd.f32 %v1813_v46, %v1812_v44  ;;  %v1726_v0 = vadd.f32 %v1725_v58, %v1724_v61 }
 0x147   : > { %v1084_v52 = vadd.f32 %v1814_v50, %v1702_v59 }
 0x149   : > { %v1172_v54 = vpack.c.bf16 %v1084_v52, %v1081_v49  ;;  %v1815_v40 = vpop.f32.mrb[40].mxu1  ;;  %v1727_v51 = vpop.f32.mrb[40].mxu0 }
 0x14a   : > { %v1816_v56 = vpop.f32.mrb[41].mxu1  ;;  %v1728_v10 = vpop.f32.mrb[41].mxu0 }
 0x14b   : > { %v1817_v62 = vadd.f32 %v1816_v56, %v1815_v40  ;;  %v1818_v63 = vpop.f32.mrb[42].mxu1  ;;  %1912 = vmatmul.mubr.msk.bf16.gmra.mrb[56].mxu0 %vm1222_vm0, %v1172_v54  ;;  %v1729_v14 = vadd.f32 %v1728_v10, %v1727_v51  ;;  %v1730_v16 = vpop.f32.mrb[42].mxu0 }
 0x14c   : > { %v1819_v2 = vpop.f32.mrb[43].mxu1  ;;  %v1731_v6 = vpop.f32.mrb[43].mxu0 }
 0x14d   : > { %v1089_v3 = vadd.f32 %v1817_v62, %v1705_v5  ;;  %v1820_v4 = vadd.f32 %v1819_v2, %v1818_v63  ;;  %v1732_v12 = vadd.f32 %v1731_v6, %v1730_v16 }
 0x14f   : > { %v1092_v7 = vadd.f32 %v1820_v4, %v1708_v15 }
 0x151   : > { %v1173_v9 = vpack.c.bf16 %v1092_v7, %v1089_v3  ;;  %v1821_v59 = vpop.f32.mrb[44].mxu1  ;;  %v1733_v5 = vpop.f32.mrb[44].mxu0 }
 0x152   : > { %v1822_v11 = vpop.f32.mrb[45].mxu1  ;;  %v1734_v27 = vpop.f32.mrb[45].mxu0 }
 0x153   : > { %v1823_v17 = vadd.f32 %v1822_v11, %v1821_v59  ;;  %v1824_v19 = vpop.f32.mrb[46].mxu1  ;;  %1915 = vmatprep.mubr.msk.bf16.mxu0 %vm1222_vm0, %v1173_v9  ;;  %v1735_v29 = vadd.f32 %v1734_v27, %v1733_v5  ;;  %v1736_v31 = vpop.f32.mrb[46].mxu0 }
 0x154   : > { %v1825_v20 = vpop.f32.mrb[47].mxu1  ;;  %v1737_v18 = vpop.f32.mrb[47].mxu0 }
 0x155   : > { %v1097_v21 = vadd.f32 %v1823_v17, %v1711_v23  ;;  %v1826_v22 = vadd.f32 %v1825_v20, %v1824_v19  ;;  %v1738_v24 = vadd.f32 %v1737_v18, %v1736_v31 }
 0x157   : > { %v1100_v25 = vadd.f32 %v1826_v22, %v1714_v30 }
 0x159   : > { %v1174_v26 = vpack.c.bf16 %v1100_v25, %v1097_v21  ;;  %v1827_v15 = vpop.f32.mrb[48].mxu1 }
 0x15a   : > { %v1828_v28 = vpop.f32.mrb[49].mxu1 }
 0x15b   : > { %v1829_v32 = vadd.f32 %v1828_v28, %v1827_v15  ;;  %v1830_v34 = vpop.f32.mrb[50].mxu1  ;;  %1916 = vmatmul.mubr.msk.bf16.gmra.mrb[60].mxu0 %vm1222_vm0, %v1174_v26 }
 0x15c   : > { %v1831_v35 = vpop.f32.mrb[51].mxu1 }
 0x15d   : > { %v1105_v36 = vadd.f32 %v1829_v32, %v1717_v39  ;;  %v1832_v37 = vadd.f32 %v1831_v35, %v1830_v34 }
 0x15f   : > { %v1108_v42 = vadd.f32 %v1832_v37, %v1720_v47 }
 0x161   : > { %v1175_v23 = vpack.c.bf16 %v1108_v42, %v1105_v36  ;;  %v1833_v43 = vpop.f32.mrb[52].mxu1 }
 0x162   : > { %v1834_v30 = vpop.f32.mrb[53].mxu1 }
 0x163   : > { %v1835_v44 = vadd.f32 %v1834_v30, %v1833_v43  ;;  %v1836_v45 = vpop.f32.mrb[54].mxu1  ;;  %1919 = vmatprep.mubr.msk.bf16.mxu0 %vm1222_vm0, %v1175_v23 }
 0x164   : > { %v1837_v46 = vpop.f32.mrb[55].mxu1 }
 0x165   : > { %v1113_v49 = vadd.f32 %v1835_v44, %v1723_v57  ;;  %v1838_v50 = vadd.f32 %v1837_v46, %v1836_v45 }
 0x167   : > { %v1116_v52 = vadd.f32 %v1838_v50, %v1726_v0 }
 0x169   : > { %v1176_v33 = vpack.c.bf16 %v1116_v52, %v1113_v49  ;;  %v1839_v54 = vpop.f32.mrb[56].mxu1 }
 0x16a   : > { %v1840_v40 = vpop.f32.mrb[57].mxu1 }
 0x16b   : > { %v1841_v55 = vadd.f32 %v1840_v40, %v1839_v54  ;;  %v1842_v56 = vpop.f32.mrb[58].mxu1  ;;  %1920 = vmatmul.mubr.msk.bf16.gmra.mrb[64].mxu0 %vm1222_vm0, %v1176_v33 }
 0x16c   : > { %v1843_v39 = vpop.f32.mrb[59].mxu1 }
 0x16d   : > { %v1121_v47 = vadd.f32 %v1841_v55, %v1729_v14  ;;  %v1844_v61 = vadd.f32 %v1843_v39, %v1842_v56 }
 0x16f   : > { %v1124_v62 = vadd.f32 %v1844_v61, %v1732_v12 }
 0x171   : > { %v1177_v63 = vpack.c.bf16 %v1124_v62, %v1121_v47  ;;  %v1845_v58 = vpop.f32.mrb[60].mxu1 }
 0x172   : > { %v1846_v2 = vpop.f32.mrb[61].mxu1 }
 0x173   : > { %v1847_v3 = vadd.f32 %v1846_v2, %v1845_v58  ;;  %v1848_v4 = vpop.f32.mrb[62].mxu1  ;;  %1923 = vmatprep.mubr.msk.bf16.mxu0 %vm1222_vm0, %v1177_v63 }
 0x174   : > { %v1849_v57 = vpop.f32.mrb[63].mxu1 }
 0x175   : > { %v1129_v0 = vadd.f32 %v1847_v3, %v1735_v29  ;;  %v1850_v7 = vadd.f32 %v1849_v57, %v1848_v4 }
 0x177   : > { %v1132_v51 = vadd.f32 %v1850_v7, %v1738_v24 }
 0x179   : > { %v1178_v9 = vpack.c.bf16 %v1132_v51, %v1129_v0  ;;  %v1851_v59 = vpop.f32.mrb[64].mxu1 }
 0x17a   : > { %v1852_v10 = vpop.f32.mrb[65].mxu1 }
 0x17b   : > { %v1853_v11 = vadd.f32 %v1852_v10, %v1851_v59  ;;  %v1854_v16 = vpop.f32.mrb[66].mxu1  ;;  %1924 = vmatmul.mubr.msk.bf16.gmra.mrb[68].mxu0 %vm1222_vm0, %v1178_v9 }
 0x17c   : > { %v1855_v14 = vpop.f32.mrb[67].mxu1 }
 0x17d   : > { %v1137_v17 = vadd.f32 %v1853_v11, %v2312_v38  ;;  %v1856_v19 = vadd.f32 %v1855_v14, %v1854_v16 }
 0x17f   : > { %v1140_v6 = vadd.f32 %v1856_v19, %v2314_v41 }
 0x181   : > { %v1179_v20 = vpack.c.bf16 %v1140_v6, %v1137_v17  ;;  %v1857_v12 = vpop.f32.mrb[68].mxu1 }
 0x182   : > { %v1858_v21 = vpop.f32.mrb[69].mxu1 }
 0x183   : > { %v1859_v22 = vadd.f32 %v1858_v21, %v1857_v12  ;;  %v1860_v25 = vpop.f32.mrb[70].mxu1  ;;  %1927 = vmatprep.mubr.msk.bf16.mxu0 %vm1222_vm0, %v1179_v20 }
 0x184   : > { %v1861_v5 = vpop.f32.mrb[71].mxu1 }
 0x185   : > { %v1145_v26 = vadd.f32 %v1859_v22, %v2316_v48  ;;  %v1862_v15 = vadd.f32 %v1861_v5, %v1860_v25 }
 0x187   : > { %v1148_v27 = vadd.f32 %v1862_v15, %v2318_v53 }
 0x189   : > { %v1180_v28 = vpack.c.bf16 %v1148_v27, %v1145_v26  ;;  %v1863_v29 = vpop.f32.mrb[72].mxu1 }
 0x18a   : > { %v1864_v31 = vpop.f32.mrb[73].mxu1 }
 0x18b   : > { %v1865_v38 = vadd.f32 %v1864_v31, %v1863_v29  ;;  %v1866_v32 = vpop.f32.mrb[74].mxu1  ;;  %1928 = vmatmul.mubr.msk.bf16.gmra.mrb[72].mxu0 %vm1222_vm0, %v1180_v28 }
 0x18c   : > { %v1867_v41 = vpop.f32.mrb[75].mxu1 }
 0x18d   : > { %v1153_v34 = vadd.f32 %v1865_v38, %v2320_v60  ;;  %v1868_v18 = vadd.f32 %v1867_v41, %v1866_v32  ;;  %v2356_v60 = vld [vmem:[%s2465_s3] ss:$0 sm:$0xff] }
 0x18f   : > { %v1156_v35 = vadd.f32 %v1868_v18, %v2322_v1 }
 0x191   : > { %v1181_v24 = vpack.c.bf16 %v1156_v35, %v1153_v34  ;;  %v1869_v36 = vpop.f32.mrb[76].mxu1 }
 0x192   : > { %v1870_v48 = vpop.f32.mrb[77].mxu1 }
 0x193   : > { %v1871_v37 = vadd.f32 %v1870_v48, %v1869_v36  ;;  %v1872_v42 = vpop.f32.mrb[78].mxu1  ;;  %1931 = vmatprep.mubr.msk.bf16.mxu0 %vm1222_vm0, %v1181_v24 }
 0x194   : > { %v1873_v53 = vpop.f32.mrb[79].mxu1 }
 0x195   : > { %v1161_v23 = vadd.f32 %v1871_v37, %v2324_v8  ;;  %v1874_v43 = vadd.f32 %v1873_v53, %v1872_v42 }
 0x197   : > { %v1164_v30 = vadd.f32 %v1874_v43, %v2326_v13 }
 0x199   : > { %v1182_v44 = vpack.c.bf16 %v1164_v30, %v1161_v23 }
 0x19b   : > { %1932 = vmatmul.mubr.msk.bf16.gmra.mrb[76].mxu0 %vm1222_vm0, %v1182_v44 }
 0x1fe   : > { %v1905_v1 = vpop.f32.mrb[48].mxu0 }
 0x1ff   : > { %v1314_v8 = vadd.f32 %v1905_v1, %v2356_v60  ;;  %v1305_v13 = vpop.f32.mrb[49].mxu0 }
 0x200   : > { %v1306_v45 = vadd.f32 %v2356_v60, %v1305_v13  ;;  %v1906_v46 = vpop.f32.mrb[50].mxu0 }
 0x201   : > { %1435 = vst.msk [vmem:[%s2361_s28 + $0x10] sm:$0xff] %vm1432_vm1, %v1314_v8  ;;  %v1317_v49 = vadd.f32 %v1906_v46, %v2356_v60  ;;  %v1308_v50 = vpop.f32.mrb[51].mxu0 }
 0x202   : > { %1433 = vst.msk [vmem:[%s2361_s28] sm:$0xff] %vm1432_vm1, %v1306_v45  ;;  %v1309_v52 = vadd.f32 %v2356_v60, %v1308_v50 }
 0x203   : > { %1436 = vst.msk [vmem:[%s2361_s28 + $0x18] sm:$0xff] %vm1432_vm1, %v1317_v49 }
 0x204   : > { %1434 = vst.msk [vmem:[%s2361_s28 + $0x8] sm:$0xff] %vm1432_vm1, %v1309_v52 }
 0x20e   : > { %v1909_v33 = vpop.f32.mrb[52].mxu0 }
 0x20f   : > { %v1330_v54 = vadd.f32 %v1909_v33, %v2356_v60  ;;  %v1321_v40 = vpop.f32.mrb[53].mxu0 }
 0x210   : > { %v1322_v55 = vadd.f32 %v2356_v60, %v1321_v40  ;;  %v1910_v56 = vpop.f32.mrb[54].mxu0 }
 0x211   : > { %1439 = vst.msk [vmem:[%s2361_s28 + $0x30] sm:$0xff] %vm1432_vm1, %v1330_v54  ;;  %v1333_v39 = vadd.f32 %v1910_v56, %v2356_v60  ;;  %v1324_v47 = vpop.f32.mrb[55].mxu0 }
 0x212   : > { %1437 = vst.msk [vmem:[%s2361_s28 + $0x20] sm:$0xff] %vm1432_vm1, %v1322_v55  ;;  %v1325_v61 = vadd.f32 %v2356_v60, %v1324_v47 }
 0x213   : > { %1440 = vst.msk [vmem:[%s2361_s28 + $0x38] sm:$0xff] %vm1432_vm1, %v1333_v39 }
 0x214   : > { %1438 = vst.msk [vmem:[%s2361_s28 + $0x28] sm:$0xff] %vm1432_vm1, %v1325_v61 }
 0x21e   : > { %v1913_v62 = vpop.f32.mrb[56].mxu0 }
 0x21f   : > { %v1346_v63 = vadd.f32 %v1913_v62, %v2356_v60  ;;  %v1337_v58 = vpop.f32.mrb[57].mxu0 }
 0x220   : > { %v1338_v2 = vadd.f32 %v2356_v60, %v1337_v58  ;;  %v1914_v3 = vpop.f32.mrb[58].mxu0 }
 0x221   : > { %1443 = vst.msk [vmem:[%s2361_s28 + $0x50] sm:$0xff] %vm1432_vm1, %v1346_v63  ;;  %v1349_v4 = vadd.f32 %v1914_v3, %v2356_v60  ;;  %v1340_v57 = vpop.f32.mrb[59].mxu0 }
 0x222   : > { %1441 = vst.msk [vmem:[%s2361_s28 + $0x40] sm:$0xff] %vm1432_vm1, %v1338_v2  ;;  %v1341_v0 = vadd.f32 %v2356_v60, %v1340_v57 }
 0x223   : > { %1444 = vst.msk [vmem:[%s2361_s28 + $0x58] sm:$0xff] %vm1432_vm1, %v1349_v4 }
 0x224   : > { %1442 = vst.msk [vmem:[%s2361_s28 + $0x48] sm:$0xff] %vm1432_vm1, %v1341_v0 }
 0x22e   : > { %v1917_v7 = vpop.f32.mrb[60].mxu0 }
 0x22f   : > { %v1362_v51 = vadd.f32 %v1917_v7, %v2356_v60  ;;  %v1353_v9 = vpop.f32.mrb[61].mxu0 }
 0x230   : > { %v1354_v59 = vadd.f32 %v2356_v60, %v1353_v9  ;;  %v1918_v10 = vpop.f32.mrb[62].mxu0 }
 0x231   : > { %1447 = vst.msk [vmem:[%s2361_s28 + $0x70] sm:$0xff] %vm1432_vm1, %v1362_v51  ;;  %v1365_v11 = vadd.f32 %v1918_v10, %v2356_v60  ;;  %v1356_v16 = vpop.f32.mrb[63].mxu0 }
 0x232   : > { %1445 = vst.msk [vmem:[%s2361_s28 + $0x60] sm:$0xff] %vm1432_vm1, %v1354_v59  ;;  %v1357_v14 = vadd.f32 %v2356_v60, %v1356_v16 }
 0x233   : > { %1448 = vst.msk [vmem:[%s2361_s28 + $0x78] sm:$0xff] %vm1432_vm1, %v1365_v11 }
 0x234   : > { %1446 = vst.msk [vmem:[%s2361_s28 + $0x68] sm:$0xff] %vm1432_vm1, %v1357_v14 }
 0x23e   : > { %v1921_v17 = vpop.f32.mrb[64].mxu0 }
 0x23f   : > { %v1378_v19 = vadd.f32 %v1921_v17, %v2356_v60  ;;  %v1369_v6 = vpop.f32.mrb[65].mxu0 }
 0x240   : > { %v1370_v20 = vadd.f32 %v2356_v60, %v1369_v6  ;;  %v1922_v12 = vpop.f32.mrb[66].mxu0 }
 0x241   : > { %1451 = vst.msk [vmem:[%s2361_s28 + $0x90] sm:$0xff] %vm1432_vm1, %v1378_v19  ;;  %v1381_v21 = vadd.f32 %v1922_v12, %v2356_v60  ;;  %v1372_v22 = vpop.f32.mrb[67].mxu0 }
 0x242   : > { %1449 = vst.msk [vmem:[%s2361_s28 + $0x80] sm:$0xff] %vm1432_vm1, %v1370_v20  ;;  %v1373_v25 = vadd.f32 %v2356_v60, %v1372_v22 }
 0x243   : > { %1452 = vst.msk [vmem:[%s2361_s28 + $0x98] sm:$0xff] %vm1432_vm1, %v1381_v21 }
 0x244   : > { %1450 = vst.msk [vmem:[%s2361_s28 + $0x88] sm:$0xff] %vm1432_vm1, %v1373_v25 }
 0x24e   : > { %v1925_v5 = vpop.f32.mrb[68].mxu0 }
 0x24f   : > { %v1394_v26 = vadd.f32 %v1925_v5, %v2356_v60  ;;  %v1385_v15 = vpop.f32.mrb[69].mxu0 }
 0x250   : > { %v1386_v27 = vadd.f32 %v2356_v60, %v1385_v15  ;;  %v1926_v28 = vpop.f32.mrb[70].mxu0 }
 0x251   : > { %1455 = vst.msk [vmem:[%s2361_s28 + $0xb0] sm:$0xff] %vm1432_vm1, %v1394_v26  ;;  %v1397_v29 = vadd.f32 %v1926_v28, %v2356_v60  ;;  %v1388_v31 = vpop.f32.mrb[71].mxu0 }
 0x252   : > { %1453 = vst.msk [vmem:[%s2361_s28 + $0xa0] sm:$0xff] %vm1432_vm1, %v1386_v27  ;;  %v1389_v38 = vadd.f32 %v2356_v60, %v1388_v31 }
 0x253   : > { %1456 = vst.msk [vmem:[%s2361_s28 + $0xb8] sm:$0xff] %vm1432_vm1, %v1397_v29 }
 0x254   : > { %1454 = vst.msk [vmem:[%s2361_s28 + $0xa8] sm:$0xff] %vm1432_vm1, %v1389_v38 }
 0x25e   : > { %v1929_v32 = vpop.f32.mrb[72].mxu0 }
 0x25f   : > { %v1410_v41 = vadd.f32 %v1929_v32, %v2356_v60  ;;  %v1401_v34 = vpop.f32.mrb[73].mxu0 }
 0x260   : > { %v1402_v18 = vadd.f32 %v2356_v60, %v1401_v34  ;;  %v1930_v35 = vpop.f32.mrb[74].mxu0 }
 0x261   : > { %1459 = vst.msk [vmem:[%s2361_s28 + $0xd0] sm:$0xff] %vm1432_vm1, %v1410_v41  ;;  %v1413_v24 = vadd.f32 %v1930_v35, %v2356_v60  ;;  %v1404_v36 = vpop.f32.mrb[75].mxu0 }
 0x262   : > { %1457 = vst.msk [vmem:[%s2361_s28 + $0xc0] sm:$0xff] %vm1432_vm1, %v1402_v18  ;;  %v1405_v48 = vadd.f32 %v2356_v60, %v1404_v36 }
 0x263   : > { %1460 = vst.msk [vmem:[%s2361_s28 + $0xd8] sm:$0xff] %vm1432_vm1, %v1413_v24 }
 0x264   : > { %1458 = vst.msk [vmem:[%s2361_s28 + $0xc8] sm:$0xff] %vm1432_vm1, %v1405_v48 }
 0x26e   : > { %v1933_v37 = vpop.f32.mrb[76].mxu0 }
 0x26f   : > { %v1426_v42 = vadd.f32 %v1933_v37, %v2356_v60  ;;  %v1417_v53 = vpop.f32.mrb[77].mxu0 }
 0x270   : > { %v1418_v23 = vadd.f32 %v2356_v60, %v1417_v53  ;;  %v1934_v43 = vpop.f32.mrb[78].mxu0 }
 0x271   : > { %1463 = vst.msk [vmem:[%s2361_s28 + $0xf0] sm:$0xff] %vm1432_vm1, %v1426_v42  ;;  %v1429_v30 = vadd.f32 %v1934_v43, %v2356_v60  ;;  %v1420_v44 = vpop.f32.mrb[79].mxu0 }
 0x272   : > { %1461 = vst.msk [vmem:[%s2361_s28 + $0xe0] sm:$0xff] %vm1432_vm1, %v1418_v23  ;;  %v1421_v1 = vadd.f32 %v2356_v60, %v1420_v44 }
 0x273   : > { %1464 = vst.msk [vmem:[%s2361_s28 + $0xf8] sm:$0xff] %vm1432_vm1, %v1429_v30 }
 0x274   : > { %1462 = vst.msk [vmem:[%s2361_s28 + $0xe8] sm:$0xff] %vm1432_vm1, %v1421_v1 }
 0x275 PF: > { %s14_s15 = sadd.s32 1, %s2097_s15  }
 0x276   : > { %p11_p4 = scmp.ge.s32.totalorder %s14_s15, 4  }
 0x278   :  { %13 = sbr.rel (!%p11_p4) target bundleno = 1 (0x1), region = 66 }

</bundles_post_ra>
